<compile_context>
chip_gen: v6e
topology: v6e:2x2x1
jax: 0.10.0
libtpu: 0.0.40
codegen_flags: <defaults>
</compile_context>

<pallas_src>
import jax
import jax.numpy as jnp
from jax.experimental import pallas as pl
from jax.experimental.pallas import tpu as pltpu

# ---- config (mirrors cfg.* used in the PyTorch module) ----------------------
DIM_IN = 4          # raw node feature dim
DIM_INNER = 32      # cfg.gnn.dim_inner
N_NODES = 8         # nodes in the (single) graph
LAYERS_MP = 4       # cfg.gnn.layers_mp
K_MAX = 3           # cfg.k_max
K = min(K_MAX, LAYERS_MP)
DIM_OUT = 2
EPS = 1e-6


# ---- fused Pallas kernel -----------------------------------------------------
def fused_forward_kernel(x_raw_ref, enc_w_ref, enc_b_ref,
                         ad_w_ref, ad_b_ref, be_w_ref, be_b_ref,
                         head_w_ref, head_b_ref, alpha_ref, out_ref):
    """Entire AlphaGatedGNN forward in one kernel.

    x_raw_ref : (N, DIM_IN)
    enc_w/b   : (DIM_IN, H) / (1, H)
    ad_w      : (L, H, 2H)        fused [A | D] weights per layer
    ad_b      : (L, 1, 2H)
    be_w      : (L*K, H, 2H)      fused [B_k | E_k] weights per (layer, hop)
    be_b      : (L*K, 1, 2H)
    head_w/b  : (H, DIM_OUT) / (1, DIM_OUT)
    alpha_ref : SMEM (L*K,)       softmax(alpha) scalars, precomputed
    out_ref   : (1, DIM_OUT)
    """
    H = DIM_INNER

    # ---- encoder (fused prologue) ----
    x = (jnp.dot(x_raw_ref[...], enc_w_ref[...],
                 preferred_element_type=jnp.float32) + enc_b_ref[...])      # (N, H)

    # history[t] = input to layer t; kept VMEM/vreg-resident across the
    # statically unrolled layer loop (no HBM traffic, no wrapper-side stacking).
    history = [x]

    for t in range(LAYERS_MP):
        # one fused matmul for A and D: (N, H) @ (H, 2H) -> (N, 2H)
        ad = (jnp.dot(x, ad_w_ref[t], preferred_element_type=jnp.float32)
              + ad_b_ref[t])
        Ax = ad[:, :H]
        Dx = ad[:, H:]

        acc = jnp.zeros((N_NODES, H), jnp.float32)
        for k in range(K):                        # static unroll over hops
            xsrc = history[max(t - k, 0)]         # hop-k delayed source state
            # one fused matmul for B_k and E_k
            be = (jnp.dot(xsrc, be_w_ref[t * K + k],
                          preferred_element_type=jnp.float32)
                  + be_b_ref[t * K + k])
            Bx = be[:, :H]
            Ex = be[:, H:]

            # j-accumulation instead of (N, N, H) materialize + XLU axis-1 sum:
            # num_i = sum_j sigmoid(Ax_i + Bx_j) * Ex_j ; den_i = sum_j gate_ij
            num = jnp.zeros((N_NODES, H), jnp.float32)
            den = jnp.zeros((N_NODES, H), jnp.float32)
            for j in range(N_NODES):              # static unroll, VPU adds
                gate_j = jax.nn.sigmoid(Ax + Bx[j:j + 1, :])        # (N, H)
                num = num + gate_j * Ex[j:j + 1, :]
                den = den + gate_j
            agg = num / (den + EPS)

            # softmax(alpha)_k read as a plain SMEM scalar
            acc = acc + alpha_ref[t * K + k] * agg

        # TODO(synk): BatchNorm + dropout of the torch layer omitted (eval identity).
        x = x + jax.nn.relu(Dx + acc)             # residual
        history.append(x)

    # ---- head (fused epilogue): global mean pool + linear ----
    pooled = jnp.mean(x, axis=0, keepdims=True)                     # (1, H)
    out_ref[...] = (jnp.dot(pooled, head_w_ref[...],
                            preferred_element_type=jnp.float32) + head_b_ref[...])


# ---- wrapper ----------------------------------------------------------------
def alpha_gated_gnn_forward(params, x_raw):
    layers = params["layers"]

    # Pack per-layer params into a few lane-dense slabs (parameter-only prep).
    ad_w = jnp.stack([jnp.concatenate([p["A_w"], p["D_w"]], axis=1)
                      for p in layers], axis=0)                     # (L, H, 2H)
    ad_b = jnp.stack([jnp.concatenate([p["A_b"], p["D_b"]], axis=1)
                      for p in layers], axis=0)                     # (L, 1, 2H)
    be_w = jnp.concatenate(
        [jnp.concatenate([p["B_w"], p["E_w"]], axis=2) for p in layers],
        axis=0)                                                     # (L*K, H, 2H)
    be_b = jnp.concatenate(
        [jnp.concatenate([p["B_b"], p["E_b"]], axis=2) for p in layers],
        axis=0)                                                     # (L*K, 1, 2H)
    # softmax(alpha) is parameter-only: precompute per layer, pass via SMEM.
    alpha = jnp.concatenate(
        [jax.nn.softmax(p["alpha"], axis=-1).reshape(-1) for p in layers],
        axis=0).astype(jnp.float32)                                 # (L*K,)

    vmem = pl.BlockSpec(memory_space=pltpu.MemorySpace.VMEM)
    smem = pl.BlockSpec(memory_space=pltpu.MemorySpace.SMEM)

    return pl.pallas_call(
        fused_forward_kernel,
        out_shape=jax.ShapeDtypeStruct((1, DIM_OUT), jnp.float32),
        in_specs=[vmem] * 9 + [smem],
        out_specs=vmem,
    )(x_raw, params["enc_w"], params["enc_b"],
      ad_w, ad_b, be_w, be_b,
      params["head_w"], params["head_b"], alpha)


# ---- deterministic parameter init -------------------------------------------
def _init_linear(key, d_in, d_out):
    w = jax.random.normal(key, (d_in, d_out), dtype=jnp.float32) / jnp.sqrt(d_in)
    b = jnp.zeros((1, d_out), dtype=jnp.float32)
    return w, b


def init_params(key):
    keys = jax.random.split(key, 2 + LAYERS_MP)
    enc_w, enc_b = _init_linear(keys[0], DIM_IN, DIM_INNER)
    head_w, head_b = _init_linear(keys[1], DIM_INNER, DIM_OUT)

    layers = []
    for t in range(LAYERS_MP):
        lk = jax.random.split(keys[2 + t], 4 + 2 * K)
        A_w, A_b = _init_linear(lk[0], DIM_INNER, DIM_INNER)
        D_w, D_b = _init_linear(lk[1], DIM_INNER, DIM_INNER)
        B_ws, B_bs, E_ws, E_bs = [], [], [], []
        for k in range(K):
            bw, bb = _init_linear(lk[2 + 2 * k], DIM_INNER, DIM_INNER)
            ew, eb = _init_linear(lk[3 + 2 * k], DIM_INNER, DIM_INNER)
            B_ws.append(bw); B_bs.append(bb); E_ws.append(ew); E_bs.append(eb)
        layers.append({
            "A_w": A_w, "A_b": A_b, "D_w": D_w, "D_b": D_b,
            "B_w": jnp.stack(B_ws, 0), "B_b": jnp.stack(B_bs, 0),
            "E_w": jnp.stack(E_ws, 0), "E_b": jnp.stack(E_bs, 0),
            "alpha": jnp.linspace(-0.5, 0.5, K, dtype=jnp.float32).reshape(1, K),
        })

    return {"enc_w": enc_w, "enc_b": enc_b,
            "head_w": head_w, "head_b": head_b,
            "layers": layers}


if __name__ == "__main__":
    key = jax.random.PRNGKey(0)
    k_x, k_p = jax.random.split(key)
    x = jax.random.normal(k_x, (N_NODES, DIM_IN), dtype=jnp.float32)
    params = init_params(k_p)

    out = alpha_gated_gnn_forward(params, x)
    out = jax.block_until_ready(out)
    assert out.shape == (1, DIM_OUT) and jnp.all(jnp.isfinite(out))
    print("KERNEL_OK")
</pallas_src>

<mosaic_0001>
module attributes {stable_mosaic.version = 11 : i64} {
  func.func @fused_forward_kernel(%arg0: memref<8x4xf32, #tpu.memory_space<vmem>>, %arg1: memref<4x32xf32, #tpu.memory_space<vmem>>, %arg2: memref<1x32xf32, #tpu.memory_space<vmem>>, %arg3: memref<4x32x64xf32, #tpu.memory_space<vmem>>, %arg4: memref<4x1x64xf32, #tpu.memory_space<vmem>>, %arg5: memref<12x32x64xf32, #tpu.memory_space<vmem>>, %arg6: memref<12x1x64xf32, #tpu.memory_space<vmem>>, %arg7: memref<32x2xf32, #tpu.memory_space<vmem>>, %arg8: memref<1x2xf32, #tpu.memory_space<vmem>>, %arg9: memref<12xf32, #tpu.memory_space<smem>>, %arg10: memref<1x2xf32, #tpu.memory_space<vmem>>) attributes {dimension_semantics = [], scalar_prefetch = 0 : i64, scratch_operands = 0 : i64, tpu.core_type = #tpu.core_type<tc>} {
    %c0 = arith.constant 0 : index
    %c0_0 = arith.constant 0 : index
    %0 = vector.load %arg0[%c0, %c0_0] : memref<8x4xf32, #tpu.memory_space<vmem>>, vector<8x4xf32>
    %c0_1 = arith.constant 0 : index
    %c0_2 = arith.constant 0 : index
    %1 = vector.load %arg1[%c0_1, %c0_2] : memref<4x32xf32, #tpu.memory_space<vmem>>, vector<4x32xf32>
    %cst = arith.constant dense<0.000000e+00> : vector<8x32xf32>
    %2 = tpu.matmul %0, %1, %cst {dimension_numbers = #tpu.dot_dimension_numbers<[1], [0], [0], [1], [0, 0, 1, 1], [], []>} : vector<8x4xf32>, vector<4x32xf32>, vector<8x32xf32> -> vector<8x32xf32>
    %c0_3 = arith.constant 0 : index
    %c0_4 = arith.constant 0 : index
    %3 = vector.load %arg2[%c0_3, %c0_4] : memref<1x32xf32, #tpu.memory_space<vmem>>, vector<1x32xf32>
    %4 = vector.broadcast %3 : vector<1x32xf32> to vector<8x32xf32>
    %5 = arith.addf %2, %4 : vector<8x32xf32>
    %c0_5 = arith.constant 0 : index
    %c0_6 = arith.constant 0 : index
    %c0_7 = arith.constant 0 : index
    %6 = vector.load %arg3[%c0_5, %c0_6, %c0_7] : memref<4x32x64xf32, #tpu.memory_space<vmem>>, vector<1x32x64xf32>
    %7 = vector.shape_cast %6 : vector<1x32x64xf32> to vector<32x64xf32>
    %cst_8 = arith.constant dense<0.000000e+00> : vector<8x64xf32>
    %8 = tpu.matmul %5, %7, %cst_8 {dimension_numbers = #tpu.dot_dimension_numbers<[1], [0], [0], [1], [0, 0, 1, 1], [], []>} : vector<8x32xf32>, vector<32x64xf32>, vector<8x64xf32> -> vector<8x64xf32>
    %c0_9 = arith.constant 0 : index
    %c0_10 = arith.constant 0 : index
    %c0_11 = arith.constant 0 : index
    %9 = vector.load %arg4[%c0_9, %c0_10, %c0_11] : memref<4x1x64xf32, #tpu.memory_space<vmem>>, vector<1x1x64xf32>
    %10 = vector.shape_cast %9 : vector<1x1x64xf32> to vector<1x64xf32>
    %11 = vector.broadcast %10 : vector<1x64xf32> to vector<8x64xf32>
    %12 = arith.addf %8, %11 : vector<8x64xf32>
    %13 = vector.extract_strided_slice %12 {offsets = [0, 0], sizes = [8, 32], strides = [1, 1]} : vector<8x64xf32> to vector<8x32xf32>
    %14 = vector.extract_strided_slice %12 {offsets = [0, 32], sizes = [8, 32], strides = [1, 1]} : vector<8x64xf32> to vector<8x32xf32>
    %cst_12 = arith.constant 0.000000e+00 : f32
    %15 = vector.broadcast %cst_12 : f32 to vector<8x32xf32>
    %c0_13 = arith.constant 0 : index
    %c0_14 = arith.constant 0 : index
    %c0_15 = arith.constant 0 : index
    %16 = vector.load %arg5[%c0_13, %c0_14, %c0_15] : memref<12x32x64xf32, #tpu.memory_space<vmem>>, vector<1x32x64xf32>
    %17 = vector.shape_cast %16 : vector<1x32x64xf32> to vector<32x64xf32>
    %cst_16 = arith.constant dense<0.000000e+00> : vector<8x64xf32>
    %18 = tpu.matmul %5, %17, %cst_16 {dimension_numbers = #tpu.dot_dimension_numbers<[1], [0], [0], [1], [0, 0, 1, 1], [], []>} : vector<8x32xf32>, vector<32x64xf32>, vector<8x64xf32> -> vector<8x64xf32>
    %c0_17 = arith.constant 0 : index
    %c0_18 = arith.constant 0 : index
    %c0_19 = arith.constant 0 : index
    %19 = vector.load %arg6[%c0_17, %c0_18, %c0_19] : memref<12x1x64xf32, #tpu.memory_space<vmem>>, vector<1x1x64xf32>
    %20 = vector.shape_cast %19 : vector<1x1x64xf32> to vector<1x64xf32>
    %21 = vector.broadcast %20 : vector<1x64xf32> to vector<8x64xf32>
    %22 = arith.addf %18, %21 : vector<8x64xf32>
    %23 = vector.extract_strided_slice %22 {offsets = [0, 0], sizes = [8, 32], strides = [1, 1]} : vector<8x64xf32> to vector<8x32xf32>
    %24 = vector.extract_strided_slice %22 {offsets = [0, 32], sizes = [8, 32], strides = [1, 1]} : vector<8x64xf32> to vector<8x32xf32>
    %cst_20 = arith.constant 0.000000e+00 : f32
    %25 = vector.broadcast %cst_20 : f32 to vector<8x32xf32>
    %cst_21 = arith.constant 0.000000e+00 : f32
    %26 = vector.broadcast %cst_21 : f32 to vector<8x32xf32>
    %27 = vector.extract_strided_slice %23 {offsets = [0, 0], sizes = [1, 32], strides = [1, 1]} : vector<8x32xf32> to vector<1x32xf32>
    %28 = vector.broadcast %27 : vector<1x32xf32> to vector<8x32xf32>
    %29 = arith.addf %13, %28 : vector<8x32xf32>
    %30 = arith.negf %29 : vector<8x32xf32>
    %31 = math.exp %30 : vector<8x32xf32>
    %cst_22 = arith.constant 1.000000e+00 : f32
    %32 = vector.broadcast %cst_22 : f32 to vector<8x32xf32>
    %33 = arith.addf %32, %31 : vector<8x32xf32>
    %34 = arith.divf %32, %33 : vector<8x32xf32>
    %35 = vector.extract_strided_slice %24 {offsets = [0, 0], sizes = [1, 32], strides = [1, 1]} : vector<8x32xf32> to vector<1x32xf32>
    %36 = vector.broadcast %35 : vector<1x32xf32> to vector<8x32xf32>
    %37 = arith.mulf %34, %36 : vector<8x32xf32>
    %38 = arith.addf %25, %37 : vector<8x32xf32>
    %39 = arith.addf %26, %34 : vector<8x32xf32>
    %40 = vector.extract_strided_slice %23 {offsets = [1, 0], sizes = [1, 32], strides = [1, 1]} : vector<8x32xf32> to vector<1x32xf32>
    %41 = vector.broadcast %40 : vector<1x32xf32> to vector<8x32xf32>
    %42 = arith.addf %13, %41 : vector<8x32xf32>
    %43 = arith.negf %42 : vector<8x32xf32>
    %44 = math.exp %43 : vector<8x32xf32>
    %cst_23 = arith.constant 1.000000e+00 : f32
    %45 = vector.broadcast %cst_23 : f32 to vector<8x32xf32>
    %46 = arith.addf %45, %44 : vector<8x32xf32>
    %47 = arith.divf %45, %46 : vector<8x32xf32>
    %48 = vector.extract_strided_slice %24 {offsets = [1, 0], sizes = [1, 32], strides = [1, 1]} : vector<8x32xf32> to vector<1x32xf32>
    %49 = vector.broadcast %48 : vector<1x32xf32> to vector<8x32xf32>
    %50 = arith.mulf %47, %49 : vector<8x32xf32>
    %51 = arith.addf %38, %50 : vector<8x32xf32>
    %52 = arith.addf %39, %47 : vector<8x32xf32>
    %53 = vector.extract_strided_slice %23 {offsets = [2, 0], sizes = [1, 32], strides = [1, 1]} : vector<8x32xf32> to vector<1x32xf32>
    %54 = vector.broadcast %53 : vector<1x32xf32> to vector<8x32xf32>
    %55 = arith.addf %13, %54 : vector<8x32xf32>
    %56 = arith.negf %55 : vector<8x32xf32>
    %57 = math.exp %56 : vector<8x32xf32>
    %cst_24 = arith.constant 1.000000e+00 : f32
    %58 = vector.broadcast %cst_24 : f32 to vector<8x32xf32>
    %59 = arith.addf %58, %57 : vector<8x32xf32>
    %60 = arith.divf %58, %59 : vector<8x32xf32>
    %61 = vector.extract_strided_slice %24 {offsets = [2, 0], sizes = [1, 32], strides = [1, 1]} : vector<8x32xf32> to vector<1x32xf32>
    %62 = vector.broadcast %61 : vector<1x32xf32> to vector<8x32xf32>
    %63 = arith.mulf %60, %62 : vector<8x32xf32>
    %64 = arith.addf %51, %63 : vector<8x32xf32>
    %65 = arith.addf %52, %60 : vector<8x32xf32>
    %66 = vector.extract_strided_slice %23 {offsets = [3, 0], sizes = [1, 32], strides = [1, 1]} : vector<8x32xf32> to vector<1x32xf32>
    %67 = vector.broadcast %66 : vector<1x32xf32> to vector<8x32xf32>
    %68 = arith.addf %13, %67 : vector<8x32xf32>
    %69 = arith.negf %68 : vector<8x32xf32>
    %70 = math.exp %69 : vector<8x32xf32>
    %cst_25 = arith.constant 1.000000e+00 : f32
    %71 = vector.broadcast %cst_25 : f32 to vector<8x32xf32>
    %72 = arith.addf %71, %70 : vector<8x32xf32>
    %73 = arith.divf %71, %72 : vector<8x32xf32>
    %74 = vector.extract_strided_slice %24 {offsets = [3, 0], sizes = [1, 32], strides = [1, 1]} : vector<8x32xf32> to vector<1x32xf32>
    %75 = vector.broadcast %74 : vector<1x32xf32> to vector<8x32xf32>
    %76 = arith.mulf %73, %75 : vector<8x32xf32>
    %77 = arith.addf %64, %76 : vector<8x32xf32>
    %78 = arith.addf %65, %73 : vector<8x32xf32>
    %79 = vector.extract_strided_slice %23 {offsets = [4, 0], sizes = [1, 32], strides = [1, 1]} : vector<8x32xf32> to vector<1x32xf32>
    %80 = vector.broadcast %79 : vector<1x32xf32> to vector<8x32xf32>
    %81 = arith.addf %13, %80 : vector<8x32xf32>
    %82 = arith.negf %81 : vector<8x32xf32>
    %83 = math.exp %82 : vector<8x32xf32>
    %cst_26 = arith.constant 1.000000e+00 : f32
    %84 = vector.broadcast %cst_26 : f32 to vector<8x32xf32>
    %85 = arith.addf %84, %83 : vector<8x32xf32>
    %86 = arith.divf %84, %85 : vector<8x32xf32>
    %87 = vector.extract_strided_slice %24 {offsets = [4, 0], sizes = [1, 32], strides = [1, 1]} : vector<8x32xf32> to vector<1x32xf32>
    %88 = vector.broadcast %87 : vector<1x32xf32> to vector<8x32xf32>
    %89 = arith.mulf %86, %88 : vector<8x32xf32>
    %90 = arith.addf %77, %89 : vector<8x32xf32>
    %91 = arith.addf %78, %86 : vector<8x32xf32>
    %92 = vector.extract_strided_slice %23 {offsets = [5, 0], sizes = [1, 32], strides = [1, 1]} : vector<8x32xf32> to vector<1x32xf32>
    %93 = vector.broadcast %92 : vector<1x32xf32> to vector<8x32xf32>
    %94 = arith.addf %13, %93 : vector<8x32xf32>
    %95 = arith.negf %94 : vector<8x32xf32>
    %96 = math.exp %95 : vector<8x32xf32>
    %cst_27 = arith.constant 1.000000e+00 : f32
    %97 = vector.broadcast %cst_27 : f32 to vector<8x32xf32>
    %98 = arith.addf %97, %96 : vector<8x32xf32>
    %99 = arith.divf %97, %98 : vector<8x32xf32>
    %100 = vector.extract_strided_slice %24 {offsets = [5, 0], sizes = [1, 32], strides = [1, 1]} : vector<8x32xf32> to vector<1x32xf32>
    %101 = vector.broadcast %100 : vector<1x32xf32> to vector<8x32xf32>
    %102 = arith.mulf %99, %101 : vector<8x32xf32>
    %103 = arith.addf %90, %102 : vector<8x32xf32>
    %104 = arith.addf %91, %99 : vector<8x32xf32>
    %105 = vector.extract_strided_slice %23 {offsets = [6, 0], sizes = [1, 32], strides = [1, 1]} : vector<8x32xf32> to vector<1x32xf32>
    %106 = vector.broadcast %105 : vector<1x32xf32> to vector<8x32xf32>
    %107 = arith.addf %13, %106 : vector<8x32xf32>
    %108 = arith.negf %107 : vector<8x32xf32>
    %109 = math.exp %108 : vector<8x32xf32>
    %cst_28 = arith.constant 1.000000e+00 : f32
    %110 = vector.broadcast %cst_28 : f32 to vector<8x32xf32>
    %111 = arith.addf %110, %109 : vector<8x32xf32>
    %112 = arith.divf %110, %111 : vector<8x32xf32>
    %113 = vector.extract_strided_slice %24 {offsets = [6, 0], sizes = [1, 32], strides = [1, 1]} : vector<8x32xf32> to vector<1x32xf32>
    %114 = vector.broadcast %113 : vector<1x32xf32> to vector<8x32xf32>
    %115 = arith.mulf %112, %114 : vector<8x32xf32>
    %116 = arith.addf %103, %115 : vector<8x32xf32>
    %117 = arith.addf %104, %112 : vector<8x32xf32>
    %118 = vector.extract_strided_slice %23 {offsets = [7, 0], sizes = [1, 32], strides = [1, 1]} : vector<8x32xf32> to vector<1x32xf32>
    %119 = vector.broadcast %118 : vector<1x32xf32> to vector<8x32xf32>
    %120 = arith.addf %13, %119 : vector<8x32xf32>
    %121 = arith.negf %120 : vector<8x32xf32>
    %122 = math.exp %121 : vector<8x32xf32>
    %cst_29 = arith.constant 1.000000e+00 : f32
    %123 = vector.broadcast %cst_29 : f32 to vector<8x32xf32>
    %124 = arith.addf %123, %122 : vector<8x32xf32>
    %125 = arith.divf %123, %124 : vector<8x32xf32>
    %126 = vector.extract_strided_slice %24 {offsets = [7, 0], sizes = [1, 32], strides = [1, 1]} : vector<8x32xf32> to vector<1x32xf32>
    %127 = vector.broadcast %126 : vector<1x32xf32> to vector<8x32xf32>
    %128 = arith.mulf %125, %127 : vector<8x32xf32>
    %129 = arith.addf %116, %128 : vector<8x32xf32>
    %130 = arith.addf %117, %125 : vector<8x32xf32>
    %cst_30 = arith.constant 9.99999997E-7 : f32
    %131 = vector.broadcast %cst_30 : f32 to vector<8x32xf32>
    %132 = arith.addf %130, %131 : vector<8x32xf32>
    %133 = arith.divf %129, %132 : vector<8x32xf32>
    %c0_31 = arith.constant 0 : index
    %134 = memref.load %arg9[%c0_31] : memref<12xf32, #tpu.memory_space<smem>>
    %135 = vector.broadcast %134 : f32 to vector<8x32xf32>
    %136 = arith.mulf %135, %133 : vector<8x32xf32>
    %137 = arith.addf %15, %136 : vector<8x32xf32>
    %c1 = arith.constant 1 : index
    %c0_32 = arith.constant 0 : index
    %c0_33 = arith.constant 0 : index
    %138 = vector.load %arg5[%c1, %c0_32, %c0_33] : memref<12x32x64xf32, #tpu.memory_space<vmem>>, vector<1x32x64xf32>
    %139 = vector.shape_cast %138 : vector<1x32x64xf32> to vector<32x64xf32>
    %cst_34 = arith.constant dense<0.000000e+00> : vector<8x64xf32>
    %140 = tpu.matmul %5, %139, %cst_34 {dimension_numbers = #tpu.dot_dimension_numbers<[1], [0], [0], [1], [0, 0, 1, 1], [], []>} : vector<8x32xf32>, vector<32x64xf32>, vector<8x64xf32> -> vector<8x64xf32>
    %c1_35 = arith.constant 1 : index
    %c0_36 = arith.constant 0 : index
    %c0_37 = arith.constant 0 : index
    %141 = vector.load %arg6[%c1_35, %c0_36, %c0_37] : memref<12x1x64xf32, #tpu.memory_space<vmem>>, vector<1x1x64xf32>
    %142 = vector.shape_cast %141 : vector<1x1x64xf32> to vector<1x64xf32>
    %143 = vector.broadcast %142 : vector<1x64xf32> to vector<8x64xf32>
    %144 = arith.addf %140, %143 : vector<8x64xf32>
    %145 = vector.extract_strided_slice %144 {offsets = [0, 0], sizes = [8, 32], strides = [1, 1]} : vector<8x64xf32> to vector<8x32xf32>
    %146 = vector.extract_strided_slice %144 {offsets = [0, 32], sizes = [8, 32], strides = [1, 1]} : vector<8x64xf32> to vector<8x32xf32>
    %cst_38 = arith.constant 0.000000e+00 : f32
    %147 = vector.broadcast %cst_38 : f32 to vector<8x32xf32>
    %cst_39 = arith.constant 0.000000e+00 : f32
    %148 = vector.broadcast %cst_39 : f32 to vector<8x32xf32>
    %149 = vector.extract_strided_slice %145 {offsets = [0, 0], sizes = [1, 32], strides = [1, 1]} : vector<8x32xf32> to vector<1x32xf32>
    %150 = vector.broadcast %149 : vector<1x32xf32> to vector<8x32xf32>
    %151 = arith.addf %13, %150 : vector<8x32xf32>
    %152 = arith.negf %151 : vector<8x32xf32>
    %153 = math.exp %152 : vector<8x32xf32>
    %cst_40 = arith.constant 1.000000e+00 : f32
    %154 = vector.broadcast %cst_40 : f32 to vector<8x32xf32>
    %155 = arith.addf %154, %153 : vector<8x32xf32>
    %156 = arith.divf %154, %155 : vector<8x32xf32>
    %157 = vector.extract_strided_slice %146 {offsets = [0, 0], sizes = [1, 32], strides = [1, 1]} : vector<8x32xf32> to vector<1x32xf32>
    %158 = vector.broadcast %157 : vector<1x32xf32> to vector<8x32xf32>
    %159 = arith.mulf %156, %158 : vector<8x32xf32>
    %160 = arith.addf %147, %159 : vector<8x32xf32>
    %161 = arith.addf %148, %156 : vector<8x32xf32>
    %162 = vector.extract_strided_slice %145 {offsets = [1, 0], sizes = [1, 32], strides = [1, 1]} : vector<8x32xf32> to vector<1x32xf32>
    %163 = vector.broadcast %162 : vector<1x32xf32> to vector<8x32xf32>
    %164 = arith.addf %13, %163 : vector<8x32xf32>
    %165 = arith.negf %164 : vector<8x32xf32>
    %166 = math.exp %165 : vector<8x32xf32>
    %cst_41 = arith.constant 1.000000e+00 : f32
    %167 = vector.broadcast %cst_41 : f32 to vector<8x32xf32>
    %168 = arith.addf %167, %166 : vector<8x32xf32>
    %169 = arith.divf %167, %168 : vector<8x32xf32>
    %170 = vector.extract_strided_slice %146 {offsets = [1, 0], sizes = [1, 32], strides = [1, 1]} : vector<8x32xf32> to vector<1x32xf32>
    %171 = vector.broadcast %170 : vector<1x32xf32> to vector<8x32xf32>
    %172 = arith.mulf %169, %171 : vector<8x32xf32>
    %173 = arith.addf %160, %172 : vector<8x32xf32>
    %174 = arith.addf %161, %169 : vector<8x32xf32>
    %175 = vector.extract_strided_slice %145 {offsets = [2, 0], sizes = [1, 32], strides = [1, 1]} : vector<8x32xf32> to vector<1x32xf32>
    %176 = vector.broadcast %175 : vector<1x32xf32> to vector<8x32xf32>
    %177 = arith.addf %13, %176 : vector<8x32xf32>
    %178 = arith.negf %177 : vector<8x32xf32>
    %179 = math.exp %178 : vector<8x32xf32>
    %cst_42 = arith.constant 1.000000e+00 : f32
    %180 = vector.broadcast %cst_42 : f32 to vector<8x32xf32>
    %181 = arith.addf %180, %179 : vector<8x32xf32>
    %182 = arith.divf %180, %181 : vector<8x32xf32>
    %183 = vector.extract_strided_slice %146 {offsets = [2, 0], sizes = [1, 32], strides = [1, 1]} : vector<8x32xf32> to vector<1x32xf32>
    %184 = vector.broadcast %183 : vector<1x32xf32> to vector<8x32xf32>
    %185 = arith.mulf %182, %184 : vector<8x32xf32>
    %186 = arith.addf %173, %185 : vector<8x32xf32>
    %187 = arith.addf %174, %182 : vector<8x32xf32>
    %188 = vector.extract_strided_slice %145 {offsets = [3, 0], sizes = [1, 32], strides = [1, 1]} : vector<8x32xf32> to vector<1x32xf32>
    %189 = vector.broadcast %188 : vector<1x32xf32> to vector<8x32xf32>
    %190 = arith.addf %13, %189 : vector<8x32xf32>
    %191 = arith.negf %190 : vector<8x32xf32>
    %192 = math.exp %191 : vector<8x32xf32>
    %cst_43 = arith.constant 1.000000e+00 : f32
    %193 = vector.broadcast %cst_43 : f32 to vector<8x32xf32>
    %194 = arith.addf %193, %192 : vector<8x32xf32>
    %195 = arith.divf %193, %194 : vector<8x32xf32>
    %196 = vector.extract_strided_slice %146 {offsets = [3, 0], sizes = [1, 32], strides = [1, 1]} : vector<8x32xf32> to vector<1x32xf32>
    %197 = vector.broadcast %196 : vector<1x32xf32> to vector<8x32xf32>
    %198 = arith.mulf %195, %197 : vector<8x32xf32>
    %199 = arith.addf %186, %198 : vector<8x32xf32>
    %200 = arith.addf %187, %195 : vector<8x32xf32>
    %201 = vector.extract_strided_slice %145 {offsets = [4, 0], sizes = [1, 32], strides = [1, 1]} : vector<8x32xf32> to vector<1x32xf32>
    %202 = vector.broadcast %201 : vector<1x32xf32> to vector<8x32xf32>
    %203 = arith.addf %13, %202 : vector<8x32xf32>
    %204 = arith.negf %203 : vector<8x32xf32>
    %205 = math.exp %204 : vector<8x32xf32>
    %cst_44 = arith.constant 1.000000e+00 : f32
    %206 = vector.broadcast %cst_44 : f32 to vector<8x32xf32>
    %207 = arith.addf %206, %205 : vector<8x32xf32>
    %208 = arith.divf %206, %207 : vector<8x32xf32>
    %209 = vector.extract_strided_slice %146 {offsets = [4, 0], sizes = [1, 32], strides = [1, 1]} : vector<8x32xf32> to vector<1x32xf32>
    %210 = vector.broadcast %209 : vector<1x32xf32> to vector<8x32xf32>
    %211 = arith.mulf %208, %210 : vector<8x32xf32>
    %212 = arith.addf %199, %211 : vector<8x32xf32>
    %213 = arith.addf %200, %208 : vector<8x32xf32>
    %214 = vector.extract_strided_slice %145 {offsets = [5, 0], sizes = [1, 32], strides = [1, 1]} : vector<8x32xf32> to vector<1x32xf32>
    %215 = vector.broadcast %214 : vector<1x32xf32> to vector<8x32xf32>
    %216 = arith.addf %13, %215 : vector<8x32xf32>
    %217 = arith.negf %216 : vector<8x32xf32>
    %218 = math.exp %217 : vector<8x32xf32>
    %cst_45 = arith.constant 1.000000e+00 : f32
    %219 = vector.broadcast %cst_45 : f32 to vector<8x32xf32>
    %220 = arith.addf %219, %218 : vector<8x32xf32>
    %221 = arith.divf %219, %220 : vector<8x32xf32>
    %222 = vector.extract_strided_slice %146 {offsets = [5, 0], sizes = [1, 32], strides = [1, 1]} : vector<8x32xf32> to vector<1x32xf32>
    %223 = vector.broadcast %222 : vector<1x32xf32> to vector<8x32xf32>
    %224 = arith.mulf %221, %223 : vector<8x32xf32>
    %225 = arith.addf %212, %224 : vector<8x32xf32>
    %226 = arith.addf %213, %221 : vector<8x32xf32>
    %227 = vector.extract_strided_slice %145 {offsets = [6, 0], sizes = [1, 32], strides = [1, 1]} : vector<8x32xf32> to vector<1x32xf32>
    %228 = vector.broadcast %227 : vector<1x32xf32> to vector<8x32xf32>
    %229 = arith.addf %13, %228 : vector<8x32xf32>
    %230 = arith.negf %229 : vector<8x32xf32>
    %231 = math.exp %230 : vector<8x32xf32>
    %cst_46 = arith.constant 1.000000e+00 : f32
    %232 = vector.broadcast %cst_46 : f32 to vector<8x32xf32>
    %233 = arith.addf %232, %231 : vector<8x32xf32>
    %234 = arith.divf %232, %233 : vector<8x32xf32>
    %235 = vector.extract_strided_slice %146 {offsets = [6, 0], sizes = [1, 32], strides = [1, 1]} : vector<8x32xf32> to vector<1x32xf32>
    %236 = vector.broadcast %235 : vector<1x32xf32> to vector<8x32xf32>
    %237 = arith.mulf %234, %236 : vector<8x32xf32>
    %238 = arith.addf %225, %237 : vector<8x32xf32>
    %239 = arith.addf %226, %234 : vector<8x32xf32>
    %240 = vector.extract_strided_slice %145 {offsets = [7, 0], sizes = [1, 32], strides = [1, 1]} : vector<8x32xf32> to vector<1x32xf32>
    %241 = vector.broadcast %240 : vector<1x32xf32> to vector<8x32xf32>
    %242 = arith.addf %13, %241 : vector<8x32xf32>
    %243 = arith.negf %242 : vector<8x32xf32>
    %244 = math.exp %243 : vector<8x32xf32>
    %cst_47 = arith.constant 1.000000e+00 : f32
    %245 = vector.broadcast %cst_47 : f32 to vector<8x32xf32>
    %246 = arith.addf %245, %244 : vector<8x32xf32>
    %247 = arith.divf %245, %246 : vector<8x32xf32>
    %248 = vector.extract_strided_slice %146 {offsets = [7, 0], sizes = [1, 32], strides = [1, 1]} : vector<8x32xf32> to vector<1x32xf32>
    %249 = vector.broadcast %248 : vector<1x32xf32> to vector<8x32xf32>
    %250 = arith.mulf %247, %249 : vector<8x32xf32>
    %251 = arith.addf %238, %250 : vector<8x32xf32>
    %252 = arith.addf %239, %247 : vector<8x32xf32>
    %cst_48 = arith.constant 9.99999997E-7 : f32
    %253 = vector.broadcast %cst_48 : f32 to vector<8x32xf32>
    %254 = arith.addf %252, %253 : vector<8x32xf32>
    %255 = arith.divf %251, %254 : vector<8x32xf32>
    %c1_49 = arith.constant 1 : index
    %256 = memref.load %arg9[%c1_49] : memref<12xf32, #tpu.memory_space<smem>>
    %257 = vector.broadcast %256 : f32 to vector<8x32xf32>
    %258 = arith.mulf %257, %255 : vector<8x32xf32>
    %259 = arith.addf %137, %258 : vector<8x32xf32>
    %c2 = arith.constant 2 : index
    %c0_50 = arith.constant 0 : index
    %c0_51 = arith.constant 0 : index
    %260 = vector.load %arg5[%c2, %c0_50, %c0_51] : memref<12x32x64xf32, #tpu.memory_space<vmem>>, vector<1x32x64xf32>
    %261 = vector.shape_cast %260 : vector<1x32x64xf32> to vector<32x64xf32>
    %cst_52 = arith.constant dense<0.000000e+00> : vector<8x64xf32>
    %262 = tpu.matmul %5, %261, %cst_52 {dimension_numbers = #tpu.dot_dimension_numbers<[1], [0], [0], [1], [0, 0, 1, 1], [], []>} : vector<8x32xf32>, vector<32x64xf32>, vector<8x64xf32> -> vector<8x64xf32>
    %c2_53 = arith.constant 2 : index
    %c0_54 = arith.constant 0 : index
    %c0_55 = arith.constant 0 : index
    %263 = vector.load %arg6[%c2_53, %c0_54, %c0_55] : memref<12x1x64xf32, #tpu.memory_space<vmem>>, vector<1x1x64xf32>
    %264 = vector.shape_cast %263 : vector<1x1x64xf32> to vector<1x64xf32>
    %265 = vector.broadcast %264 : vector<1x64xf32> to vector<8x64xf32>
    %266 = arith.addf %262, %265 : vector<8x64xf32>
    %267 = vector.extract_strided_slice %266 {offsets = [0, 0], sizes = [8, 32], strides = [1, 1]} : vector<8x64xf32> to vector<8x32xf32>
    %268 = vector.extract_strided_slice %266 {offsets = [0, 32], sizes = [8, 32], strides = [1, 1]} : vector<8x64xf32> to vector<8x32xf32>
    %cst_56 = arith.constant 0.000000e+00 : f32
    %269 = vector.broadcast %cst_56 : f32 to vector<8x32xf32>
    %cst_57 = arith.constant 0.000000e+00 : f32
    %270 = vector.broadcast %cst_57 : f32 to vector<8x32xf32>
    %271 = vector.extract_strided_slice %267 {offsets = [0, 0], sizes = [1, 32], strides = [1, 1]} : vector<8x32xf32> to vector<1x32xf32>
    %272 = vector.broadcast %271 : vector<1x32xf32> to vector<8x32xf32>
    %273 = arith.addf %13, %272 : vector<8x32xf32>
    %274 = arith.negf %273 : vector<8x32xf32>
    %275 = math.exp %274 : vector<8x32xf32>
    %cst_58 = arith.constant 1.000000e+00 : f32
    %276 = vector.broadcast %cst_58 : f32 to vector<8x32xf32>
    %277 = arith.addf %276, %275 : vector<8x32xf32>
    %278 = arith.divf %276, %277 : vector<8x32xf32>
    %279 = vector.extract_strided_slice %268 {offsets = [0, 0], sizes = [1, 32], strides = [1, 1]} : vector<8x32xf32> to vector<1x32xf32>
    %280 = vector.broadcast %279 : vector<1x32xf32> to vector<8x32xf32>
    %281 = arith.mulf %278, %280 : vector<8x32xf32>
    %282 = arith.addf %269, %281 : vector<8x32xf32>
    %283 = arith.addf %270, %278 : vector<8x32xf32>
    %284 = vector.extract_strided_slice %267 {offsets = [1, 0], sizes = [1, 32], strides = [1, 1]} : vector<8x32xf32> to vector<1x32xf32>
    %285 = vector.broadcast %284 : vector<1x32xf32> to vector<8x32xf32>
    %286 = arith.addf %13, %285 : vector<8x32xf32>
    %287 = arith.negf %286 : vector<8x32xf32>
    %288 = math.exp %287 : vector<8x32xf32>
    %cst_59 = arith.constant 1.000000e+00 : f32
    %289 = vector.broadcast %cst_59 : f32 to vector<8x32xf32>
    %290 = arith.addf %289, %288 : vector<8x32xf32>
    %291 = arith.divf %289, %290 : vector<8x32xf32>
    %292 = vector.extract_strided_slice %268 {offsets = [1, 0], sizes = [1, 32], strides = [1, 1]} : vector<8x32xf32> to vector<1x32xf32>
    %293 = vector.broadcast %292 : vector<1x32xf32> to vector<8x32xf32>
    %294 = arith.mulf %291, %293 : vector<8x32xf32>
    %295 = arith.addf %282, %294 : vector<8x32xf32>
    %296 = arith.addf %283, %291 : vector<8x32xf32>
    %297 = vector.extract_strided_slice %267 {offsets = [2, 0], sizes = [1, 32], strides = [1, 1]} : vector<8x32xf32> to vector<1x32xf32>
    %298 = vector.broadcast %297 : vector<1x32xf32> to vector<8x32xf32>
    %299 = arith.addf %13, %298 : vector<8x32xf32>
    %300 = arith.negf %299 : vector<8x32xf32>
    %301 = math.exp %300 : vector<8x32xf32>
    %cst_60 = arith.constant 1.000000e+00 : f32
    %302 = vector.broadcast %cst_60 : f32 to vector<8x32xf32>
    %303 = arith.addf %302, %301 : vector<8x32xf32>
    %304 = arith.divf %302, %303 : vector<8x32xf32>
    %305 = vector.extract_strided_slice %268 {offsets = [2, 0], sizes = [1, 32], strides = [1, 1]} : vector<8x32xf32> to vector<1x32xf32>
    %306 = vector.broadcast %305 : vector<1x32xf32> to vector<8x32xf32>
    %307 = arith.mulf %304, %306 : vector<8x32xf32>
    %308 = arith.addf %295, %307 : vector<8x32xf32>
    %309 = arith.addf %296, %304 : vector<8x32xf32>
    %310 = vector.extract_strided_slice %267 {offsets = [3, 0], sizes = [1, 32], strides = [1, 1]} : vector<8x32xf32> to vector<1x32xf32>
    %311 = vector.broadcast %310 : vector<1x32xf32> to vector<8x32xf32>
    %312 = arith.addf %13, %311 : vector<8x32xf32>
    %313 = arith.negf %312 : vector<8x32xf32>
    %314 = math.exp %313 : vector<8x32xf32>
    %cst_61 = arith.constant 1.000000e+00 : f32
    %315 = vector.broadcast %cst_61 : f32 to vector<8x32xf32>
    %316 = arith.addf %315, %314 : vector<8x32xf32>
    %317 = arith.divf %315, %316 : vector<8x32xf32>
    %318 = vector.extract_strided_slice %268 {offsets = [3, 0], sizes = [1, 32], strides = [1, 1]} : vector<8x32xf32> to vector<1x32xf32>
    %319 = vector.broadcast %318 : vector<1x32xf32> to vector<8x32xf32>
    %320 = arith.mulf %317, %319 : vector<8x32xf32>
    %321 = arith.addf %308, %320 : vector<8x32xf32>
    %322 = arith.addf %309, %317 : vector<8x32xf32>
    %323 = vector.extract_strided_slice %267 {offsets = [4, 0], sizes = [1, 32], strides = [1, 1]} : vector<8x32xf32> to vector<1x32xf32>
    %324 = vector.broadcast %323 : vector<1x32xf32> to vector<8x32xf32>
    %325 = arith.addf %13, %324 : vector<8x32xf32>
    %326 = arith.negf %325 : vector<8x32xf32>
    %327 = math.exp %326 : vector<8x32xf32>
    %cst_62 = arith.constant 1.000000e+00 : f32
    %328 = vector.broadcast %cst_62 : f32 to vector<8x32xf32>
    %329 = arith.addf %328, %327 : vector<8x32xf32>
    %330 = arith.divf %328, %329 : vector<8x32xf32>
    %331 = vector.extract_strided_slice %268 {offsets = [4, 0], sizes = [1, 32], strides = [1, 1]} : vector<8x32xf32> to vector<1x32xf32>
    %332 = vector.broadcast %331 : vector<1x32xf32> to vector<8x32xf32>
    %333 = arith.mulf %330, %332 : vector<8x32xf32>
    %334 = arith.addf %321, %333 : vector<8x32xf32>
    %335 = arith.addf %322, %330 : vector<8x32xf32>
    %336 = vector.extract_strided_slice %267 {offsets = [5, 0], sizes = [1, 32], strides = [1, 1]} : vector<8x32xf32> to vector<1x32xf32>
    %337 = vector.broadcast %336 : vector<1x32xf32> to vector<8x32xf32>
    %338 = arith.addf %13, %337 : vector<8x32xf32>
    %339 = arith.negf %338 : vector<8x32xf32>
    %340 = math.exp %339 : vector<8x32xf32>
    %cst_63 = arith.constant 1.000000e+00 : f32
    %341 = vector.broadcast %cst_63 : f32 to vector<8x32xf32>
    %342 = arith.addf %341, %340 : vector<8x32xf32>
    %343 = arith.divf %341, %342 : vector<8x32xf32>
    %344 = vector.extract_strided_slice %268 {offsets = [5, 0], sizes = [1, 32], strides = [1, 1]} : vector<8x32xf32> to vector<1x32xf32>
    %345 = vector.broadcast %344 : vector<1x32xf32> to vector<8x32xf32>
    %346 = arith.mulf %343, %345 : vector<8x32xf32>
    %347 = arith.addf %334, %346 : vector<8x32xf32>
    %348 = arith.addf %335, %343 : vector<8x32xf32>
    %349 = vector.extract_strided_slice %267 {offsets = [6, 0], sizes = [1, 32], strides = [1, 1]} : vector<8x32xf32> to vector<1x32xf32>
    %350 = vector.broadcast %349 : vector<1x32xf32> to vector<8x32xf32>
    %351 = arith.addf %13, %350 : vector<8x32xf32>
    %352 = arith.negf %351 : vector<8x32xf32>
    %353 = math.exp %352 : vector<8x32xf32>
    %cst_64 = arith.constant 1.000000e+00 : f32
    %354 = vector.broadcast %cst_64 : f32 to vector<8x32xf32>
    %355 = arith.addf %354, %353 : vector<8x32xf32>
    %356 = arith.divf %354, %355 : vector<8x32xf32>
    %357 = vector.extract_strided_slice %268 {offsets = [6, 0], sizes = [1, 32], strides = [1, 1]} : vector<8x32xf32> to vector<1x32xf32>
    %358 = vector.broadcast %357 : vector<1x32xf32> to vector<8x32xf32>
    %359 = arith.mulf %356, %358 : vector<8x32xf32>
    %360 = arith.addf %347, %359 : vector<8x32xf32>
    %361 = arith.addf %348, %356 : vector<8x32xf32>
    %362 = vector.extract_strided_slice %267 {offsets = [7, 0], sizes = [1, 32], strides = [1, 1]} : vector<8x32xf32> to vector<1x32xf32>
    %363 = vector.broadcast %362 : vector<1x32xf32> to vector<8x32xf32>
    %364 = arith.addf %13, %363 : vector<8x32xf32>
    %365 = arith.negf %364 : vector<8x32xf32>
    %366 = math.exp %365 : vector<8x32xf32>
    %cst_65 = arith.constant 1.000000e+00 : f32
    %367 = vector.broadcast %cst_65 : f32 to vector<8x32xf32>
    %368 = arith.addf %367, %366 : vector<8x32xf32>
    %369 = arith.divf %367, %368 : vector<8x32xf32>
    %370 = vector.extract_strided_slice %268 {offsets = [7, 0], sizes = [1, 32], strides = [1, 1]} : vector<8x32xf32> to vector<1x32xf32>
    %371 = vector.broadcast %370 : vector<1x32xf32> to vector<8x32xf32>
    %372 = arith.mulf %369, %371 : vector<8x32xf32>
    %373 = arith.addf %360, %372 : vector<8x32xf32>
    %374 = arith.addf %361, %369 : vector<8x32xf32>
    %cst_66 = arith.constant 9.99999997E-7 : f32
    %375 = vector.broadcast %cst_66 : f32 to vector<8x32xf32>
    %376 = arith.addf %374, %375 : vector<8x32xf32>
    %377 = arith.divf %373, %376 : vector<8x32xf32>
    %c2_67 = arith.constant 2 : index
    %378 = memref.load %arg9[%c2_67] : memref<12xf32, #tpu.memory_space<smem>>
    %379 = vector.broadcast %378 : f32 to vector<8x32xf32>
    %380 = arith.mulf %379, %377 : vector<8x32xf32>
    %381 = arith.addf %259, %380 : vector<8x32xf32>
    %382 = arith.addf %14, %381 : vector<8x32xf32>
    %cst_68 = arith.constant 0.000000e+00 : f32
    %383 = vector.broadcast %cst_68 : f32 to vector<8x32xf32>
    %384 = arith.maximumf %382, %383 : vector<8x32xf32>
    %385 = arith.addf %5, %384 : vector<8x32xf32>
    %c1_69 = arith.constant 1 : index
    %c0_70 = arith.constant 0 : index
    %c0_71 = arith.constant 0 : index
    %386 = vector.load %arg3[%c1_69, %c0_70, %c0_71] : memref<4x32x64xf32, #tpu.memory_space<vmem>>, vector<1x32x64xf32>
    %387 = vector.shape_cast %386 : vector<1x32x64xf32> to vector<32x64xf32>
    %cst_72 = arith.constant dense<0.000000e+00> : vector<8x64xf32>
    %388 = tpu.matmul %385, %387, %cst_72 {dimension_numbers = #tpu.dot_dimension_numbers<[1], [0], [0], [1], [0, 0, 1, 1], [], []>} : vector<8x32xf32>, vector<32x64xf32>, vector<8x64xf32> -> vector<8x64xf32>
    %c1_73 = arith.constant 1 : index
    %c0_74 = arith.constant 0 : index
    %c0_75 = arith.constant 0 : index
    %389 = vector.load %arg4[%c1_73, %c0_74, %c0_75] : memref<4x1x64xf32, #tpu.memory_space<vmem>>, vector<1x1x64xf32>
    %390 = vector.shape_cast %389 : vector<1x1x64xf32> to vector<1x64xf32>
    %391 = vector.broadcast %390 : vector<1x64xf32> to vector<8x64xf32>
    %392 = arith.addf %388, %391 : vector<8x64xf32>
    %393 = vector.extract_strided_slice %392 {offsets = [0, 0], sizes = [8, 32], strides = [1, 1]} : vector<8x64xf32> to vector<8x32xf32>
    %394 = vector.extract_strided_slice %392 {offsets = [0, 32], sizes = [8, 32], strides = [1, 1]} : vector<8x64xf32> to vector<8x32xf32>
    %cst_76 = arith.constant 0.000000e+00 : f32
    %395 = vector.broadcast %cst_76 : f32 to vector<8x32xf32>
    %c3 = arith.constant 3 : index
    %c0_77 = arith.constant 0 : index
    %c0_78 = arith.constant 0 : index
    %396 = vector.load %arg5[%c3, %c0_77, %c0_78] : memref<12x32x64xf32, #tpu.memory_space<vmem>>, vector<1x32x64xf32>
    %397 = vector.shape_cast %396 : vector<1x32x64xf32> to vector<32x64xf32>
    %cst_79 = arith.constant dense<0.000000e+00> : vector<8x64xf32>
    %398 = tpu.matmul %385, %397, %cst_79 {dimension_numbers = #tpu.dot_dimension_numbers<[1], [0], [0], [1], [0, 0, 1, 1], [], []>} : vector<8x32xf32>, vector<32x64xf32>, vector<8x64xf32> -> vector<8x64xf32>
    %c3_80 = arith.constant 3 : index
    %c0_81 = arith.constant 0 : index
    %c0_82 = arith.constant 0 : index
    %399 = vector.load %arg6[%c3_80, %c0_81, %c0_82] : memref<12x1x64xf32, #tpu.memory_space<vmem>>, vector<1x1x64xf32>
    %400 = vector.shape_cast %399 : vector<1x1x64xf32> to vector<1x64xf32>
    %401 = vector.broadcast %400 : vector<1x64xf32> to vector<8x64xf32>
    %402 = arith.addf %398, %401 : vector<8x64xf32>
    %403 = vector.extract_strided_slice %402 {offsets = [0, 0], sizes = [8, 32], strides = [1, 1]} : vector<8x64xf32> to vector<8x32xf32>
    %404 = vector.extract_strided_slice %402 {offsets = [0, 32], sizes = [8, 32], strides = [1, 1]} : vector<8x64xf32> to vector<8x32xf32>
    %cst_83 = arith.constant 0.000000e+00 : f32
    %405 = vector.broadcast %cst_83 : f32 to vector<8x32xf32>
    %cst_84 = arith.constant 0.000000e+00 : f32
    %406 = vector.broadcast %cst_84 : f32 to vector<8x32xf32>
    %407 = vector.extract_strided_slice %403 {offsets = [0, 0], sizes = [1, 32], strides = [1, 1]} : vector<8x32xf32> to vector<1x32xf32>
    %408 = vector.broadcast %407 : vector<1x32xf32> to vector<8x32xf32>
    %409 = arith.addf %393, %408 : vector<8x32xf32>
    %410 = arith.negf %409 : vector<8x32xf32>
    %411 = math.exp %410 : vector<8x32xf32>
    %cst_85 = arith.constant 1.000000e+00 : f32
    %412 = vector.broadcast %cst_85 : f32 to vector<8x32xf32>
    %413 = arith.addf %412, %411 : vector<8x32xf32>
    %414 = arith.divf %412, %413 : vector<8x32xf32>
    %415 = vector.extract_strided_slice %404 {offsets = [0, 0], sizes = [1, 32], strides = [1, 1]} : vector<8x32xf32> to vector<1x32xf32>
    %416 = vector.broadcast %415 : vector<1x32xf32> to vector<8x32xf32>
    %417 = arith.mulf %414, %416 : vector<8x32xf32>
    %418 = arith.addf %405, %417 : vector<8x32xf32>
    %419 = arith.addf %406, %414 : vector<8x32xf32>
    %420 = vector.extract_strided_slice %403 {offsets = [1, 0], sizes = [1, 32], strides = [1, 1]} : vector<8x32xf32> to vector<1x32xf32>
    %421 = vector.broadcast %420 : vector<1x32xf32> to vector<8x32xf32>
    %422 = arith.addf %393, %421 : vector<8x32xf32>
    %423 = arith.negf %422 : vector<8x32xf32>
    %424 = math.exp %423 : vector<8x32xf32>
    %cst_86 = arith.constant 1.000000e+00 : f32
    %425 = vector.broadcast %cst_86 : f32 to vector<8x32xf32>
    %426 = arith.addf %425, %424 : vector<8x32xf32>
    %427 = arith.divf %425, %426 : vector<8x32xf32>
    %428 = vector.extract_strided_slice %404 {offsets = [1, 0], sizes = [1, 32], strides = [1, 1]} : vector<8x32xf32> to vector<1x32xf32>
    %429 = vector.broadcast %428 : vector<1x32xf32> to vector<8x32xf32>
    %430 = arith.mulf %427, %429 : vector<8x32xf32>
    %431 = arith.addf %418, %430 : vector<8x32xf32>
    %432 = arith.addf %419, %427 : vector<8x32xf32>
    %433 = vector.extract_strided_slice %403 {offsets = [2, 0], sizes = [1, 32], strides = [1, 1]} : vector<8x32xf32> to vector<1x32xf32>
    %434 = vector.broadcast %433 : vector<1x32xf32> to vector<8x32xf32>
    %435 = arith.addf %393, %434 : vector<8x32xf32>
    %436 = arith.negf %435 : vector<8x32xf32>
    %437 = math.exp %436 : vector<8x32xf32>
    %cst_87 = arith.constant 1.000000e+00 : f32
    %438 = vector.broadcast %cst_87 : f32 to vector<8x32xf32>
    %439 = arith.addf %438, %437 : vector<8x32xf32>
    %440 = arith.divf %438, %439 : vector<8x32xf32>
    %441 = vector.extract_strided_slice %404 {offsets = [2, 0], sizes = [1, 32], strides = [1, 1]} : vector<8x32xf32> to vector<1x32xf32>
    %442 = vector.broadcast %441 : vector<1x32xf32> to vector<8x32xf32>
    %443 = arith.mulf %440, %442 : vector<8x32xf32>
    %444 = arith.addf %431, %443 : vector<8x32xf32>
    %445 = arith.addf %432, %440 : vector<8x32xf32>
    %446 = vector.extract_strided_slice %403 {offsets = [3, 0], sizes = [1, 32], strides = [1, 1]} : vector<8x32xf32> to vector<1x32xf32>
    %447 = vector.broadcast %446 : vector<1x32xf32> to vector<8x32xf32>
    %448 = arith.addf %393, %447 : vector<8x32xf32>
    %449 = arith.negf %448 : vector<8x32xf32>
    %450 = math.exp %449 : vector<8x32xf32>
    %cst_88 = arith.constant 1.000000e+00 : f32
    %451 = vector.broadcast %cst_88 : f32 to vector<8x32xf32>
    %452 = arith.addf %451, %450 : vector<8x32xf32>
    %453 = arith.divf %451, %452 : vector<8x32xf32>
    %454 = vector.extract_strided_slice %404 {offsets = [3, 0], sizes = [1, 32], strides = [1, 1]} : vector<8x32xf32> to vector<1x32xf32>
    %455 = vector.broadcast %454 : vector<1x32xf32> to vector<8x32xf32>
    %456 = arith.mulf %453, %455 : vector<8x32xf32>
    %457 = arith.addf %444, %456 : vector<8x32xf32>
    %458 = arith.addf %445, %453 : vector<8x32xf32>
    %459 = vector.extract_strided_slice %403 {offsets = [4, 0], sizes = [1, 32], strides = [1, 1]} : vector<8x32xf32> to vector<1x32xf32>
    %460 = vector.broadcast %459 : vector<1x32xf32> to vector<8x32xf32>
    %461 = arith.addf %393, %460 : vector<8x32xf32>
    %462 = arith.negf %461 : vector<8x32xf32>
    %463 = math.exp %462 : vector<8x32xf32>
    %cst_89 = arith.constant 1.000000e+00 : f32
    %464 = vector.broadcast %cst_89 : f32 to vector<8x32xf32>
    %465 = arith.addf %464, %463 : vector<8x32xf32>
    %466 = arith.divf %464, %465 : vector<8x32xf32>
    %467 = vector.extract_strided_slice %404 {offsets = [4, 0], sizes = [1, 32], strides = [1, 1]} : vector<8x32xf32> to vector<1x32xf32>
    %468 = vector.broadcast %467 : vector<1x32xf32> to vector<8x32xf32>
    %469 = arith.mulf %466, %468 : vector<8x32xf32>
    %470 = arith.addf %457, %469 : vector<8x32xf32>
    %471 = arith.addf %458, %466 : vector<8x32xf32>
    %472 = vector.extract_strided_slice %403 {offsets = [5, 0], sizes = [1, 32], strides = [1, 1]} : vector<8x32xf32> to vector<1x32xf32>
    %473 = vector.broadcast %472 : vector<1x32xf32> to vector<8x32xf32>
    %474 = arith.addf %393, %473 : vector<8x32xf32>
    %475 = arith.negf %474 : vector<8x32xf32>
    %476 = math.exp %475 : vector<8x32xf32>
    %cst_90 = arith.constant 1.000000e+00 : f32
    %477 = vector.broadcast %cst_90 : f32 to vector<8x32xf32>
    %478 = arith.addf %477, %476 : vector<8x32xf32>
    %479 = arith.divf %477, %478 : vector<8x32xf32>
    %480 = vector.extract_strided_slice %404 {offsets = [5, 0], sizes = [1, 32], strides = [1, 1]} : vector<8x32xf32> to vector<1x32xf32>
    %481 = vector.broadcast %480 : vector<1x32xf32> to vector<8x32xf32>
    %482 = arith.mulf %479, %481 : vector<8x32xf32>
    %483 = arith.addf %470, %482 : vector<8x32xf32>
    %484 = arith.addf %471, %479 : vector<8x32xf32>
    %485 = vector.extract_strided_slice %403 {offsets = [6, 0], sizes = [1, 32], strides = [1, 1]} : vector<8x32xf32> to vector<1x32xf32>
    %486 = vector.broadcast %485 : vector<1x32xf32> to vector<8x32xf32>
    %487 = arith.addf %393, %486 : vector<8x32xf32>
    %488 = arith.negf %487 : vector<8x32xf32>
    %489 = math.exp %488 : vector<8x32xf32>
    %cst_91 = arith.constant 1.000000e+00 : f32
    %490 = vector.broadcast %cst_91 : f32 to vector<8x32xf32>
    %491 = arith.addf %490, %489 : vector<8x32xf32>
    %492 = arith.divf %490, %491 : vector<8x32xf32>
    %493 = vector.extract_strided_slice %404 {offsets = [6, 0], sizes = [1, 32], strides = [1, 1]} : vector<8x32xf32> to vector<1x32xf32>
    %494 = vector.broadcast %493 : vector<1x32xf32> to vector<8x32xf32>
    %495 = arith.mulf %492, %494 : vector<8x32xf32>
    %496 = arith.addf %483, %495 : vector<8x32xf32>
    %497 = arith.addf %484, %492 : vector<8x32xf32>
    %498 = vector.extract_strided_slice %403 {offsets = [7, 0], sizes = [1, 32], strides = [1, 1]} : vector<8x32xf32> to vector<1x32xf32>
    %499 = vector.broadcast %498 : vector<1x32xf32> to vector<8x32xf32>
    %500 = arith.addf %393, %499 : vector<8x32xf32>
    %501 = arith.negf %500 : vector<8x32xf32>
    %502 = math.exp %501 : vector<8x32xf32>
    %cst_92 = arith.constant 1.000000e+00 : f32
    %503 = vector.broadcast %cst_92 : f32 to vector<8x32xf32>
    %504 = arith.addf %503, %502 : vector<8x32xf32>
    %505 = arith.divf %503, %504 : vector<8x32xf32>
    %506 = vector.extract_strided_slice %404 {offsets = [7, 0], sizes = [1, 32], strides = [1, 1]} : vector<8x32xf32> to vector<1x32xf32>
    %507 = vector.broadcast %506 : vector<1x32xf32> to vector<8x32xf32>
    %508 = arith.mulf %505, %507 : vector<8x32xf32>
    %509 = arith.addf %496, %508 : vector<8x32xf32>
    %510 = arith.addf %497, %505 : vector<8x32xf32>
    %cst_93 = arith.constant 9.99999997E-7 : f32
    %511 = vector.broadcast %cst_93 : f32 to vector<8x32xf32>
    %512 = arith.addf %510, %511 : vector<8x32xf32>
    %513 = arith.divf %509, %512 : vector<8x32xf32>
    %c3_94 = arith.constant 3 : index
    %514 = memref.load %arg9[%c3_94] : memref<12xf32, #tpu.memory_space<smem>>
    %515 = vector.broadcast %514 : f32 to vector<8x32xf32>
    %516 = arith.mulf %515, %513 : vector<8x32xf32>
    %517 = arith.addf %395, %516 : vector<8x32xf32>
    %c4 = arith.constant 4 : index
    %c0_95 = arith.constant 0 : index
    %c0_96 = arith.constant 0 : index
    %518 = vector.load %arg5[%c4, %c0_95, %c0_96] : memref<12x32x64xf32, #tpu.memory_space<vmem>>, vector<1x32x64xf32>
    %519 = vector.shape_cast %518 : vector<1x32x64xf32> to vector<32x64xf32>
    %cst_97 = arith.constant dense<0.000000e+00> : vector<8x64xf32>
    %520 = tpu.matmul %5, %519, %cst_97 {dimension_numbers = #tpu.dot_dimension_numbers<[1], [0], [0], [1], [0, 0, 1, 1], [], []>} : vector<8x32xf32>, vector<32x64xf32>, vector<8x64xf32> -> vector<8x64xf32>
    %c4_98 = arith.constant 4 : index
    %c0_99 = arith.constant 0 : index
    %c0_100 = arith.constant 0 : index
    %521 = vector.load %arg6[%c4_98, %c0_99, %c0_100] : memref<12x1x64xf32, #tpu.memory_space<vmem>>, vector<1x1x64xf32>
    %522 = vector.shape_cast %521 : vector<1x1x64xf32> to vector<1x64xf32>
    %523 = vector.broadcast %522 : vector<1x64xf32> to vector<8x64xf32>
    %524 = arith.addf %520, %523 : vector<8x64xf32>
    %525 = vector.extract_strided_slice %524 {offsets = [0, 0], sizes = [8, 32], strides = [1, 1]} : vector<8x64xf32> to vector<8x32xf32>
    %526 = vector.extract_strided_slice %524 {offsets = [0, 32], sizes = [8, 32], strides = [1, 1]} : vector<8x64xf32> to vector<8x32xf32>
    %cst_101 = arith.constant 0.000000e+00 : f32
    %527 = vector.broadcast %cst_101 : f32 to vector<8x32xf32>
    %cst_102 = arith.constant 0.000000e+00 : f32
    %528 = vector.broadcast %cst_102 : f32 to vector<8x32xf32>
    %529 = vector.extract_strided_slice %525 {offsets = [0, 0], sizes = [1, 32], strides = [1, 1]} : vector<8x32xf32> to vector<1x32xf32>
    %530 = vector.broadcast %529 : vector<1x32xf32> to vector<8x32xf32>
    %531 = arith.addf %393, %530 : vector<8x32xf32>
    %532 = arith.negf %531 : vector<8x32xf32>
    %533 = math.exp %532 : vector<8x32xf32>
    %cst_103 = arith.constant 1.000000e+00 : f32
    %534 = vector.broadcast %cst_103 : f32 to vector<8x32xf32>
    %535 = arith.addf %534, %533 : vector<8x32xf32>
    %536 = arith.divf %534, %535 : vector<8x32xf32>
    %537 = vector.extract_strided_slice %526 {offsets = [0, 0], sizes = [1, 32], strides = [1, 1]} : vector<8x32xf32> to vector<1x32xf32>
    %538 = vector.broadcast %537 : vector<1x32xf32> to vector<8x32xf32>
    %539 = arith.mulf %536, %538 : vector<8x32xf32>
    %540 = arith.addf %527, %539 : vector<8x32xf32>
    %541 = arith.addf %528, %536 : vector<8x32xf32>
    %542 = vector.extract_strided_slice %525 {offsets = [1, 0], sizes = [1, 32], strides = [1, 1]} : vector<8x32xf32> to vector<1x32xf32>
    %543 = vector.broadcast %542 : vector<1x32xf32> to vector<8x32xf32>
    %544 = arith.addf %393, %543 : vector<8x32xf32>
    %545 = arith.negf %544 : vector<8x32xf32>
    %546 = math.exp %545 : vector<8x32xf32>
    %cst_104 = arith.constant 1.000000e+00 : f32
    %547 = vector.broadcast %cst_104 : f32 to vector<8x32xf32>
    %548 = arith.addf %547, %546 : vector<8x32xf32>
    %549 = arith.divf %547, %548 : vector<8x32xf32>
    %550 = vector.extract_strided_slice %526 {offsets = [1, 0], sizes = [1, 32], strides = [1, 1]} : vector<8x32xf32> to vector<1x32xf32>
    %551 = vector.broadcast %550 : vector<1x32xf32> to vector<8x32xf32>
    %552 = arith.mulf %549, %551 : vector<8x32xf32>
    %553 = arith.addf %540, %552 : vector<8x32xf32>
    %554 = arith.addf %541, %549 : vector<8x32xf32>
    %555 = vector.extract_strided_slice %525 {offsets = [2, 0], sizes = [1, 32], strides = [1, 1]} : vector<8x32xf32> to vector<1x32xf32>
    %556 = vector.broadcast %555 : vector<1x32xf32> to vector<8x32xf32>
    %557 = arith.addf %393, %556 : vector<8x32xf32>
    %558 = arith.negf %557 : vector<8x32xf32>
    %559 = math.exp %558 : vector<8x32xf32>
    %cst_105 = arith.constant 1.000000e+00 : f32
    %560 = vector.broadcast %cst_105 : f32 to vector<8x32xf32>
    %561 = arith.addf %560, %559 : vector<8x32xf32>
    %562 = arith.divf %560, %561 : vector<8x32xf32>
    %563 = vector.extract_strided_slice %526 {offsets = [2, 0], sizes = [1, 32], strides = [1, 1]} : vector<8x32xf32> to vector<1x32xf32>
    %564 = vector.broadcast %563 : vector<1x32xf32> to vector<8x32xf32>
    %565 = arith.mulf %562, %564 : vector<8x32xf32>
    %566 = arith.addf %553, %565 : vector<8x32xf32>
    %567 = arith.addf %554, %562 : vector<8x32xf32>
    %568 = vector.extract_strided_slice %525 {offsets = [3, 0], sizes = [1, 32], strides = [1, 1]} : vector<8x32xf32> to vector<1x32xf32>
    %569 = vector.broadcast %568 : vector<1x32xf32> to vector<8x32xf32>
    %570 = arith.addf %393, %569 : vector<8x32xf32>
    %571 = arith.negf %570 : vector<8x32xf32>
    %572 = math.exp %571 : vector<8x32xf32>
    %cst_106 = arith.constant 1.000000e+00 : f32
    %573 = vector.broadcast %cst_106 : f32 to vector<8x32xf32>
    %574 = arith.addf %573, %572 : vector<8x32xf32>
    %575 = arith.divf %573, %574 : vector<8x32xf32>
    %576 = vector.extract_strided_slice %526 {offsets = [3, 0], sizes = [1, 32], strides = [1, 1]} : vector<8x32xf32> to vector<1x32xf32>
    %577 = vector.broadcast %576 : vector<1x32xf32> to vector<8x32xf32>
    %578 = arith.mulf %575, %577 : vector<8x32xf32>
    %579 = arith.addf %566, %578 : vector<8x32xf32>
    %580 = arith.addf %567, %575 : vector<8x32xf32>
    %581 = vector.extract_strided_slice %525 {offsets = [4, 0], sizes = [1, 32], strides = [1, 1]} : vector<8x32xf32> to vector<1x32xf32>
    %582 = vector.broadcast %581 : vector<1x32xf32> to vector<8x32xf32>
    %583 = arith.addf %393, %582 : vector<8x32xf32>
    %584 = arith.negf %583 : vector<8x32xf32>
    %585 = math.exp %584 : vector<8x32xf32>
    %cst_107 = arith.constant 1.000000e+00 : f32
    %586 = vector.broadcast %cst_107 : f32 to vector<8x32xf32>
    %587 = arith.addf %586, %585 : vector<8x32xf32>
    %588 = arith.divf %586, %587 : vector<8x32xf32>
    %589 = vector.extract_strided_slice %526 {offsets = [4, 0], sizes = [1, 32], strides = [1, 1]} : vector<8x32xf32> to vector<1x32xf32>
    %590 = vector.broadcast %589 : vector<1x32xf32> to vector<8x32xf32>
    %591 = arith.mulf %588, %590 : vector<8x32xf32>
    %592 = arith.addf %579, %591 : vector<8x32xf32>
    %593 = arith.addf %580, %588 : vector<8x32xf32>
    %594 = vector.extract_strided_slice %525 {offsets = [5, 0], sizes = [1, 32], strides = [1, 1]} : vector<8x32xf32> to vector<1x32xf32>
    %595 = vector.broadcast %594 : vector<1x32xf32> to vector<8x32xf32>
    %596 = arith.addf %393, %595 : vector<8x32xf32>
    %597 = arith.negf %596 : vector<8x32xf32>
    %598 = math.exp %597 : vector<8x32xf32>
    %cst_108 = arith.constant 1.000000e+00 : f32
    %599 = vector.broadcast %cst_108 : f32 to vector<8x32xf32>
    %600 = arith.addf %599, %598 : vector<8x32xf32>
    %601 = arith.divf %599, %600 : vector<8x32xf32>
    %602 = vector.extract_strided_slice %526 {offsets = [5, 0], sizes = [1, 32], strides = [1, 1]} : vector<8x32xf32> to vector<1x32xf32>
    %603 = vector.broadcast %602 : vector<1x32xf32> to vector<8x32xf32>
    %604 = arith.mulf %601, %603 : vector<8x32xf32>
    %605 = arith.addf %592, %604 : vector<8x32xf32>
    %606 = arith.addf %593, %601 : vector<8x32xf32>
    %607 = vector.extract_strided_slice %525 {offsets = [6, 0], sizes = [1, 32], strides = [1, 1]} : vector<8x32xf32> to vector<1x32xf32>
    %608 = vector.broadcast %607 : vector<1x32xf32> to vector<8x32xf32>
    %609 = arith.addf %393, %608 : vector<8x32xf32>
    %610 = arith.negf %609 : vector<8x32xf32>
    %611 = math.exp %610 : vector<8x32xf32>
    %cst_109 = arith.constant 1.000000e+00 : f32
    %612 = vector.broadcast %cst_109 : f32 to vector<8x32xf32>
    %613 = arith.addf %612, %611 : vector<8x32xf32>
    %614 = arith.divf %612, %613 : vector<8x32xf32>
    %615 = vector.extract_strided_slice %526 {offsets = [6, 0], sizes = [1, 32], strides = [1, 1]} : vector<8x32xf32> to vector<1x32xf32>
    %616 = vector.broadcast %615 : vector<1x32xf32> to vector<8x32xf32>
    %617 = arith.mulf %614, %616 : vector<8x32xf32>
    %618 = arith.addf %605, %617 : vector<8x32xf32>
    %619 = arith.addf %606, %614 : vector<8x32xf32>
    %620 = vector.extract_strided_slice %525 {offsets = [7, 0], sizes = [1, 32], strides = [1, 1]} : vector<8x32xf32> to vector<1x32xf32>
    %621 = vector.broadcast %620 : vector<1x32xf32> to vector<8x32xf32>
    %622 = arith.addf %393, %621 : vector<8x32xf32>
    %623 = arith.negf %622 : vector<8x32xf32>
    %624 = math.exp %623 : vector<8x32xf32>
    %cst_110 = arith.constant 1.000000e+00 : f32
    %625 = vector.broadcast %cst_110 : f32 to vector<8x32xf32>
    %626 = arith.addf %625, %624 : vector<8x32xf32>
    %627 = arith.divf %625, %626 : vector<8x32xf32>
    %628 = vector.extract_strided_slice %526 {offsets = [7, 0], sizes = [1, 32], strides = [1, 1]} : vector<8x32xf32> to vector<1x32xf32>
    %629 = vector.broadcast %628 : vector<1x32xf32> to vector<8x32xf32>
    %630 = arith.mulf %627, %629 : vector<8x32xf32>
    %631 = arith.addf %618, %630 : vector<8x32xf32>
    %632 = arith.addf %619, %627 : vector<8x32xf32>
    %cst_111 = arith.constant 9.99999997E-7 : f32
    %633 = vector.broadcast %cst_111 : f32 to vector<8x32xf32>
    %634 = arith.addf %632, %633 : vector<8x32xf32>
    %635 = arith.divf %631, %634 : vector<8x32xf32>
    %c4_112 = arith.constant 4 : index
    %636 = memref.load %arg9[%c4_112] : memref<12xf32, #tpu.memory_space<smem>>
    %637 = vector.broadcast %636 : f32 to vector<8x32xf32>
    %638 = arith.mulf %637, %635 : vector<8x32xf32>
    %639 = arith.addf %517, %638 : vector<8x32xf32>
    %c5 = arith.constant 5 : index
    %c0_113 = arith.constant 0 : index
    %c0_114 = arith.constant 0 : index
    %640 = vector.load %arg5[%c5, %c0_113, %c0_114] : memref<12x32x64xf32, #tpu.memory_space<vmem>>, vector<1x32x64xf32>
    %641 = vector.shape_cast %640 : vector<1x32x64xf32> to vector<32x64xf32>
    %cst_115 = arith.constant dense<0.000000e+00> : vector<8x64xf32>
    %642 = tpu.matmul %5, %641, %cst_115 {dimension_numbers = #tpu.dot_dimension_numbers<[1], [0], [0], [1], [0, 0, 1, 1], [], []>} : vector<8x32xf32>, vector<32x64xf32>, vector<8x64xf32> -> vector<8x64xf32>
    %c5_116 = arith.constant 5 : index
    %c0_117 = arith.constant 0 : index
    %c0_118 = arith.constant 0 : index
    %643 = vector.load %arg6[%c5_116, %c0_117, %c0_118] : memref<12x1x64xf32, #tpu.memory_space<vmem>>, vector<1x1x64xf32>
    %644 = vector.shape_cast %643 : vector<1x1x64xf32> to vector<1x64xf32>
    %645 = vector.broadcast %644 : vector<1x64xf32> to vector<8x64xf32>
    %646 = arith.addf %642, %645 : vector<8x64xf32>
    %647 = vector.extract_strided_slice %646 {offsets = [0, 0], sizes = [8, 32], strides = [1, 1]} : vector<8x64xf32> to vector<8x32xf32>
    %648 = vector.extract_strided_slice %646 {offsets = [0, 32], sizes = [8, 32], strides = [1, 1]} : vector<8x64xf32> to vector<8x32xf32>
    %cst_119 = arith.constant 0.000000e+00 : f32
    %649 = vector.broadcast %cst_119 : f32 to vector<8x32xf32>
    %cst_120 = arith.constant 0.000000e+00 : f32
    %650 = vector.broadcast %cst_120 : f32 to vector<8x32xf32>
    %651 = vector.extract_strided_slice %647 {offsets = [0, 0], sizes = [1, 32], strides = [1, 1]} : vector<8x32xf32> to vector<1x32xf32>
    %652 = vector.broadcast %651 : vector<1x32xf32> to vector<8x32xf32>
    %653 = arith.addf %393, %652 : vector<8x32xf32>
    %654 = arith.negf %653 : vector<8x32xf32>
    %655 = math.exp %654 : vector<8x32xf32>
    %cst_121 = arith.constant 1.000000e+00 : f32
    %656 = vector.broadcast %cst_121 : f32 to vector<8x32xf32>
    %657 = arith.addf %656, %655 : vector<8x32xf32>
    %658 = arith.divf %656, %657 : vector<8x32xf32>
    %659 = vector.extract_strided_slice %648 {offsets = [0, 0], sizes = [1, 32], strides = [1, 1]} : vector<8x32xf32> to vector<1x32xf32>
    %660 = vector.broadcast %659 : vector<1x32xf32> to vector<8x32xf32>
    %661 = arith.mulf %658, %660 : vector<8x32xf32>
    %662 = arith.addf %649, %661 : vector<8x32xf32>
    %663 = arith.addf %650, %658 : vector<8x32xf32>
    %664 = vector.extract_strided_slice %647 {offsets = [1, 0], sizes = [1, 32], strides = [1, 1]} : vector<8x32xf32> to vector<1x32xf32>
    %665 = vector.broadcast %664 : vector<1x32xf32> to vector<8x32xf32>
    %666 = arith.addf %393, %665 : vector<8x32xf32>
    %667 = arith.negf %666 : vector<8x32xf32>
    %668 = math.exp %667 : vector<8x32xf32>
    %cst_122 = arith.constant 1.000000e+00 : f32
    %669 = vector.broadcast %cst_122 : f32 to vector<8x32xf32>
    %670 = arith.addf %669, %668 : vector<8x32xf32>
    %671 = arith.divf %669, %670 : vector<8x32xf32>
    %672 = vector.extract_strided_slice %648 {offsets = [1, 0], sizes = [1, 32], strides = [1, 1]} : vector<8x32xf32> to vector<1x32xf32>
    %673 = vector.broadcast %672 : vector<1x32xf32> to vector<8x32xf32>
    %674 = arith.mulf %671, %673 : vector<8x32xf32>
    %675 = arith.addf %662, %674 : vector<8x32xf32>
    %676 = arith.addf %663, %671 : vector<8x32xf32>
    %677 = vector.extract_strided_slice %647 {offsets = [2, 0], sizes = [1, 32], strides = [1, 1]} : vector<8x32xf32> to vector<1x32xf32>
    %678 = vector.broadcast %677 : vector<1x32xf32> to vector<8x32xf32>
    %679 = arith.addf %393, %678 : vector<8x32xf32>
    %680 = arith.negf %679 : vector<8x32xf32>
    %681 = math.exp %680 : vector<8x32xf32>
    %cst_123 = arith.constant 1.000000e+00 : f32
    %682 = vector.broadcast %cst_123 : f32 to vector<8x32xf32>
    %683 = arith.addf %682, %681 : vector<8x32xf32>
    %684 = arith.divf %682, %683 : vector<8x32xf32>
    %685 = vector.extract_strided_slice %648 {offsets = [2, 0], sizes = [1, 32], strides = [1, 1]} : vector<8x32xf32> to vector<1x32xf32>
    %686 = vector.broadcast %685 : vector<1x32xf32> to vector<8x32xf32>
    %687 = arith.mulf %684, %686 : vector<8x32xf32>
    %688 = arith.addf %675, %687 : vector<8x32xf32>
    %689 = arith.addf %676, %684 : vector<8x32xf32>
    %690 = vector.extract_strided_slice %647 {offsets = [3, 0], sizes = [1, 32], strides = [1, 1]} : vector<8x32xf32> to vector<1x32xf32>
    %691 = vector.broadcast %690 : vector<1x32xf32> to vector<8x32xf32>
    %692 = arith.addf %393, %691 : vector<8x32xf32>
    %693 = arith.negf %692 : vector<8x32xf32>
    %694 = math.exp %693 : vector<8x32xf32>
    %cst_124 = arith.constant 1.000000e+00 : f32
    %695 = vector.broadcast %cst_124 : f32 to vector<8x32xf32>
    %696 = arith.addf %695, %694 : vector<8x32xf32>
    %697 = arith.divf %695, %696 : vector<8x32xf32>
    %698 = vector.extract_strided_slice %648 {offsets = [3, 0], sizes = [1, 32], strides = [1, 1]} : vector<8x32xf32> to vector<1x32xf32>
    %699 = vector.broadcast %698 : vector<1x32xf32> to vector<8x32xf32>
    %700 = arith.mulf %697, %699 : vector<8x32xf32>
    %701 = arith.addf %688, %700 : vector<8x32xf32>
    %702 = arith.addf %689, %697 : vector<8x32xf32>
    %703 = vector.extract_strided_slice %647 {offsets = [4, 0], sizes = [1, 32], strides = [1, 1]} : vector<8x32xf32> to vector<1x32xf32>
    %704 = vector.broadcast %703 : vector<1x32xf32> to vector<8x32xf32>
    %705 = arith.addf %393, %704 : vector<8x32xf32>
    %706 = arith.negf %705 : vector<8x32xf32>
    %707 = math.exp %706 : vector<8x32xf32>
    %cst_125 = arith.constant 1.000000e+00 : f32
    %708 = vector.broadcast %cst_125 : f32 to vector<8x32xf32>
    %709 = arith.addf %708, %707 : vector<8x32xf32>
    %710 = arith.divf %708, %709 : vector<8x32xf32>
    %711 = vector.extract_strided_slice %648 {offsets = [4, 0], sizes = [1, 32], strides = [1, 1]} : vector<8x32xf32> to vector<1x32xf32>
    %712 = vector.broadcast %711 : vector<1x32xf32> to vector<8x32xf32>
    %713 = arith.mulf %710, %712 : vector<8x32xf32>
    %714 = arith.addf %701, %713 : vector<8x32xf32>
    %715 = arith.addf %702, %710 : vector<8x32xf32>
    %716 = vector.extract_strided_slice %647 {offsets = [5, 0], sizes = [1, 32], strides = [1, 1]} : vector<8x32xf32> to vector<1x32xf32>
    %717 = vector.broadcast %716 : vector<1x32xf32> to vector<8x32xf32>
    %718 = arith.addf %393, %717 : vector<8x32xf32>
    %719 = arith.negf %718 : vector<8x32xf32>
    %720 = math.exp %719 : vector<8x32xf32>
    %cst_126 = arith.constant 1.000000e+00 : f32
    %721 = vector.broadcast %cst_126 : f32 to vector<8x32xf32>
    %722 = arith.addf %721, %720 : vector<8x32xf32>
    %723 = arith.divf %721, %722 : vector<8x32xf32>
    %724 = vector.extract_strided_slice %648 {offsets = [5, 0], sizes = [1, 32], strides = [1, 1]} : vector<8x32xf32> to vector<1x32xf32>
    %725 = vector.broadcast %724 : vector<1x32xf32> to vector<8x32xf32>
    %726 = arith.mulf %723, %725 : vector<8x32xf32>
    %727 = arith.addf %714, %726 : vector<8x32xf32>
    %728 = arith.addf %715, %723 : vector<8x32xf32>
    %729 = vector.extract_strided_slice %647 {offsets = [6, 0], sizes = [1, 32], strides = [1, 1]} : vector<8x32xf32> to vector<1x32xf32>
    %730 = vector.broadcast %729 : vector<1x32xf32> to vector<8x32xf32>
    %731 = arith.addf %393, %730 : vector<8x32xf32>
    %732 = arith.negf %731 : vector<8x32xf32>
    %733 = math.exp %732 : vector<8x32xf32>
    %cst_127 = arith.constant 1.000000e+00 : f32
    %734 = vector.broadcast %cst_127 : f32 to vector<8x32xf32>
    %735 = arith.addf %734, %733 : vector<8x32xf32>
    %736 = arith.divf %734, %735 : vector<8x32xf32>
    %737 = vector.extract_strided_slice %648 {offsets = [6, 0], sizes = [1, 32], strides = [1, 1]} : vector<8x32xf32> to vector<1x32xf32>
    %738 = vector.broadcast %737 : vector<1x32xf32> to vector<8x32xf32>
    %739 = arith.mulf %736, %738 : vector<8x32xf32>
    %740 = arith.addf %727, %739 : vector<8x32xf32>
    %741 = arith.addf %728, %736 : vector<8x32xf32>
    %742 = vector.extract_strided_slice %647 {offsets = [7, 0], sizes = [1, 32], strides = [1, 1]} : vector<8x32xf32> to vector<1x32xf32>
    %743 = vector.broadcast %742 : vector<1x32xf32> to vector<8x32xf32>
    %744 = arith.addf %393, %743 : vector<8x32xf32>
    %745 = arith.negf %744 : vector<8x32xf32>
    %746 = math.exp %745 : vector<8x32xf32>
    %cst_128 = arith.constant 1.000000e+00 : f32
    %747 = vector.broadcast %cst_128 : f32 to vector<8x32xf32>
    %748 = arith.addf %747, %746 : vector<8x32xf32>
    %749 = arith.divf %747, %748 : vector<8x32xf32>
    %750 = vector.extract_strided_slice %648 {offsets = [7, 0], sizes = [1, 32], strides = [1, 1]} : vector<8x32xf32> to vector<1x32xf32>
    %751 = vector.broadcast %750 : vector<1x32xf32> to vector<8x32xf32>
    %752 = arith.mulf %749, %751 : vector<8x32xf32>
    %753 = arith.addf %740, %752 : vector<8x32xf32>
    %754 = arith.addf %741, %749 : vector<8x32xf32>
    %cst_129 = arith.constant 9.99999997E-7 : f32
    %755 = vector.broadcast %cst_129 : f32 to vector<8x32xf32>
    %756 = arith.addf %754, %755 : vector<8x32xf32>
    %757 = arith.divf %753, %756 : vector<8x32xf32>
    %c5_130 = arith.constant 5 : index
    %758 = memref.load %arg9[%c5_130] : memref<12xf32, #tpu.memory_space<smem>>
    %759 = vector.broadcast %758 : f32 to vector<8x32xf32>
    %760 = arith.mulf %759, %757 : vector<8x32xf32>
    %761 = arith.addf %639, %760 : vector<8x32xf32>
    %762 = arith.addf %394, %761 : vector<8x32xf32>
    %cst_131 = arith.constant 0.000000e+00 : f32
    %763 = vector.broadcast %cst_131 : f32 to vector<8x32xf32>
    %764 = arith.maximumf %762, %763 : vector<8x32xf32>
    %765 = arith.addf %385, %764 : vector<8x32xf32>
    %c2_132 = arith.constant 2 : index
    %c0_133 = arith.constant 0 : index
    %c0_134 = arith.constant 0 : index
    %766 = vector.load %arg3[%c2_132, %c0_133, %c0_134] : memref<4x32x64xf32, #tpu.memory_space<vmem>>, vector<1x32x64xf32>
    %767 = vector.shape_cast %766 : vector<1x32x64xf32> to vector<32x64xf32>
    %cst_135 = arith.constant dense<0.000000e+00> : vector<8x64xf32>
    %768 = tpu.matmul %765, %767, %cst_135 {dimension_numbers = #tpu.dot_dimension_numbers<[1], [0], [0], [1], [0, 0, 1, 1], [], []>} : vector<8x32xf32>, vector<32x64xf32>, vector<8x64xf32> -> vector<8x64xf32>
    %c2_136 = arith.constant 2 : index
    %c0_137 = arith.constant 0 : index
    %c0_138 = arith.constant 0 : index
    %769 = vector.load %arg4[%c2_136, %c0_137, %c0_138] : memref<4x1x64xf32, #tpu.memory_space<vmem>>, vector<1x1x64xf32>
    %770 = vector.shape_cast %769 : vector<1x1x64xf32> to vector<1x64xf32>
    %771 = vector.broadcast %770 : vector<1x64xf32> to vector<8x64xf32>
    %772 = arith.addf %768, %771 : vector<8x64xf32>
    %773 = vector.extract_strided_slice %772 {offsets = [0, 0], sizes = [8, 32], strides = [1, 1]} : vector<8x64xf32> to vector<8x32xf32>
    %774 = vector.extract_strided_slice %772 {offsets = [0, 32], sizes = [8, 32], strides = [1, 1]} : vector<8x64xf32> to vector<8x32xf32>
    %cst_139 = arith.constant 0.000000e+00 : f32
    %775 = vector.broadcast %cst_139 : f32 to vector<8x32xf32>
    %c6 = arith.constant 6 : index
    %c0_140 = arith.constant 0 : index
    %c0_141 = arith.constant 0 : index
    %776 = vector.load %arg5[%c6, %c0_140, %c0_141] : memref<12x32x64xf32, #tpu.memory_space<vmem>>, vector<1x32x64xf32>
    %777 = vector.shape_cast %776 : vector<1x32x64xf32> to vector<32x64xf32>
    %cst_142 = arith.constant dense<0.000000e+00> : vector<8x64xf32>
    %778 = tpu.matmul %765, %777, %cst_142 {dimension_numbers = #tpu.dot_dimension_numbers<[1], [0], [0], [1], [0, 0, 1, 1], [], []>} : vector<8x32xf32>, vector<32x64xf32>, vector<8x64xf32> -> vector<8x64xf32>
    %c6_143 = arith.constant 6 : index
    %c0_144 = arith.constant 0 : index
    %c0_145 = arith.constant 0 : index
    %779 = vector.load %arg6[%c6_143, %c0_144, %c0_145] : memref<12x1x64xf32, #tpu.memory_space<vmem>>, vector<1x1x64xf32>
    %780 = vector.shape_cast %779 : vector<1x1x64xf32> to vector<1x64xf32>
    %781 = vector.broadcast %780 : vector<1x64xf32> to vector<8x64xf32>
    %782 = arith.addf %778, %781 : vector<8x64xf32>
    %783 = vector.extract_strided_slice %782 {offsets = [0, 0], sizes = [8, 32], strides = [1, 1]} : vector<8x64xf32> to vector<8x32xf32>
    %784 = vector.extract_strided_slice %782 {offsets = [0, 32], sizes = [8, 32], strides = [1, 1]} : vector<8x64xf32> to vector<8x32xf32>
    %cst_146 = arith.constant 0.000000e+00 : f32
    %785 = vector.broadcast %cst_146 : f32 to vector<8x32xf32>
    %cst_147 = arith.constant 0.000000e+00 : f32
    %786 = vector.broadcast %cst_147 : f32 to vector<8x32xf32>
    %787 = vector.extract_strided_slice %783 {offsets = [0, 0], sizes = [1, 32], strides = [1, 1]} : vector<8x32xf32> to vector<1x32xf32>
    %788 = vector.broadcast %787 : vector<1x32xf32> to vector<8x32xf32>
    %789 = arith.addf %773, %788 : vector<8x32xf32>
    %790 = arith.negf %789 : vector<8x32xf32>
    %791 = math.exp %790 : vector<8x32xf32>
    %cst_148 = arith.constant 1.000000e+00 : f32
    %792 = vector.broadcast %cst_148 : f32 to vector<8x32xf32>
    %793 = arith.addf %792, %791 : vector<8x32xf32>
    %794 = arith.divf %792, %793 : vector<8x32xf32>
    %795 = vector.extract_strided_slice %784 {offsets = [0, 0], sizes = [1, 32], strides = [1, 1]} : vector<8x32xf32> to vector<1x32xf32>
    %796 = vector.broadcast %795 : vector<1x32xf32> to vector<8x32xf32>
    %797 = arith.mulf %794, %796 : vector<8x32xf32>
    %798 = arith.addf %785, %797 : vector<8x32xf32>
    %799 = arith.addf %786, %794 : vector<8x32xf32>
    %800 = vector.extract_strided_slice %783 {offsets = [1, 0], sizes = [1, 32], strides = [1, 1]} : vector<8x32xf32> to vector<1x32xf32>
    %801 = vector.broadcast %800 : vector<1x32xf32> to vector<8x32xf32>
    %802 = arith.addf %773, %801 : vector<8x32xf32>
    %803 = arith.negf %802 : vector<8x32xf32>
    %804 = math.exp %803 : vector<8x32xf32>
    %cst_149 = arith.constant 1.000000e+00 : f32
    %805 = vector.broadcast %cst_149 : f32 to vector<8x32xf32>
    %806 = arith.addf %805, %804 : vector<8x32xf32>
    %807 = arith.divf %805, %806 : vector<8x32xf32>
    %808 = vector.extract_strided_slice %784 {offsets = [1, 0], sizes = [1, 32], strides = [1, 1]} : vector<8x32xf32> to vector<1x32xf32>
    %809 = vector.broadcast %808 : vector<1x32xf32> to vector<8x32xf32>
    %810 = arith.mulf %807, %809 : vector<8x32xf32>
    %811 = arith.addf %798, %810 : vector<8x32xf32>
    %812 = arith.addf %799, %807 : vector<8x32xf32>
    %813 = vector.extract_strided_slice %783 {offsets = [2, 0], sizes = [1, 32], strides = [1, 1]} : vector<8x32xf32> to vector<1x32xf32>
    %814 = vector.broadcast %813 : vector<1x32xf32> to vector<8x32xf32>
    %815 = arith.addf %773, %814 : vector<8x32xf32>
    %816 = arith.negf %815 : vector<8x32xf32>
    %817 = math.exp %816 : vector<8x32xf32>
    %cst_150 = arith.constant 1.000000e+00 : f32
    %818 = vector.broadcast %cst_150 : f32 to vector<8x32xf32>
    %819 = arith.addf %818, %817 : vector<8x32xf32>
    %820 = arith.divf %818, %819 : vector<8x32xf32>
    %821 = vector.extract_strided_slice %784 {offsets = [2, 0], sizes = [1, 32], strides = [1, 1]} : vector<8x32xf32> to vector<1x32xf32>
    %822 = vector.broadcast %821 : vector<1x32xf32> to vector<8x32xf32>
    %823 = arith.mulf %820, %822 : vector<8x32xf32>
    %824 = arith.addf %811, %823 : vector<8x32xf32>
    %825 = arith.addf %812, %820 : vector<8x32xf32>
    %826 = vector.extract_strided_slice %783 {offsets = [3, 0], sizes = [1, 32], strides = [1, 1]} : vector<8x32xf32> to vector<1x32xf32>
    %827 = vector.broadcast %826 : vector<1x32xf32> to vector<8x32xf32>
    %828 = arith.addf %773, %827 : vector<8x32xf32>
    %829 = arith.negf %828 : vector<8x32xf32>
    %830 = math.exp %829 : vector<8x32xf32>
    %cst_151 = arith.constant 1.000000e+00 : f32
    %831 = vector.broadcast %cst_151 : f32 to vector<8x32xf32>
    %832 = arith.addf %831, %830 : vector<8x32xf32>
    %833 = arith.divf %831, %832 : vector<8x32xf32>
    %834 = vector.extract_strided_slice %784 {offsets = [3, 0], sizes = [1, 32], strides = [1, 1]} : vector<8x32xf32> to vector<1x32xf32>
    %835 = vector.broadcast %834 : vector<1x32xf32> to vector<8x32xf32>
    %836 = arith.mulf %833, %835 : vector<8x32xf32>
    %837 = arith.addf %824, %836 : vector<8x32xf32>
    %838 = arith.addf %825, %833 : vector<8x32xf32>
    %839 = vector.extract_strided_slice %783 {offsets = [4, 0], sizes = [1, 32], strides = [1, 1]} : vector<8x32xf32> to vector<1x32xf32>
    %840 = vector.broadcast %839 : vector<1x32xf32> to vector<8x32xf32>
    %841 = arith.addf %773, %840 : vector<8x32xf32>
    %842 = arith.negf %841 : vector<8x32xf32>
    %843 = math.exp %842 : vector<8x32xf32>
    %cst_152 = arith.constant 1.000000e+00 : f32
    %844 = vector.broadcast %cst_152 : f32 to vector<8x32xf32>
    %845 = arith.addf %844, %843 : vector<8x32xf32>
    %846 = arith.divf %844, %845 : vector<8x32xf32>
    %847 = vector.extract_strided_slice %784 {offsets = [4, 0], sizes = [1, 32], strides = [1, 1]} : vector<8x32xf32> to vector<1x32xf32>
    %848 = vector.broadcast %847 : vector<1x32xf32> to vector<8x32xf32>
    %849 = arith.mulf %846, %848 : vector<8x32xf32>
    %850 = arith.addf %837, %849 : vector<8x32xf32>
    %851 = arith.addf %838, %846 : vector<8x32xf32>
    %852 = vector.extract_strided_slice %783 {offsets = [5, 0], sizes = [1, 32], strides = [1, 1]} : vector<8x32xf32> to vector<1x32xf32>
    %853 = vector.broadcast %852 : vector<1x32xf32> to vector<8x32xf32>
    %854 = arith.addf %773, %853 : vector<8x32xf32>
    %855 = arith.negf %854 : vector<8x32xf32>
    %856 = math.exp %855 : vector<8x32xf32>
    %cst_153 = arith.constant 1.000000e+00 : f32
    %857 = vector.broadcast %cst_153 : f32 to vector<8x32xf32>
    %858 = arith.addf %857, %856 : vector<8x32xf32>
    %859 = arith.divf %857, %858 : vector<8x32xf32>
    %860 = vector.extract_strided_slice %784 {offsets = [5, 0], sizes = [1, 32], strides = [1, 1]} : vector<8x32xf32> to vector<1x32xf32>
    %861 = vector.broadcast %860 : vector<1x32xf32> to vector<8x32xf32>
    %862 = arith.mulf %859, %861 : vector<8x32xf32>
    %863 = arith.addf %850, %862 : vector<8x32xf32>
    %864 = arith.addf %851, %859 : vector<8x32xf32>
    %865 = vector.extract_strided_slice %783 {offsets = [6, 0], sizes = [1, 32], strides = [1, 1]} : vector<8x32xf32> to vector<1x32xf32>
    %866 = vector.broadcast %865 : vector<1x32xf32> to vector<8x32xf32>
    %867 = arith.addf %773, %866 : vector<8x32xf32>
    %868 = arith.negf %867 : vector<8x32xf32>
    %869 = math.exp %868 : vector<8x32xf32>
    %cst_154 = arith.constant 1.000000e+00 : f32
    %870 = vector.broadcast %cst_154 : f32 to vector<8x32xf32>
    %871 = arith.addf %870, %869 : vector<8x32xf32>
    %872 = arith.divf %870, %871 : vector<8x32xf32>
    %873 = vector.extract_strided_slice %784 {offsets = [6, 0], sizes = [1, 32], strides = [1, 1]} : vector<8x32xf32> to vector<1x32xf32>
    %874 = vector.broadcast %873 : vector<1x32xf32> to vector<8x32xf32>
    %875 = arith.mulf %872, %874 : vector<8x32xf32>
    %876 = arith.addf %863, %875 : vector<8x32xf32>
    %877 = arith.addf %864, %872 : vector<8x32xf32>
    %878 = vector.extract_strided_slice %783 {offsets = [7, 0], sizes = [1, 32], strides = [1, 1]} : vector<8x32xf32> to vector<1x32xf32>
    %879 = vector.broadcast %878 : vector<1x32xf32> to vector<8x32xf32>
    %880 = arith.addf %773, %879 : vector<8x32xf32>
    %881 = arith.negf %880 : vector<8x32xf32>
    %882 = math.exp %881 : vector<8x32xf32>
    %cst_155 = arith.constant 1.000000e+00 : f32
    %883 = vector.broadcast %cst_155 : f32 to vector<8x32xf32>
    %884 = arith.addf %883, %882 : vector<8x32xf32>
    %885 = arith.divf %883, %884 : vector<8x32xf32>
    %886 = vector.extract_strided_slice %784 {offsets = [7, 0], sizes = [1, 32], strides = [1, 1]} : vector<8x32xf32> to vector<1x32xf32>
    %887 = vector.broadcast %886 : vector<1x32xf32> to vector<8x32xf32>
    %888 = arith.mulf %885, %887 : vector<8x32xf32>
    %889 = arith.addf %876, %888 : vector<8x32xf32>
    %890 = arith.addf %877, %885 : vector<8x32xf32>
    %cst_156 = arith.constant 9.99999997E-7 : f32
    %891 = vector.broadcast %cst_156 : f32 to vector<8x32xf32>
    %892 = arith.addf %890, %891 : vector<8x32xf32>
    %893 = arith.divf %889, %892 : vector<8x32xf32>
    %c6_157 = arith.constant 6 : index
    %894 = memref.load %arg9[%c6_157] : memref<12xf32, #tpu.memory_space<smem>>
    %895 = vector.broadcast %894 : f32 to vector<8x32xf32>
    %896 = arith.mulf %895, %893 : vector<8x32xf32>
    %897 = arith.addf %775, %896 : vector<8x32xf32>
    %c7 = arith.constant 7 : index
    %c0_158 = arith.constant 0 : index
    %c0_159 = arith.constant 0 : index
    %898 = vector.load %arg5[%c7, %c0_158, %c0_159] : memref<12x32x64xf32, #tpu.memory_space<vmem>>, vector<1x32x64xf32>
    %899 = vector.shape_cast %898 : vector<1x32x64xf32> to vector<32x64xf32>
    %cst_160 = arith.constant dense<0.000000e+00> : vector<8x64xf32>
    %900 = tpu.matmul %385, %899, %cst_160 {dimension_numbers = #tpu.dot_dimension_numbers<[1], [0], [0], [1], [0, 0, 1, 1], [], []>} : vector<8x32xf32>, vector<32x64xf32>, vector<8x64xf32> -> vector<8x64xf32>
    %c7_161 = arith.constant 7 : index
    %c0_162 = arith.constant 0 : index
    %c0_163 = arith.constant 0 : index
    %901 = vector.load %arg6[%c7_161, %c0_162, %c0_163] : memref<12x1x64xf32, #tpu.memory_space<vmem>>, vector<1x1x64xf32>
    %902 = vector.shape_cast %901 : vector<1x1x64xf32> to vector<1x64xf32>
    %903 = vector.broadcast %902 : vector<1x64xf32> to vector<8x64xf32>
    %904 = arith.addf %900, %903 : vector<8x64xf32>
    %905 = vector.extract_strided_slice %904 {offsets = [0, 0], sizes = [8, 32], strides = [1, 1]} : vector<8x64xf32> to vector<8x32xf32>
    %906 = vector.extract_strided_slice %904 {offsets = [0, 32], sizes = [8, 32], strides = [1, 1]} : vector<8x64xf32> to vector<8x32xf32>
    %cst_164 = arith.constant 0.000000e+00 : f32
    %907 = vector.broadcast %cst_164 : f32 to vector<8x32xf32>
    %cst_165 = arith.constant 0.000000e+00 : f32
    %908 = vector.broadcast %cst_165 : f32 to vector<8x32xf32>
    %909 = vector.extract_strided_slice %905 {offsets = [0, 0], sizes = [1, 32], strides = [1, 1]} : vector<8x32xf32> to vector<1x32xf32>
    %910 = vector.broadcast %909 : vector<1x32xf32> to vector<8x32xf32>
    %911 = arith.addf %773, %910 : vector<8x32xf32>
    %912 = arith.negf %911 : vector<8x32xf32>
    %913 = math.exp %912 : vector<8x32xf32>
    %cst_166 = arith.constant 1.000000e+00 : f32
    %914 = vector.broadcast %cst_166 : f32 to vector<8x32xf32>
    %915 = arith.addf %914, %913 : vector<8x32xf32>
    %916 = arith.divf %914, %915 : vector<8x32xf32>
    %917 = vector.extract_strided_slice %906 {offsets = [0, 0], sizes = [1, 32], strides = [1, 1]} : vector<8x32xf32> to vector<1x32xf32>
    %918 = vector.broadcast %917 : vector<1x32xf32> to vector<8x32xf32>
    %919 = arith.mulf %916, %918 : vector<8x32xf32>
    %920 = arith.addf %907, %919 : vector<8x32xf32>
    %921 = arith.addf %908, %916 : vector<8x32xf32>
    %922 = vector.extract_strided_slice %905 {offsets = [1, 0], sizes = [1, 32], strides = [1, 1]} : vector<8x32xf32> to vector<1x32xf32>
    %923 = vector.broadcast %922 : vector<1x32xf32> to vector<8x32xf32>
    %924 = arith.addf %773, %923 : vector<8x32xf32>
    %925 = arith.negf %924 : vector<8x32xf32>
    %926 = math.exp %925 : vector<8x32xf32>
    %cst_167 = arith.constant 1.000000e+00 : f32
    %927 = vector.broadcast %cst_167 : f32 to vector<8x32xf32>
    %928 = arith.addf %927, %926 : vector<8x32xf32>
    %929 = arith.divf %927, %928 : vector<8x32xf32>
    %930 = vector.extract_strided_slice %906 {offsets = [1, 0], sizes = [1, 32], strides = [1, 1]} : vector<8x32xf32> to vector<1x32xf32>
    %931 = vector.broadcast %930 : vector<1x32xf32> to vector<8x32xf32>
    %932 = arith.mulf %929, %931 : vector<8x32xf32>
    %933 = arith.addf %920, %932 : vector<8x32xf32>
    %934 = arith.addf %921, %929 : vector<8x32xf32>
    %935 = vector.extract_strided_slice %905 {offsets = [2, 0], sizes = [1, 32], strides = [1, 1]} : vector<8x32xf32> to vector<1x32xf32>
    %936 = vector.broadcast %935 : vector<1x32xf32> to vector<8x32xf32>
    %937 = arith.addf %773, %936 : vector<8x32xf32>
    %938 = arith.negf %937 : vector<8x32xf32>
    %939 = math.exp %938 : vector<8x32xf32>
    %cst_168 = arith.constant 1.000000e+00 : f32
    %940 = vector.broadcast %cst_168 : f32 to vector<8x32xf32>
    %941 = arith.addf %940, %939 : vector<8x32xf32>
    %942 = arith.divf %940, %941 : vector<8x32xf32>
    %943 = vector.extract_strided_slice %906 {offsets = [2, 0], sizes = [1, 32], strides = [1, 1]} : vector<8x32xf32> to vector<1x32xf32>
    %944 = vector.broadcast %943 : vector<1x32xf32> to vector<8x32xf32>
    %945 = arith.mulf %942, %944 : vector<8x32xf32>
    %946 = arith.addf %933, %945 : vector<8x32xf32>
    %947 = arith.addf %934, %942 : vector<8x32xf32>
    %948 = vector.extract_strided_slice %905 {offsets = [3, 0], sizes = [1, 32], strides = [1, 1]} : vector<8x32xf32> to vector<1x32xf32>
    %949 = vector.broadcast %948 : vector<1x32xf32> to vector<8x32xf32>
    %950 = arith.addf %773, %949 : vector<8x32xf32>
    %951 = arith.negf %950 : vector<8x32xf32>
    %952 = math.exp %951 : vector<8x32xf32>
    %cst_169 = arith.constant 1.000000e+00 : f32
    %953 = vector.broadcast %cst_169 : f32 to vector<8x32xf32>
    %954 = arith.addf %953, %952 : vector<8x32xf32>
    %955 = arith.divf %953, %954 : vector<8x32xf32>
    %956 = vector.extract_strided_slice %906 {offsets = [3, 0], sizes = [1, 32], strides = [1, 1]} : vector<8x32xf32> to vector<1x32xf32>
    %957 = vector.broadcast %956 : vector<1x32xf32> to vector<8x32xf32>
    %958 = arith.mulf %955, %957 : vector<8x32xf32>
    %959 = arith.addf %946, %958 : vector<8x32xf32>
    %960 = arith.addf %947, %955 : vector<8x32xf32>
    %961 = vector.extract_strided_slice %905 {offsets = [4, 0], sizes = [1, 32], strides = [1, 1]} : vector<8x32xf32> to vector<1x32xf32>
    %962 = vector.broadcast %961 : vector<1x32xf32> to vector<8x32xf32>
    %963 = arith.addf %773, %962 : vector<8x32xf32>
    %964 = arith.negf %963 : vector<8x32xf32>
    %965 = math.exp %964 : vector<8x32xf32>
    %cst_170 = arith.constant 1.000000e+00 : f32
    %966 = vector.broadcast %cst_170 : f32 to vector<8x32xf32>
    %967 = arith.addf %966, %965 : vector<8x32xf32>
    %968 = arith.divf %966, %967 : vector<8x32xf32>
    %969 = vector.extract_strided_slice %906 {offsets = [4, 0], sizes = [1, 32], strides = [1, 1]} : vector<8x32xf32> to vector<1x32xf32>
    %970 = vector.broadcast %969 : vector<1x32xf32> to vector<8x32xf32>
    %971 = arith.mulf %968, %970 : vector<8x32xf32>
    %972 = arith.addf %959, %971 : vector<8x32xf32>
    %973 = arith.addf %960, %968 : vector<8x32xf32>
    %974 = vector.extract_strided_slice %905 {offsets = [5, 0], sizes = [1, 32], strides = [1, 1]} : vector<8x32xf32> to vector<1x32xf32>
    %975 = vector.broadcast %974 : vector<1x32xf32> to vector<8x32xf32>
    %976 = arith.addf %773, %975 : vector<8x32xf32>
    %977 = arith.negf %976 : vector<8x32xf32>
    %978 = math.exp %977 : vector<8x32xf32>
    %cst_171 = arith.constant 1.000000e+00 : f32
    %979 = vector.broadcast %cst_171 : f32 to vector<8x32xf32>
    %980 = arith.addf %979, %978 : vector<8x32xf32>
    %981 = arith.divf %979, %980 : vector<8x32xf32>
    %982 = vector.extract_strided_slice %906 {offsets = [5, 0], sizes = [1, 32], strides = [1, 1]} : vector<8x32xf32> to vector<1x32xf32>
    %983 = vector.broadcast %982 : vector<1x32xf32> to vector<8x32xf32>
    %984 = arith.mulf %981, %983 : vector<8x32xf32>
    %985 = arith.addf %972, %984 : vector<8x32xf32>
    %986 = arith.addf %973, %981 : vector<8x32xf32>
    %987 = vector.extract_strided_slice %905 {offsets = [6, 0], sizes = [1, 32], strides = [1, 1]} : vector<8x32xf32> to vector<1x32xf32>
    %988 = vector.broadcast %987 : vector<1x32xf32> to vector<8x32xf32>
    %989 = arith.addf %773, %988 : vector<8x32xf32>
    %990 = arith.negf %989 : vector<8x32xf32>
    %991 = math.exp %990 : vector<8x32xf32>
    %cst_172 = arith.constant 1.000000e+00 : f32
    %992 = vector.broadcast %cst_172 : f32 to vector<8x32xf32>
    %993 = arith.addf %992, %991 : vector<8x32xf32>
    %994 = arith.divf %992, %993 : vector<8x32xf32>
    %995 = vector.extract_strided_slice %906 {offsets = [6, 0], sizes = [1, 32], strides = [1, 1]} : vector<8x32xf32> to vector<1x32xf32>
    %996 = vector.broadcast %995 : vector<1x32xf32> to vector<8x32xf32>
    %997 = arith.mulf %994, %996 : vector<8x32xf32>
    %998 = arith.addf %985, %997 : vector<8x32xf32>
    %999 = arith.addf %986, %994 : vector<8x32xf32>
    %1000 = vector.extract_strided_slice %905 {offsets = [7, 0], sizes = [1, 32], strides = [1, 1]} : vector<8x32xf32> to vector<1x32xf32>
    %1001 = vector.broadcast %1000 : vector<1x32xf32> to vector<8x32xf32>
    %1002 = arith.addf %773, %1001 : vector<8x32xf32>
    %1003 = arith.negf %1002 : vector<8x32xf32>
    %1004 = math.exp %1003 : vector<8x32xf32>
    %cst_173 = arith.constant 1.000000e+00 : f32
    %1005 = vector.broadcast %cst_173 : f32 to vector<8x32xf32>
    %1006 = arith.addf %1005, %1004 : vector<8x32xf32>
    %1007 = arith.divf %1005, %1006 : vector<8x32xf32>
    %1008 = vector.extract_strided_slice %906 {offsets = [7, 0], sizes = [1, 32], strides = [1, 1]} : vector<8x32xf32> to vector<1x32xf32>
    %1009 = vector.broadcast %1008 : vector<1x32xf32> to vector<8x32xf32>
    %1010 = arith.mulf %1007, %1009 : vector<8x32xf32>
    %1011 = arith.addf %998, %1010 : vector<8x32xf32>
    %1012 = arith.addf %999, %1007 : vector<8x32xf32>
    %cst_174 = arith.constant 9.99999997E-7 : f32
    %1013 = vector.broadcast %cst_174 : f32 to vector<8x32xf32>
    %1014 = arith.addf %1012, %1013 : vector<8x32xf32>
    %1015 = arith.divf %1011, %1014 : vector<8x32xf32>
    %c7_175 = arith.constant 7 : index
    %1016 = memref.load %arg9[%c7_175] : memref<12xf32, #tpu.memory_space<smem>>
    %1017 = vector.broadcast %1016 : f32 to vector<8x32xf32>
    %1018 = arith.mulf %1017, %1015 : vector<8x32xf32>
    %1019 = arith.addf %897, %1018 : vector<8x32xf32>
    %c8 = arith.constant 8 : index
    %c0_176 = arith.constant 0 : index
    %c0_177 = arith.constant 0 : index
    %1020 = vector.load %arg5[%c8, %c0_176, %c0_177] : memref<12x32x64xf32, #tpu.memory_space<vmem>>, vector<1x32x64xf32>
    %1021 = vector.shape_cast %1020 : vector<1x32x64xf32> to vector<32x64xf32>
    %cst_178 = arith.constant dense<0.000000e+00> : vector<8x64xf32>
    %1022 = tpu.matmul %5, %1021, %cst_178 {dimension_numbers = #tpu.dot_dimension_numbers<[1], [0], [0], [1], [0, 0, 1, 1], [], []>} : vector<8x32xf32>, vector<32x64xf32>, vector<8x64xf32> -> vector<8x64xf32>
    %c8_179 = arith.constant 8 : index
    %c0_180 = arith.constant 0 : index
    %c0_181 = arith.constant 0 : index
    %1023 = vector.load %arg6[%c8_179, %c0_180, %c0_181] : memref<12x1x64xf32, #tpu.memory_space<vmem>>, vector<1x1x64xf32>
    %1024 = vector.shape_cast %1023 : vector<1x1x64xf32> to vector<1x64xf32>
    %1025 = vector.broadcast %1024 : vector<1x64xf32> to vector<8x64xf32>
    %1026 = arith.addf %1022, %1025 : vector<8x64xf32>
    %1027 = vector.extract_strided_slice %1026 {offsets = [0, 0], sizes = [8, 32], strides = [1, 1]} : vector<8x64xf32> to vector<8x32xf32>
    %1028 = vector.extract_strided_slice %1026 {offsets = [0, 32], sizes = [8, 32], strides = [1, 1]} : vector<8x64xf32> to vector<8x32xf32>
    %cst_182 = arith.constant 0.000000e+00 : f32
    %1029 = vector.broadcast %cst_182 : f32 to vector<8x32xf32>
    %cst_183 = arith.constant 0.000000e+00 : f32
    %1030 = vector.broadcast %cst_183 : f32 to vector<8x32xf32>
    %1031 = vector.extract_strided_slice %1027 {offsets = [0, 0], sizes = [1, 32], strides = [1, 1]} : vector<8x32xf32> to vector<1x32xf32>
    %1032 = vector.broadcast %1031 : vector<1x32xf32> to vector<8x32xf32>
    %1033 = arith.addf %773, %1032 : vector<8x32xf32>
    %1034 = arith.negf %1033 : vector<8x32xf32>
    %1035 = math.exp %1034 : vector<8x32xf32>
    %cst_184 = arith.constant 1.000000e+00 : f32
    %1036 = vector.broadcast %cst_184 : f32 to vector<8x32xf32>
    %1037 = arith.addf %1036, %1035 : vector<8x32xf32>
    %1038 = arith.divf %1036, %1037 : vector<8x32xf32>
    %1039 = vector.extract_strided_slice %1028 {offsets = [0, 0], sizes = [1, 32], strides = [1, 1]} : vector<8x32xf32> to vector<1x32xf32>
    %1040 = vector.broadcast %1039 : vector<1x32xf32> to vector<8x32xf32>
    %1041 = arith.mulf %1038, %1040 : vector<8x32xf32>
    %1042 = arith.addf %1029, %1041 : vector<8x32xf32>
    %1043 = arith.addf %1030, %1038 : vector<8x32xf32>
    %1044 = vector.extract_strided_slice %1027 {offsets = [1, 0], sizes = [1, 32], strides = [1, 1]} : vector<8x32xf32> to vector<1x32xf32>
    %1045 = vector.broadcast %1044 : vector<1x32xf32> to vector<8x32xf32>
    %1046 = arith.addf %773, %1045 : vector<8x32xf32>
    %1047 = arith.negf %1046 : vector<8x32xf32>
    %1048 = math.exp %1047 : vector<8x32xf32>
    %cst_185 = arith.constant 1.000000e+00 : f32
    %1049 = vector.broadcast %cst_185 : f32 to vector<8x32xf32>
    %1050 = arith.addf %1049, %1048 : vector<8x32xf32>
    %1051 = arith.divf %1049, %1050 : vector<8x32xf32>
    %1052 = vector.extract_strided_slice %1028 {offsets = [1, 0], sizes = [1, 32], strides = [1, 1]} : vector<8x32xf32> to vector<1x32xf32>
    %1053 = vector.broadcast %1052 : vector<1x32xf32> to vector<8x32xf32>
    %1054 = arith.mulf %1051, %1053 : vector<8x32xf32>
    %1055 = arith.addf %1042, %1054 : vector<8x32xf32>
    %1056 = arith.addf %1043, %1051 : vector<8x32xf32>
    %1057 = vector.extract_strided_slice %1027 {offsets = [2, 0], sizes = [1, 32], strides = [1, 1]} : vector<8x32xf32> to vector<1x32xf32>
    %1058 = vector.broadcast %1057 : vector<1x32xf32> to vector<8x32xf32>
    %1059 = arith.addf %773, %1058 : vector<8x32xf32>
    %1060 = arith.negf %1059 : vector<8x32xf32>
    %1061 = math.exp %1060 : vector<8x32xf32>
    %cst_186 = arith.constant 1.000000e+00 : f32
    %1062 = vector.broadcast %cst_186 : f32 to vector<8x32xf32>
    %1063 = arith.addf %1062, %1061 : vector<8x32xf32>
    %1064 = arith.divf %1062, %1063 : vector<8x32xf32>
    %1065 = vector.extract_strided_slice %1028 {offsets = [2, 0], sizes = [1, 32], strides = [1, 1]} : vector<8x32xf32> to vector<1x32xf32>
    %1066 = vector.broadcast %1065 : vector<1x32xf32> to vector<8x32xf32>
    %1067 = arith.mulf %1064, %1066 : vector<8x32xf32>
    %1068 = arith.addf %1055, %1067 : vector<8x32xf32>
    %1069 = arith.addf %1056, %1064 : vector<8x32xf32>
    %1070 = vector.extract_strided_slice %1027 {offsets = [3, 0], sizes = [1, 32], strides = [1, 1]} : vector<8x32xf32> to vector<1x32xf32>
    %1071 = vector.broadcast %1070 : vector<1x32xf32> to vector<8x32xf32>
    %1072 = arith.addf %773, %1071 : vector<8x32xf32>
    %1073 = arith.negf %1072 : vector<8x32xf32>
    %1074 = math.exp %1073 : vector<8x32xf32>
    %cst_187 = arith.constant 1.000000e+00 : f32
    %1075 = vector.broadcast %cst_187 : f32 to vector<8x32xf32>
    %1076 = arith.addf %1075, %1074 : vector<8x32xf32>
    %1077 = arith.divf %1075, %1076 : vector<8x32xf32>
    %1078 = vector.extract_strided_slice %1028 {offsets = [3, 0], sizes = [1, 32], strides = [1, 1]} : vector<8x32xf32> to vector<1x32xf32>
    %1079 = vector.broadcast %1078 : vector<1x32xf32> to vector<8x32xf32>
    %1080 = arith.mulf %1077, %1079 : vector<8x32xf32>
    %1081 = arith.addf %1068, %1080 : vector<8x32xf32>
    %1082 = arith.addf %1069, %1077 : vector<8x32xf32>
    %1083 = vector.extract_strided_slice %1027 {offsets = [4, 0], sizes = [1, 32], strides = [1, 1]} : vector<8x32xf32> to vector<1x32xf32>
    %1084 = vector.broadcast %1083 : vector<1x32xf32> to vector<8x32xf32>
    %1085 = arith.addf %773, %1084 : vector<8x32xf32>
    %1086 = arith.negf %1085 : vector<8x32xf32>
    %1087 = math.exp %1086 : vector<8x32xf32>
    %cst_188 = arith.constant 1.000000e+00 : f32
    %1088 = vector.broadcast %cst_188 : f32 to vector<8x32xf32>
    %1089 = arith.addf %1088, %1087 : vector<8x32xf32>
    %1090 = arith.divf %1088, %1089 : vector<8x32xf32>
    %1091 = vector.extract_strided_slice %1028 {offsets = [4, 0], sizes = [1, 32], strides = [1, 1]} : vector<8x32xf32> to vector<1x32xf32>
    %1092 = vector.broadcast %1091 : vector<1x32xf32> to vector<8x32xf32>
    %1093 = arith.mulf %1090, %1092 : vector<8x32xf32>
    %1094 = arith.addf %1081, %1093 : vector<8x32xf32>
    %1095 = arith.addf %1082, %1090 : vector<8x32xf32>
    %1096 = vector.extract_strided_slice %1027 {offsets = [5, 0], sizes = [1, 32], strides = [1, 1]} : vector<8x32xf32> to vector<1x32xf32>
    %1097 = vector.broadcast %1096 : vector<1x32xf32> to vector<8x32xf32>
    %1098 = arith.addf %773, %1097 : vector<8x32xf32>
    %1099 = arith.negf %1098 : vector<8x32xf32>
    %1100 = math.exp %1099 : vector<8x32xf32>
    %cst_189 = arith.constant 1.000000e+00 : f32
    %1101 = vector.broadcast %cst_189 : f32 to vector<8x32xf32>
    %1102 = arith.addf %1101, %1100 : vector<8x32xf32>
    %1103 = arith.divf %1101, %1102 : vector<8x32xf32>
    %1104 = vector.extract_strided_slice %1028 {offsets = [5, 0], sizes = [1, 32], strides = [1, 1]} : vector<8x32xf32> to vector<1x32xf32>
    %1105 = vector.broadcast %1104 : vector<1x32xf32> to vector<8x32xf32>
    %1106 = arith.mulf %1103, %1105 : vector<8x32xf32>
    %1107 = arith.addf %1094, %1106 : vector<8x32xf32>
    %1108 = arith.addf %1095, %1103 : vector<8x32xf32>
    %1109 = vector.extract_strided_slice %1027 {offsets = [6, 0], sizes = [1, 32], strides = [1, 1]} : vector<8x32xf32> to vector<1x32xf32>
    %1110 = vector.broadcast %1109 : vector<1x32xf32> to vector<8x32xf32>
    %1111 = arith.addf %773, %1110 : vector<8x32xf32>
    %1112 = arith.negf %1111 : vector<8x32xf32>
    %1113 = math.exp %1112 : vector<8x32xf32>
    %cst_190 = arith.constant 1.000000e+00 : f32
    %1114 = vector.broadcast %cst_190 : f32 to vector<8x32xf32>
    %1115 = arith.addf %1114, %1113 : vector<8x32xf32>
    %1116 = arith.divf %1114, %1115 : vector<8x32xf32>
    %1117 = vector.extract_strided_slice %1028 {offsets = [6, 0], sizes = [1, 32], strides = [1, 1]} : vector<8x32xf32> to vector<1x32xf32>
    %1118 = vector.broadcast %1117 : vector<1x32xf32> to vector<8x32xf32>
    %1119 = arith.mulf %1116, %1118 : vector<8x32xf32>
    %1120 = arith.addf %1107, %1119 : vector<8x32xf32>
    %1121 = arith.addf %1108, %1116 : vector<8x32xf32>
    %1122 = vector.extract_strided_slice %1027 {offsets = [7, 0], sizes = [1, 32], strides = [1, 1]} : vector<8x32xf32> to vector<1x32xf32>
    %1123 = vector.broadcast %1122 : vector<1x32xf32> to vector<8x32xf32>
    %1124 = arith.addf %773, %1123 : vector<8x32xf32>
    %1125 = arith.negf %1124 : vector<8x32xf32>
    %1126 = math.exp %1125 : vector<8x32xf32>
    %cst_191 = arith.constant 1.000000e+00 : f32
    %1127 = vector.broadcast %cst_191 : f32 to vector<8x32xf32>
    %1128 = arith.addf %1127, %1126 : vector<8x32xf32>
    %1129 = arith.divf %1127, %1128 : vector<8x32xf32>
    %1130 = vector.extract_strided_slice %1028 {offsets = [7, 0], sizes = [1, 32], strides = [1, 1]} : vector<8x32xf32> to vector<1x32xf32>
    %1131 = vector.broadcast %1130 : vector<1x32xf32> to vector<8x32xf32>
    %1132 = arith.mulf %1129, %1131 : vector<8x32xf32>
    %1133 = arith.addf %1120, %1132 : vector<8x32xf32>
    %1134 = arith.addf %1121, %1129 : vector<8x32xf32>
    %cst_192 = arith.constant 9.99999997E-7 : f32
    %1135 = vector.broadcast %cst_192 : f32 to vector<8x32xf32>
    %1136 = arith.addf %1134, %1135 : vector<8x32xf32>
    %1137 = arith.divf %1133, %1136 : vector<8x32xf32>
    %c8_193 = arith.constant 8 : index
    %1138 = memref.load %arg9[%c8_193] : memref<12xf32, #tpu.memory_space<smem>>
    %1139 = vector.broadcast %1138 : f32 to vector<8x32xf32>
    %1140 = arith.mulf %1139, %1137 : vector<8x32xf32>
    %1141 = arith.addf %1019, %1140 : vector<8x32xf32>
    %1142 = arith.addf %774, %1141 : vector<8x32xf32>
    %cst_194 = arith.constant 0.000000e+00 : f32
    %1143 = vector.broadcast %cst_194 : f32 to vector<8x32xf32>
    %1144 = arith.maximumf %1142, %1143 : vector<8x32xf32>
    %1145 = arith.addf %765, %1144 : vector<8x32xf32>
    %c3_195 = arith.constant 3 : index
    %c0_196 = arith.constant 0 : index
    %c0_197 = arith.constant 0 : index
    %1146 = vector.load %arg3[%c3_195, %c0_196, %c0_197] : memref<4x32x64xf32, #tpu.memory_space<vmem>>, vector<1x32x64xf32>
    %1147 = vector.shape_cast %1146 : vector<1x32x64xf32> to vector<32x64xf32>
    %cst_198 = arith.constant dense<0.000000e+00> : vector<8x64xf32>
    %1148 = tpu.matmul %1145, %1147, %cst_198 {dimension_numbers = #tpu.dot_dimension_numbers<[1], [0], [0], [1], [0, 0, 1, 1], [], []>} : vector<8x32xf32>, vector<32x64xf32>, vector<8x64xf32> -> vector<8x64xf32>
    %c3_199 = arith.constant 3 : index
    %c0_200 = arith.constant 0 : index
    %c0_201 = arith.constant 0 : index
    %1149 = vector.load %arg4[%c3_199, %c0_200, %c0_201] : memref<4x1x64xf32, #tpu.memory_space<vmem>>, vector<1x1x64xf32>
    %1150 = vector.shape_cast %1149 : vector<1x1x64xf32> to vector<1x64xf32>
    %1151 = vector.broadcast %1150 : vector<1x64xf32> to vector<8x64xf32>
    %1152 = arith.addf %1148, %1151 : vector<8x64xf32>
    %1153 = vector.extract_strided_slice %1152 {offsets = [0, 0], sizes = [8, 32], strides = [1, 1]} : vector<8x64xf32> to vector<8x32xf32>
    %1154 = vector.extract_strided_slice %1152 {offsets = [0, 32], sizes = [8, 32], strides = [1, 1]} : vector<8x64xf32> to vector<8x32xf32>
    %cst_202 = arith.constant 0.000000e+00 : f32
    %1155 = vector.broadcast %cst_202 : f32 to vector<8x32xf32>
    %c9 = arith.constant 9 : index
    %c0_203 = arith.constant 0 : index
    %c0_204 = arith.constant 0 : index
    %1156 = vector.load %arg5[%c9, %c0_203, %c0_204] : memref<12x32x64xf32, #tpu.memory_space<vmem>>, vector<1x32x64xf32>
    %1157 = vector.shape_cast %1156 : vector<1x32x64xf32> to vector<32x64xf32>
    %cst_205 = arith.constant dense<0.000000e+00> : vector<8x64xf32>
    %1158 = tpu.matmul %1145, %1157, %cst_205 {dimension_numbers = #tpu.dot_dimension_numbers<[1], [0], [0], [1], [0, 0, 1, 1], [], []>} : vector<8x32xf32>, vector<32x64xf32>, vector<8x64xf32> -> vector<8x64xf32>
    %c9_206 = arith.constant 9 : index
    %c0_207 = arith.constant 0 : index
    %c0_208 = arith.constant 0 : index
    %1159 = vector.load %arg6[%c9_206, %c0_207, %c0_208] : memref<12x1x64xf32, #tpu.memory_space<vmem>>, vector<1x1x64xf32>
    %1160 = vector.shape_cast %1159 : vector<1x1x64xf32> to vector<1x64xf32>
    %1161 = vector.broadcast %1160 : vector<1x64xf32> to vector<8x64xf32>
    %1162 = arith.addf %1158, %1161 : vector<8x64xf32>
    %1163 = vector.extract_strided_slice %1162 {offsets = [0, 0], sizes = [8, 32], strides = [1, 1]} : vector<8x64xf32> to vector<8x32xf32>
    %1164 = vector.extract_strided_slice %1162 {offsets = [0, 32], sizes = [8, 32], strides = [1, 1]} : vector<8x64xf32> to vector<8x32xf32>
    %cst_209 = arith.constant 0.000000e+00 : f32
    %1165 = vector.broadcast %cst_209 : f32 to vector<8x32xf32>
    %cst_210 = arith.constant 0.000000e+00 : f32
    %1166 = vector.broadcast %cst_210 : f32 to vector<8x32xf32>
    %1167 = vector.extract_strided_slice %1163 {offsets = [0, 0], sizes = [1, 32], strides = [1, 1]} : vector<8x32xf32> to vector<1x32xf32>
    %1168 = vector.broadcast %1167 : vector<1x32xf32> to vector<8x32xf32>
    %1169 = arith.addf %1153, %1168 : vector<8x32xf32>
    %1170 = arith.negf %1169 : vector<8x32xf32>
    %1171 = math.exp %1170 : vector<8x32xf32>
    %cst_211 = arith.constant 1.000000e+00 : f32
    %1172 = vector.broadcast %cst_211 : f32 to vector<8x32xf32>
    %1173 = arith.addf %1172, %1171 : vector<8x32xf32>
    %1174 = arith.divf %1172, %1173 : vector<8x32xf32>
    %1175 = vector.extract_strided_slice %1164 {offsets = [0, 0], sizes = [1, 32], strides = [1, 1]} : vector<8x32xf32> to vector<1x32xf32>
    %1176 = vector.broadcast %1175 : vector<1x32xf32> to vector<8x32xf32>
    %1177 = arith.mulf %1174, %1176 : vector<8x32xf32>
    %1178 = arith.addf %1165, %1177 : vector<8x32xf32>
    %1179 = arith.addf %1166, %1174 : vector<8x32xf32>
    %1180 = vector.extract_strided_slice %1163 {offsets = [1, 0], sizes = [1, 32], strides = [1, 1]} : vector<8x32xf32> to vector<1x32xf32>
    %1181 = vector.broadcast %1180 : vector<1x32xf32> to vector<8x32xf32>
    %1182 = arith.addf %1153, %1181 : vector<8x32xf32>
    %1183 = arith.negf %1182 : vector<8x32xf32>
    %1184 = math.exp %1183 : vector<8x32xf32>
    %cst_212 = arith.constant 1.000000e+00 : f32
    %1185 = vector.broadcast %cst_212 : f32 to vector<8x32xf32>
    %1186 = arith.addf %1185, %1184 : vector<8x32xf32>
    %1187 = arith.divf %1185, %1186 : vector<8x32xf32>
    %1188 = vector.extract_strided_slice %1164 {offsets = [1, 0], sizes = [1, 32], strides = [1, 1]} : vector<8x32xf32> to vector<1x32xf32>
    %1189 = vector.broadcast %1188 : vector<1x32xf32> to vector<8x32xf32>
    %1190 = arith.mulf %1187, %1189 : vector<8x32xf32>
    %1191 = arith.addf %1178, %1190 : vector<8x32xf32>
    %1192 = arith.addf %1179, %1187 : vector<8x32xf32>
    %1193 = vector.extract_strided_slice %1163 {offsets = [2, 0], sizes = [1, 32], strides = [1, 1]} : vector<8x32xf32> to vector<1x32xf32>
    %1194 = vector.broadcast %1193 : vector<1x32xf32> to vector<8x32xf32>
    %1195 = arith.addf %1153, %1194 : vector<8x32xf32>
    %1196 = arith.negf %1195 : vector<8x32xf32>
    %1197 = math.exp %1196 : vector<8x32xf32>
    %cst_213 = arith.constant 1.000000e+00 : f32
    %1198 = vector.broadcast %cst_213 : f32 to vector<8x32xf32>
    %1199 = arith.addf %1198, %1197 : vector<8x32xf32>
    %1200 = arith.divf %1198, %1199 : vector<8x32xf32>
    %1201 = vector.extract_strided_slice %1164 {offsets = [2, 0], sizes = [1, 32], strides = [1, 1]} : vector<8x32xf32> to vector<1x32xf32>
    %1202 = vector.broadcast %1201 : vector<1x32xf32> to vector<8x32xf32>
    %1203 = arith.mulf %1200, %1202 : vector<8x32xf32>
    %1204 = arith.addf %1191, %1203 : vector<8x32xf32>
    %1205 = arith.addf %1192, %1200 : vector<8x32xf32>
    %1206 = vector.extract_strided_slice %1163 {offsets = [3, 0], sizes = [1, 32], strides = [1, 1]} : vector<8x32xf32> to vector<1x32xf32>
    %1207 = vector.broadcast %1206 : vector<1x32xf32> to vector<8x32xf32>
    %1208 = arith.addf %1153, %1207 : vector<8x32xf32>
    %1209 = arith.negf %1208 : vector<8x32xf32>
    %1210 = math.exp %1209 : vector<8x32xf32>
    %cst_214 = arith.constant 1.000000e+00 : f32
    %1211 = vector.broadcast %cst_214 : f32 to vector<8x32xf32>
    %1212 = arith.addf %1211, %1210 : vector<8x32xf32>
    %1213 = arith.divf %1211, %1212 : vector<8x32xf32>
    %1214 = vector.extract_strided_slice %1164 {offsets = [3, 0], sizes = [1, 32], strides = [1, 1]} : vector<8x32xf32> to vector<1x32xf32>
    %1215 = vector.broadcast %1214 : vector<1x32xf32> to vector<8x32xf32>
    %1216 = arith.mulf %1213, %1215 : vector<8x32xf32>
    %1217 = arith.addf %1204, %1216 : vector<8x32xf32>
    %1218 = arith.addf %1205, %1213 : vector<8x32xf32>
    %1219 = vector.extract_strided_slice %1163 {offsets = [4, 0], sizes = [1, 32], strides = [1, 1]} : vector<8x32xf32> to vector<1x32xf32>
    %1220 = vector.broadcast %1219 : vector<1x32xf32> to vector<8x32xf32>
    %1221 = arith.addf %1153, %1220 : vector<8x32xf32>
    %1222 = arith.negf %1221 : vector<8x32xf32>
    %1223 = math.exp %1222 : vector<8x32xf32>
    %cst_215 = arith.constant 1.000000e+00 : f32
    %1224 = vector.broadcast %cst_215 : f32 to vector<8x32xf32>
    %1225 = arith.addf %1224, %1223 : vector<8x32xf32>
    %1226 = arith.divf %1224, %1225 : vector<8x32xf32>
    %1227 = vector.extract_strided_slice %1164 {offsets = [4, 0], sizes = [1, 32], strides = [1, 1]} : vector<8x32xf32> to vector<1x32xf32>
    %1228 = vector.broadcast %1227 : vector<1x32xf32> to vector<8x32xf32>
    %1229 = arith.mulf %1226, %1228 : vector<8x32xf32>
    %1230 = arith.addf %1217, %1229 : vector<8x32xf32>
    %1231 = arith.addf %1218, %1226 : vector<8x32xf32>
    %1232 = vector.extract_strided_slice %1163 {offsets = [5, 0], sizes = [1, 32], strides = [1, 1]} : vector<8x32xf32> to vector<1x32xf32>
    %1233 = vector.broadcast %1232 : vector<1x32xf32> to vector<8x32xf32>
    %1234 = arith.addf %1153, %1233 : vector<8x32xf32>
    %1235 = arith.negf %1234 : vector<8x32xf32>
    %1236 = math.exp %1235 : vector<8x32xf32>
    %cst_216 = arith.constant 1.000000e+00 : f32
    %1237 = vector.broadcast %cst_216 : f32 to vector<8x32xf32>
    %1238 = arith.addf %1237, %1236 : vector<8x32xf32>
    %1239 = arith.divf %1237, %1238 : vector<8x32xf32>
    %1240 = vector.extract_strided_slice %1164 {offsets = [5, 0], sizes = [1, 32], strides = [1, 1]} : vector<8x32xf32> to vector<1x32xf32>
    %1241 = vector.broadcast %1240 : vector<1x32xf32> to vector<8x32xf32>
    %1242 = arith.mulf %1239, %1241 : vector<8x32xf32>
    %1243 = arith.addf %1230, %1242 : vector<8x32xf32>
    %1244 = arith.addf %1231, %1239 : vector<8x32xf32>
    %1245 = vector.extract_strided_slice %1163 {offsets = [6, 0], sizes = [1, 32], strides = [1, 1]} : vector<8x32xf32> to vector<1x32xf32>
    %1246 = vector.broadcast %1245 : vector<1x32xf32> to vector<8x32xf32>
    %1247 = arith.addf %1153, %1246 : vector<8x32xf32>
    %1248 = arith.negf %1247 : vector<8x32xf32>
    %1249 = math.exp %1248 : vector<8x32xf32>
    %cst_217 = arith.constant 1.000000e+00 : f32
    %1250 = vector.broadcast %cst_217 : f32 to vector<8x32xf32>
    %1251 = arith.addf %1250, %1249 : vector<8x32xf32>
    %1252 = arith.divf %1250, %1251 : vector<8x32xf32>
    %1253 = vector.extract_strided_slice %1164 {offsets = [6, 0], sizes = [1, 32], strides = [1, 1]} : vector<8x32xf32> to vector<1x32xf32>
    %1254 = vector.broadcast %1253 : vector<1x32xf32> to vector<8x32xf32>
    %1255 = arith.mulf %1252, %1254 : vector<8x32xf32>
    %1256 = arith.addf %1243, %1255 : vector<8x32xf32>
    %1257 = arith.addf %1244, %1252 : vector<8x32xf32>
    %1258 = vector.extract_strided_slice %1163 {offsets = [7, 0], sizes = [1, 32], strides = [1, 1]} : vector<8x32xf32> to vector<1x32xf32>
    %1259 = vector.broadcast %1258 : vector<1x32xf32> to vector<8x32xf32>
    %1260 = arith.addf %1153, %1259 : vector<8x32xf32>
    %1261 = arith.negf %1260 : vector<8x32xf32>
    %1262 = math.exp %1261 : vector<8x32xf32>
    %cst_218 = arith.constant 1.000000e+00 : f32
    %1263 = vector.broadcast %cst_218 : f32 to vector<8x32xf32>
    %1264 = arith.addf %1263, %1262 : vector<8x32xf32>
    %1265 = arith.divf %1263, %1264 : vector<8x32xf32>
    %1266 = vector.extract_strided_slice %1164 {offsets = [7, 0], sizes = [1, 32], strides = [1, 1]} : vector<8x32xf32> to vector<1x32xf32>
    %1267 = vector.broadcast %1266 : vector<1x32xf32> to vector<8x32xf32>
    %1268 = arith.mulf %1265, %1267 : vector<8x32xf32>
    %1269 = arith.addf %1256, %1268 : vector<8x32xf32>
    %1270 = arith.addf %1257, %1265 : vector<8x32xf32>
    %cst_219 = arith.constant 9.99999997E-7 : f32
    %1271 = vector.broadcast %cst_219 : f32 to vector<8x32xf32>
    %1272 = arith.addf %1270, %1271 : vector<8x32xf32>
    %1273 = arith.divf %1269, %1272 : vector<8x32xf32>
    %c9_220 = arith.constant 9 : index
    %1274 = memref.load %arg9[%c9_220] : memref<12xf32, #tpu.memory_space<smem>>
    %1275 = vector.broadcast %1274 : f32 to vector<8x32xf32>
    %1276 = arith.mulf %1275, %1273 : vector<8x32xf32>
    %1277 = arith.addf %1155, %1276 : vector<8x32xf32>
    %c10 = arith.constant 10 : index
    %c0_221 = arith.constant 0 : index
    %c0_222 = arith.constant 0 : index
    %1278 = vector.load %arg5[%c10, %c0_221, %c0_222] : memref<12x32x64xf32, #tpu.memory_space<vmem>>, vector<1x32x64xf32>
    %1279 = vector.shape_cast %1278 : vector<1x32x64xf32> to vector<32x64xf32>
    %cst_223 = arith.constant dense<0.000000e+00> : vector<8x64xf32>
    %1280 = tpu.matmul %765, %1279, %cst_223 {dimension_numbers = #tpu.dot_dimension_numbers<[1], [0], [0], [1], [0, 0, 1, 1], [], []>} : vector<8x32xf32>, vector<32x64xf32>, vector<8x64xf32> -> vector<8x64xf32>
    %c10_224 = arith.constant 10 : index
    %c0_225 = arith.constant 0 : index
    %c0_226 = arith.constant 0 : index
    %1281 = vector.load %arg6[%c10_224, %c0_225, %c0_226] : memref<12x1x64xf32, #tpu.memory_space<vmem>>, vector<1x1x64xf32>
    %1282 = vector.shape_cast %1281 : vector<1x1x64xf32> to vector<1x64xf32>
    %1283 = vector.broadcast %1282 : vector<1x64xf32> to vector<8x64xf32>
    %1284 = arith.addf %1280, %1283 : vector<8x64xf32>
    %1285 = vector.extract_strided_slice %1284 {offsets = [0, 0], sizes = [8, 32], strides = [1, 1]} : vector<8x64xf32> to vector<8x32xf32>
    %1286 = vector.extract_strided_slice %1284 {offsets = [0, 32], sizes = [8, 32], strides = [1, 1]} : vector<8x64xf32> to vector<8x32xf32>
    %cst_227 = arith.constant 0.000000e+00 : f32
    %1287 = vector.broadcast %cst_227 : f32 to vector<8x32xf32>
    %cst_228 = arith.constant 0.000000e+00 : f32
    %1288 = vector.broadcast %cst_228 : f32 to vector<8x32xf32>
    %1289 = vector.extract_strided_slice %1285 {offsets = [0, 0], sizes = [1, 32], strides = [1, 1]} : vector<8x32xf32> to vector<1x32xf32>
    %1290 = vector.broadcast %1289 : vector<1x32xf32> to vector<8x32xf32>
    %1291 = arith.addf %1153, %1290 : vector<8x32xf32>
    %1292 = arith.negf %1291 : vector<8x32xf32>
    %1293 = math.exp %1292 : vector<8x32xf32>
    %cst_229 = arith.constant 1.000000e+00 : f32
    %1294 = vector.broadcast %cst_229 : f32 to vector<8x32xf32>
    %1295 = arith.addf %1294, %1293 : vector<8x32xf32>
    %1296 = arith.divf %1294, %1295 : vector<8x32xf32>
    %1297 = vector.extract_strided_slice %1286 {offsets = [0, 0], sizes = [1, 32], strides = [1, 1]} : vector<8x32xf32> to vector<1x32xf32>
    %1298 = vector.broadcast %1297 : vector<1x32xf32> to vector<8x32xf32>
    %1299 = arith.mulf %1296, %1298 : vector<8x32xf32>
    %1300 = arith.addf %1287, %1299 : vector<8x32xf32>
    %1301 = arith.addf %1288, %1296 : vector<8x32xf32>
    %1302 = vector.extract_strided_slice %1285 {offsets = [1, 0], sizes = [1, 32], strides = [1, 1]} : vector<8x32xf32> to vector<1x32xf32>
    %1303 = vector.broadcast %1302 : vector<1x32xf32> to vector<8x32xf32>
    %1304 = arith.addf %1153, %1303 : vector<8x32xf32>
    %1305 = arith.negf %1304 : vector<8x32xf32>
    %1306 = math.exp %1305 : vector<8x32xf32>
    %cst_230 = arith.constant 1.000000e+00 : f32
    %1307 = vector.broadcast %cst_230 : f32 to vector<8x32xf32>
    %1308 = arith.addf %1307, %1306 : vector<8x32xf32>
    %1309 = arith.divf %1307, %1308 : vector<8x32xf32>
    %1310 = vector.extract_strided_slice %1286 {offsets = [1, 0], sizes = [1, 32], strides = [1, 1]} : vector<8x32xf32> to vector<1x32xf32>
    %1311 = vector.broadcast %1310 : vector<1x32xf32> to vector<8x32xf32>
    %1312 = arith.mulf %1309, %1311 : vector<8x32xf32>
    %1313 = arith.addf %1300, %1312 : vector<8x32xf32>
    %1314 = arith.addf %1301, %1309 : vector<8x32xf32>
    %1315 = vector.extract_strided_slice %1285 {offsets = [2, 0], sizes = [1, 32], strides = [1, 1]} : vector<8x32xf32> to vector<1x32xf32>
    %1316 = vector.broadcast %1315 : vector<1x32xf32> to vector<8x32xf32>
    %1317 = arith.addf %1153, %1316 : vector<8x32xf32>
    %1318 = arith.negf %1317 : vector<8x32xf32>
    %1319 = math.exp %1318 : vector<8x32xf32>
    %cst_231 = arith.constant 1.000000e+00 : f32
    %1320 = vector.broadcast %cst_231 : f32 to vector<8x32xf32>
    %1321 = arith.addf %1320, %1319 : vector<8x32xf32>
    %1322 = arith.divf %1320, %1321 : vector<8x32xf32>
    %1323 = vector.extract_strided_slice %1286 {offsets = [2, 0], sizes = [1, 32], strides = [1, 1]} : vector<8x32xf32> to vector<1x32xf32>
    %1324 = vector.broadcast %1323 : vector<1x32xf32> to vector<8x32xf32>
    %1325 = arith.mulf %1322, %1324 : vector<8x32xf32>
    %1326 = arith.addf %1313, %1325 : vector<8x32xf32>
    %1327 = arith.addf %1314, %1322 : vector<8x32xf32>
    %1328 = vector.extract_strided_slice %1285 {offsets = [3, 0], sizes = [1, 32], strides = [1, 1]} : vector<8x32xf32> to vector<1x32xf32>
    %1329 = vector.broadcast %1328 : vector<1x32xf32> to vector<8x32xf32>
    %1330 = arith.addf %1153, %1329 : vector<8x32xf32>
    %1331 = arith.negf %1330 : vector<8x32xf32>
    %1332 = math.exp %1331 : vector<8x32xf32>
    %cst_232 = arith.constant 1.000000e+00 : f32
    %1333 = vector.broadcast %cst_232 : f32 to vector<8x32xf32>
    %1334 = arith.addf %1333, %1332 : vector<8x32xf32>
    %1335 = arith.divf %1333, %1334 : vector<8x32xf32>
    %1336 = vector.extract_strided_slice %1286 {offsets = [3, 0], sizes = [1, 32], strides = [1, 1]} : vector<8x32xf32> to vector<1x32xf32>
    %1337 = vector.broadcast %1336 : vector<1x32xf32> to vector<8x32xf32>
    %1338 = arith.mulf %1335, %1337 : vector<8x32xf32>
    %1339 = arith.addf %1326, %1338 : vector<8x32xf32>
    %1340 = arith.addf %1327, %1335 : vector<8x32xf32>
    %1341 = vector.extract_strided_slice %1285 {offsets = [4, 0], sizes = [1, 32], strides = [1, 1]} : vector<8x32xf32> to vector<1x32xf32>
    %1342 = vector.broadcast %1341 : vector<1x32xf32> to vector<8x32xf32>
    %1343 = arith.addf %1153, %1342 : vector<8x32xf32>
    %1344 = arith.negf %1343 : vector<8x32xf32>
    %1345 = math.exp %1344 : vector<8x32xf32>
    %cst_233 = arith.constant 1.000000e+00 : f32
    %1346 = vector.broadcast %cst_233 : f32 to vector<8x32xf32>
    %1347 = arith.addf %1346, %1345 : vector<8x32xf32>
    %1348 = arith.divf %1346, %1347 : vector<8x32xf32>
    %1349 = vector.extract_strided_slice %1286 {offsets = [4, 0], sizes = [1, 32], strides = [1, 1]} : vector<8x32xf32> to vector<1x32xf32>
    %1350 = vector.broadcast %1349 : vector<1x32xf32> to vector<8x32xf32>
    %1351 = arith.mulf %1348, %1350 : vector<8x32xf32>
    %1352 = arith.addf %1339, %1351 : vector<8x32xf32>
    %1353 = arith.addf %1340, %1348 : vector<8x32xf32>
    %1354 = vector.extract_strided_slice %1285 {offsets = [5, 0], sizes = [1, 32], strides = [1, 1]} : vector<8x32xf32> to vector<1x32xf32>
    %1355 = vector.broadcast %1354 : vector<1x32xf32> to vector<8x32xf32>
    %1356 = arith.addf %1153, %1355 : vector<8x32xf32>
    %1357 = arith.negf %1356 : vector<8x32xf32>
    %1358 = math.exp %1357 : vector<8x32xf32>
    %cst_234 = arith.constant 1.000000e+00 : f32
    %1359 = vector.broadcast %cst_234 : f32 to vector<8x32xf32>
    %1360 = arith.addf %1359, %1358 : vector<8x32xf32>
    %1361 = arith.divf %1359, %1360 : vector<8x32xf32>
    %1362 = vector.extract_strided_slice %1286 {offsets = [5, 0], sizes = [1, 32], strides = [1, 1]} : vector<8x32xf32> to vector<1x32xf32>
    %1363 = vector.broadcast %1362 : vector<1x32xf32> to vector<8x32xf32>
    %1364 = arith.mulf %1361, %1363 : vector<8x32xf32>
    %1365 = arith.addf %1352, %1364 : vector<8x32xf32>
    %1366 = arith.addf %1353, %1361 : vector<8x32xf32>
    %1367 = vector.extract_strided_slice %1285 {offsets = [6, 0], sizes = [1, 32], strides = [1, 1]} : vector<8x32xf32> to vector<1x32xf32>
    %1368 = vector.broadcast %1367 : vector<1x32xf32> to vector<8x32xf32>
    %1369 = arith.addf %1153, %1368 : vector<8x32xf32>
    %1370 = arith.negf %1369 : vector<8x32xf32>
    %1371 = math.exp %1370 : vector<8x32xf32>
    %cst_235 = arith.constant 1.000000e+00 : f32
    %1372 = vector.broadcast %cst_235 : f32 to vector<8x32xf32>
    %1373 = arith.addf %1372, %1371 : vector<8x32xf32>
    %1374 = arith.divf %1372, %1373 : vector<8x32xf32>
    %1375 = vector.extract_strided_slice %1286 {offsets = [6, 0], sizes = [1, 32], strides = [1, 1]} : vector<8x32xf32> to vector<1x32xf32>
    %1376 = vector.broadcast %1375 : vector<1x32xf32> to vector<8x32xf32>
    %1377 = arith.mulf %1374, %1376 : vector<8x32xf32>
    %1378 = arith.addf %1365, %1377 : vector<8x32xf32>
    %1379 = arith.addf %1366, %1374 : vector<8x32xf32>
    %1380 = vector.extract_strided_slice %1285 {offsets = [7, 0], sizes = [1, 32], strides = [1, 1]} : vector<8x32xf32> to vector<1x32xf32>
    %1381 = vector.broadcast %1380 : vector<1x32xf32> to vector<8x32xf32>
    %1382 = arith.addf %1153, %1381 : vector<8x32xf32>
    %1383 = arith.negf %1382 : vector<8x32xf32>
    %1384 = math.exp %1383 : vector<8x32xf32>
    %cst_236 = arith.constant 1.000000e+00 : f32
    %1385 = vector.broadcast %cst_236 : f32 to vector<8x32xf32>
    %1386 = arith.addf %1385, %1384 : vector<8x32xf32>
    %1387 = arith.divf %1385, %1386 : vector<8x32xf32>
    %1388 = vector.extract_strided_slice %1286 {offsets = [7, 0], sizes = [1, 32], strides = [1, 1]} : vector<8x32xf32> to vector<1x32xf32>
    %1389 = vector.broadcast %1388 : vector<1x32xf32> to vector<8x32xf32>
    %1390 = arith.mulf %1387, %1389 : vector<8x32xf32>
    %1391 = arith.addf %1378, %1390 : vector<8x32xf32>
    %1392 = arith.addf %1379, %1387 : vector<8x32xf32>
    %cst_237 = arith.constant 9.99999997E-7 : f32
    %1393 = vector.broadcast %cst_237 : f32 to vector<8x32xf32>
    %1394 = arith.addf %1392, %1393 : vector<8x32xf32>
    %1395 = arith.divf %1391, %1394 : vector<8x32xf32>
    %c10_238 = arith.constant 10 : index
    %1396 = memref.load %arg9[%c10_238] : memref<12xf32, #tpu.memory_space<smem>>
    %1397 = vector.broadcast %1396 : f32 to vector<8x32xf32>
    %1398 = arith.mulf %1397, %1395 : vector<8x32xf32>
    %1399 = arith.addf %1277, %1398 : vector<8x32xf32>
    %c11 = arith.constant 11 : index
    %c0_239 = arith.constant 0 : index
    %c0_240 = arith.constant 0 : index
    %1400 = vector.load %arg5[%c11, %c0_239, %c0_240] : memref<12x32x64xf32, #tpu.memory_space<vmem>>, vector<1x32x64xf32>
    %1401 = vector.shape_cast %1400 : vector<1x32x64xf32> to vector<32x64xf32>
    %cst_241 = arith.constant dense<0.000000e+00> : vector<8x64xf32>
    %1402 = tpu.matmul %385, %1401, %cst_241 {dimension_numbers = #tpu.dot_dimension_numbers<[1], [0], [0], [1], [0, 0, 1, 1], [], []>} : vector<8x32xf32>, vector<32x64xf32>, vector<8x64xf32> -> vector<8x64xf32>
    %c11_242 = arith.constant 11 : index
    %c0_243 = arith.constant 0 : index
    %c0_244 = arith.constant 0 : index
    %1403 = vector.load %arg6[%c11_242, %c0_243, %c0_244] : memref<12x1x64xf32, #tpu.memory_space<vmem>>, vector<1x1x64xf32>
    %1404 = vector.shape_cast %1403 : vector<1x1x64xf32> to vector<1x64xf32>
    %1405 = vector.broadcast %1404 : vector<1x64xf32> to vector<8x64xf32>
    %1406 = arith.addf %1402, %1405 : vector<8x64xf32>
    %1407 = vector.extract_strided_slice %1406 {offsets = [0, 0], sizes = [8, 32], strides = [1, 1]} : vector<8x64xf32> to vector<8x32xf32>
    %1408 = vector.extract_strided_slice %1406 {offsets = [0, 32], sizes = [8, 32], strides = [1, 1]} : vector<8x64xf32> to vector<8x32xf32>
    %cst_245 = arith.constant 0.000000e+00 : f32
    %1409 = vector.broadcast %cst_245 : f32 to vector<8x32xf32>
    %cst_246 = arith.constant 0.000000e+00 : f32
    %1410 = vector.broadcast %cst_246 : f32 to vector<8x32xf32>
    %1411 = vector.extract_strided_slice %1407 {offsets = [0, 0], sizes = [1, 32], strides = [1, 1]} : vector<8x32xf32> to vector<1x32xf32>
    %1412 = vector.broadcast %1411 : vector<1x32xf32> to vector<8x32xf32>
    %1413 = arith.addf %1153, %1412 : vector<8x32xf32>
    %1414 = arith.negf %1413 : vector<8x32xf32>
    %1415 = math.exp %1414 : vector<8x32xf32>
    %cst_247 = arith.constant 1.000000e+00 : f32
    %1416 = vector.broadcast %cst_247 : f32 to vector<8x32xf32>
    %1417 = arith.addf %1416, %1415 : vector<8x32xf32>
    %1418 = arith.divf %1416, %1417 : vector<8x32xf32>
    %1419 = vector.extract_strided_slice %1408 {offsets = [0, 0], sizes = [1, 32], strides = [1, 1]} : vector<8x32xf32> to vector<1x32xf32>
    %1420 = vector.broadcast %1419 : vector<1x32xf32> to vector<8x32xf32>
    %1421 = arith.mulf %1418, %1420 : vector<8x32xf32>
    %1422 = arith.addf %1409, %1421 : vector<8x32xf32>
    %1423 = arith.addf %1410, %1418 : vector<8x32xf32>
    %1424 = vector.extract_strided_slice %1407 {offsets = [1, 0], sizes = [1, 32], strides = [1, 1]} : vector<8x32xf32> to vector<1x32xf32>
    %1425 = vector.broadcast %1424 : vector<1x32xf32> to vector<8x32xf32>
    %1426 = arith.addf %1153, %1425 : vector<8x32xf32>
    %1427 = arith.negf %1426 : vector<8x32xf32>
    %1428 = math.exp %1427 : vector<8x32xf32>
    %cst_248 = arith.constant 1.000000e+00 : f32
    %1429 = vector.broadcast %cst_248 : f32 to vector<8x32xf32>
    %1430 = arith.addf %1429, %1428 : vector<8x32xf32>
    %1431 = arith.divf %1429, %1430 : vector<8x32xf32>
    %1432 = vector.extract_strided_slice %1408 {offsets = [1, 0], sizes = [1, 32], strides = [1, 1]} : vector<8x32xf32> to vector<1x32xf32>
    %1433 = vector.broadcast %1432 : vector<1x32xf32> to vector<8x32xf32>
    %1434 = arith.mulf %1431, %1433 : vector<8x32xf32>
    %1435 = arith.addf %1422, %1434 : vector<8x32xf32>
    %1436 = arith.addf %1423, %1431 : vector<8x32xf32>
    %1437 = vector.extract_strided_slice %1407 {offsets = [2, 0], sizes = [1, 32], strides = [1, 1]} : vector<8x32xf32> to vector<1x32xf32>
    %1438 = vector.broadcast %1437 : vector<1x32xf32> to vector<8x32xf32>
    %1439 = arith.addf %1153, %1438 : vector<8x32xf32>
    %1440 = arith.negf %1439 : vector<8x32xf32>
    %1441 = math.exp %1440 : vector<8x32xf32>
    %cst_249 = arith.constant 1.000000e+00 : f32
    %1442 = vector.broadcast %cst_249 : f32 to vector<8x32xf32>
    %1443 = arith.addf %1442, %1441 : vector<8x32xf32>
    %1444 = arith.divf %1442, %1443 : vector<8x32xf32>
    %1445 = vector.extract_strided_slice %1408 {offsets = [2, 0], sizes = [1, 32], strides = [1, 1]} : vector<8x32xf32> to vector<1x32xf32>
    %1446 = vector.broadcast %1445 : vector<1x32xf32> to vector<8x32xf32>
    %1447 = arith.mulf %1444, %1446 : vector<8x32xf32>
    %1448 = arith.addf %1435, %1447 : vector<8x32xf32>
    %1449 = arith.addf %1436, %1444 : vector<8x32xf32>
    %1450 = vector.extract_strided_slice %1407 {offsets = [3, 0], sizes = [1, 32], strides = [1, 1]} : vector<8x32xf32> to vector<1x32xf32>
    %1451 = vector.broadcast %1450 : vector<1x32xf32> to vector<8x32xf32>
    %1452 = arith.addf %1153, %1451 : vector<8x32xf32>
    %1453 = arith.negf %1452 : vector<8x32xf32>
    %1454 = math.exp %1453 : vector<8x32xf32>
    %cst_250 = arith.constant 1.000000e+00 : f32
    %1455 = vector.broadcast %cst_250 : f32 to vector<8x32xf32>
    %1456 = arith.addf %1455, %1454 : vector<8x32xf32>
    %1457 = arith.divf %1455, %1456 : vector<8x32xf32>
    %1458 = vector.extract_strided_slice %1408 {offsets = [3, 0], sizes = [1, 32], strides = [1, 1]} : vector<8x32xf32> to vector<1x32xf32>
    %1459 = vector.broadcast %1458 : vector<1x32xf32> to vector<8x32xf32>
    %1460 = arith.mulf %1457, %1459 : vector<8x32xf32>
    %1461 = arith.addf %1448, %1460 : vector<8x32xf32>
    %1462 = arith.addf %1449, %1457 : vector<8x32xf32>
    %1463 = vector.extract_strided_slice %1407 {offsets = [4, 0], sizes = [1, 32], strides = [1, 1]} : vector<8x32xf32> to vector<1x32xf32>
    %1464 = vector.broadcast %1463 : vector<1x32xf32> to vector<8x32xf32>
    %1465 = arith.addf %1153, %1464 : vector<8x32xf32>
    %1466 = arith.negf %1465 : vector<8x32xf32>
    %1467 = math.exp %1466 : vector<8x32xf32>
    %cst_251 = arith.constant 1.000000e+00 : f32
    %1468 = vector.broadcast %cst_251 : f32 to vector<8x32xf32>
    %1469 = arith.addf %1468, %1467 : vector<8x32xf32>
    %1470 = arith.divf %1468, %1469 : vector<8x32xf32>
    %1471 = vector.extract_strided_slice %1408 {offsets = [4, 0], sizes = [1, 32], strides = [1, 1]} : vector<8x32xf32> to vector<1x32xf32>
    %1472 = vector.broadcast %1471 : vector<1x32xf32> to vector<8x32xf32>
    %1473 = arith.mulf %1470, %1472 : vector<8x32xf32>
    %1474 = arith.addf %1461, %1473 : vector<8x32xf32>
    %1475 = arith.addf %1462, %1470 : vector<8x32xf32>
    %1476 = vector.extract_strided_slice %1407 {offsets = [5, 0], sizes = [1, 32], strides = [1, 1]} : vector<8x32xf32> to vector<1x32xf32>
    %1477 = vector.broadcast %1476 : vector<1x32xf32> to vector<8x32xf32>
    %1478 = arith.addf %1153, %1477 : vector<8x32xf32>
    %1479 = arith.negf %1478 : vector<8x32xf32>
    %1480 = math.exp %1479 : vector<8x32xf32>
    %cst_252 = arith.constant 1.000000e+00 : f32
    %1481 = vector.broadcast %cst_252 : f32 to vector<8x32xf32>
    %1482 = arith.addf %1481, %1480 : vector<8x32xf32>
    %1483 = arith.divf %1481, %1482 : vector<8x32xf32>
    %1484 = vector.extract_strided_slice %1408 {offsets = [5, 0], sizes = [1, 32], strides = [1, 1]} : vector<8x32xf32> to vector<1x32xf32>
    %1485 = vector.broadcast %1484 : vector<1x32xf32> to vector<8x32xf32>
    %1486 = arith.mulf %1483, %1485 : vector<8x32xf32>
    %1487 = arith.addf %1474, %1486 : vector<8x32xf32>
    %1488 = arith.addf %1475, %1483 : vector<8x32xf32>
    %1489 = vector.extract_strided_slice %1407 {offsets = [6, 0], sizes = [1, 32], strides = [1, 1]} : vector<8x32xf32> to vector<1x32xf32>
    %1490 = vector.broadcast %1489 : vector<1x32xf32> to vector<8x32xf32>
    %1491 = arith.addf %1153, %1490 : vector<8x32xf32>
    %1492 = arith.negf %1491 : vector<8x32xf32>
    %1493 = math.exp %1492 : vector<8x32xf32>
    %cst_253 = arith.constant 1.000000e+00 : f32
    %1494 = vector.broadcast %cst_253 : f32 to vector<8x32xf32>
    %1495 = arith.addf %1494, %1493 : vector<8x32xf32>
    %1496 = arith.divf %1494, %1495 : vector<8x32xf32>
    %1497 = vector.extract_strided_slice %1408 {offsets = [6, 0], sizes = [1, 32], strides = [1, 1]} : vector<8x32xf32> to vector<1x32xf32>
    %1498 = vector.broadcast %1497 : vector<1x32xf32> to vector<8x32xf32>
    %1499 = arith.mulf %1496, %1498 : vector<8x32xf32>
    %1500 = arith.addf %1487, %1499 : vector<8x32xf32>
    %1501 = arith.addf %1488, %1496 : vector<8x32xf32>
    %1502 = vector.extract_strided_slice %1407 {offsets = [7, 0], sizes = [1, 32], strides = [1, 1]} : vector<8x32xf32> to vector<1x32xf32>
    %1503 = vector.broadcast %1502 : vector<1x32xf32> to vector<8x32xf32>
    %1504 = arith.addf %1153, %1503 : vector<8x32xf32>
    %1505 = arith.negf %1504 : vector<8x32xf32>
    %1506 = math.exp %1505 : vector<8x32xf32>
    %cst_254 = arith.constant 1.000000e+00 : f32
    %1507 = vector.broadcast %cst_254 : f32 to vector<8x32xf32>
    %1508 = arith.addf %1507, %1506 : vector<8x32xf32>
    %1509 = arith.divf %1507, %1508 : vector<8x32xf32>
    %1510 = vector.extract_strided_slice %1408 {offsets = [7, 0], sizes = [1, 32], strides = [1, 1]} : vector<8x32xf32> to vector<1x32xf32>
    %1511 = vector.broadcast %1510 : vector<1x32xf32> to vector<8x32xf32>
    %1512 = arith.mulf %1509, %1511 : vector<8x32xf32>
    %1513 = arith.addf %1500, %1512 : vector<8x32xf32>
    %1514 = arith.addf %1501, %1509 : vector<8x32xf32>
    %cst_255 = arith.constant 9.99999997E-7 : f32
    %1515 = vector.broadcast %cst_255 : f32 to vector<8x32xf32>
    %1516 = arith.addf %1514, %1515 : vector<8x32xf32>
    %1517 = arith.divf %1513, %1516 : vector<8x32xf32>
    %c11_256 = arith.constant 11 : index
    %1518 = memref.load %arg9[%c11_256] : memref<12xf32, #tpu.memory_space<smem>>
    %1519 = vector.broadcast %1518 : f32 to vector<8x32xf32>
    %1520 = arith.mulf %1519, %1517 : vector<8x32xf32>
    %1521 = arith.addf %1399, %1520 : vector<8x32xf32>
    %1522 = arith.addf %1154, %1521 : vector<8x32xf32>
    %cst_257 = arith.constant 0.000000e+00 : f32
    %1523 = vector.broadcast %cst_257 : f32 to vector<8x32xf32>
    %1524 = arith.maximumf %1522, %1523 : vector<8x32xf32>
    %1525 = arith.addf %1145, %1524 : vector<8x32xf32>
    %cst_258 = arith.constant dense<0.000000e+00> : vector<32xf32>
    %1526 = vector.multi_reduction <add>, %1525, %cst_258 [0] : vector<8x32xf32> to vector<32xf32>
    %1527 = vector.shape_cast %1526 : vector<32xf32> to vector<1x32xf32>
    %cst_259 = arith.constant 8.000000e+00 : f32
    %1528 = vector.broadcast %cst_259 : f32 to vector<1x32xf32>
    %1529 = arith.divf %1527, %1528 : vector<1x32xf32>
    %c0_260 = arith.constant 0 : index
    %c0_261 = arith.constant 0 : index
    %1530 = vector.load %arg7[%c0_260, %c0_261] : memref<32x2xf32, #tpu.memory_space<vmem>>, vector<32x2xf32>
    %cst_262 = arith.constant dense<0.000000e+00> : vector<1x2xf32>
    %1531 = tpu.matmul %1529, %1530, %cst_262 {dimension_numbers = #tpu.dot_dimension_numbers<[1], [0], [0], [1], [0, 0, 1, 1], [], []>} : vector<1x32xf32>, vector<32x2xf32>, vector<1x2xf32> -> vector<1x2xf32>
    %c0_263 = arith.constant 0 : index
    %c0_264 = arith.constant 0 : index
    %1532 = vector.load %arg8[%c0_263, %c0_264] : memref<1x2xf32, #tpu.memory_space<vmem>>, vector<1x2xf32>
    %1533 = arith.addf %1531, %1532 : vector<1x2xf32>
    %c0_265 = arith.constant 0 : index
    %c0_266 = arith.constant 0 : index
    %1534 = vector.load %arg10[%c0_265, %c0_266] : memref<1x2xf32, #tpu.memory_space<vmem>>, vector<1x2xf32>
    tpu.vector_store %arg10[%c0_265, %c0_266], %1533 {strides = array<i32>} : memref<1x2xf32, #tpu.memory_space<vmem>>, vector<1x2xf32>,
    return
  }
}

</mosaic_0001>

<bundles_post_ra>
// kernel: tpu_custom_call.1
= control target key start
LH: loop header
LB: loop body
LE: loop exit
PB: predicated region body
PF: predicated region fallthrough
CT: control target
= control target key end

     0   :  { %15 = vsyncpa [#allocation3], 0  ;;  %s5514_s0 = inlined_call_operand.vmem [shape: f32[8,4], index: 0, kind: input, shape index: {}]   ;;  %s5515_s1 = inlined_call_operand.vmem [shape: f32[4,32], index: 1, kind: input, shape index: {}]   ;;  %s5516_s2 = inlined_call_operand.vmem [shape: f32[1,32], index: 2, kind: input, shape index: {}]   ;;  %s5517_s3 = inlined_call_operand.hbm [shape: f32[4,32,64], index: 3, kind: input, shape index: {}]   ;;  %s5518_s4 = inlined_call_operand.vmem [shape: f32[4,1,64], index: 4, kind: input, shape index: {}]   ;;  %s5519_s5 = inlined_call_operand.hbm [shape: f32[12,32,64], index: 5, kind: input, shape index: {}]   ;;  %s5520_s6 = inlined_call_operand.vmem [shape: f32[12,1,64], index: 6, kind: input, shape index: {}]   ;;  %s5521_s7 = inlined_call_operand.vmem [shape: f32[32,2], index: 7, kind: input, shape index: {}]   ;;  %s5522_s8 = inlined_call_operand.vmem [shape: f32[1,2], index: 8, kind: input, shape index: {}]   ;;  %s5523_s9 = inlined_call_operand.vmem [shape: f32[12], index: 9, kind: input, shape index: {}]   ;;  %s5524_s10 = inlined_call_operand.hbm [shape: f32[1,2], index: 10, kind: output, shape index: {}]  }
   0x1   :  { %16 = vsyncpa [#allocation7], 0 }
   0x2   :  { %17 = vsyncpa [#allocation5], 0 }
   0x3   :  { %18 = vsyncpa [#allocation4], 0  ;;  %s4397_s13 = smov [#allocation2]  }
   0x4   :  { %s30_s14 = sshll.u32 %s4397_s13, 4  ;;  %s31_s14 = int_to_ptr.vmem [resolvable:$true] %s30_s14 }
   0x5   :  { %s4325_s15 = scalar_lea.vmem %s31_s14, 2048  ;;  %p4330_p1 = scmp.lt.s32.totalorder %s31_s14, %s31_s14 }
   0x6   :  { %p4326_p0 = scmp.ne.s32.totalorder %s31_s14, %s4325_s15  ;;  %p4331_p2 = scmp.lt.s32.totalorder %s4325_s15, %s4325_s15 }
   0x8   :  { %p4332_p3 = por %p4331_p2, %p4330_p1 }
   0xa   :  { %p4333_p4 = pnand %p4332_p3, %p4326_p0 }
   0xc   :  { %4336 = shalt.err (!%p4333_p4)
}
   0xd   :  { %s4398_s16 = smov 128   ;;  %s4399_s17 = smov 8  }
   0xe   :  { %36 = dma.hbm_to_vmem [thread:$0]  %s5517_s3, 2048, %s31_s14, [#allocation3], %s4398_s16, %s4398_s16, %s4399_s17  }
   0xf   :  { %s4400_s20 = smov [#allocation6]   ;;  %s63_s24 = sshll.u32 %s5523_s9, 4  ;;  %s64_s24 = int_to_ptr.vmem [resolvable:$true] %s63_s24 }
  0x10   :  { %s44_s21 = sshll.u32 %s4400_s20, 4  ;;  %s45_s21 = int_to_ptr.vmem [resolvable:$true] %s44_s21 }
  0x11   :  { %s4345_s25 = scalar_lea.vmem %s45_s21, 6144  ;;  %p4350_p6 = scmp.lt.s32.totalorder %s45_s21, %s45_s21 }
  0x12   :  { %p4346_p5 = scmp.ne.s32.totalorder %s45_s21, %s4345_s25  ;;  %p4351_p7 = scmp.lt.s32.totalorder %s4345_s25, %s4345_s25 }
  0x14   :  { %p4352_p8 = por %p4351_p7, %p4350_p6 }
  0x16   :  { %p4353_p9 = pnand %p4352_p8, %p4346_p5 }
  0x18   :  { %4356 = shalt.err (!%p4353_p9)
}
  0x19   :  { %50 = dma.hbm_to_vmem [thread:$0]  %s5519_s5, 6144, %s45_s21, [#allocation7], %s4398_s16, %s4398_s16, %s4399_s17  }
  0x1a   :  { %s4357_s3 = scalar_lea.vmem %s64_s24, 16  ;;  %p4362_p11 = scmp.lt.s32.totalorder %s64_s24, %s64_s24 }
  0x1b   :  { %p4358_p10 = scmp.ne.s32.totalorder %s64_s24, %s4357_s3  ;;  %p4363_p12 = scmp.lt.s32.totalorder %s4357_s3, %s4357_s3 }
  0x1d   :  { %p4364_p13 = por %p4363_p12, %p4362_p11 }
  0x1f   :  { %p4365_p0 = pnand %p4364_p13, %p4358_p10 }
  0x21   :  { %4368 = shalt.err (!%p4365_p0)
}
  0x22   :  { %s4401_s9 = smov [#allocation8]  }
  0x23   :  { %66 = dma.vmem_to_smem %s64_s24, 16, %s4401_s9, [#allocation5]  }
  0x24   :  { %4389 = dma.done.wait [#allocation3], 2048  }
  0x25   :  { %4390 = vsyncadd [#allocation3], 4294965248 }
  0x26   :  { %4391 = dma.done.wait [#allocation7], 6144  }
  0x27   :  { %4392 = vsyncadd [#allocation7], 4294961152 }
  0x28   :  { %4393 = dma.done.wait [#allocation5], 16  }
  0x29   :  { %4394 = vsyncadd [#allocation5], 4294967280 }
  0x2a   :  { %76 = sfence }
  0x2b   :  { %v78_v0 = vld [vmem:[%s5515_s1] sm:$0xf]  ;;  %vm90_vm0 = vcmask 1043456   ;;  %v4402_v2 = vmov 0.0   ;;  %vm4403_vm1 = vmmov 0   ;;  %vm86_vm2 = vcmask 31744  }
  0x2c   :  { %v77_v1 = vld [vmem:[%s5514_s0] sm:$0xff]  ;;  %3707 = vmatprep.subr.mxu0 %v4402_v2  ;;  %3709 = vmatprep.mubr.msk.f32.mxu0 %vm4403_vm1, %v4402_v2  ;;  %v167_v3 = vld [vmem:[#allocation2 + $0x18] sm:$0xff]  ;;  %v166_v5 = vld [vmem:[#allocation2 + $0x10] sm:$0xff]  ;;  %vm175_vm3 = vcmask 261120   ;;  %v330_v23 = vlaneseq  ;;  %s4404_s14 = smov 96   ;;  %s477_s19 = sld [smem:[#allocation8]] }
  0x2d   :  { %v252_v4 = vld [vmem:[#allocation6 + $0x18] sm:$0xff]  ;;  %3708 = vmatpush3.msk.msra.mxu0 %vm90_vm0, %v78_v0  ;;  %3712 = vmatprep.subr.mxu1 %v4402_v2  ;;  %v251_v6 = vld [vmem:[#allocation6 + $0x10] sm:$0xff]  ;;  %v165_v7 = vld [vmem:[#allocation2 + $0x8] sm:$0xff]  ;;  %s3489_s20 = sld [smem:[#allocation8 + $0x1]]  ;;  %s4405_s22 = smov 32   ;;  %vm3444_vm4 = vcmask 8192  }
  0x2e   :  { %3710 = vmatmul.mubr.msk.f32.vlgmr.msra.gmra.mxu0 %vm86_vm2, %v77_v1  ;;  %3723 = vmatprep.subr.mxu0 %v4402_v2  ;;  %v250_v8 = vld [vmem:[#allocation6 + $0x8] sm:$0xff]  ;;  %v164_v9 = vld [vmem:[#allocation2] sm:$0xff]  ;;  %v485_v14 = vld [vmem:[#allocation6 + $0x38] sm:$0xff]  ;;  %v331_v24 = vshrl.u32 %v330_v23, 7  ;;  %s4746_s21 = sld [smem:[#allocation8 + $0x2]]  ;;  %s4406_s11 = smov [#allocation9]  }
  0x2f   :  { %3713 = vmatpush3.msra.mxu1 %v167_v3  ;;  %3724 = vmatpush3.msra.mxu0 %v252_v4  ;;  %v249_v10 = vld [vmem:[#allocation6] sm:$0xff]  ;;  %v719_v15 = vld [vmem:[#allocation6 + $0x58] sm:$0xff]  ;;  %v484_v17 = vld [vmem:[#allocation6 + $0x30] sm:$0xff]  ;;  %s3516_s29 = sld [smem:[#allocation8 + $0x3]]  ;;  %s3452_s12 = sshll.u32 %s4406_s11, 4  ;;  %s3453_s12 = int_to_ptr.vmem [resolvable:$true] %s3452_s12 }
  0x30   :  { %3714 = vmatprep.subr.mxu1 %v4402_v2  ;;  %3725 = vmatprep.subr.mxu0 %v4402_v2  ;;  %v3463_v11 = vld [vmem:[%s5516_s2] ss:$0 sm:$0xff]  ;;  %v718_v18 = vld [vmem:[#allocation6 + $0x50] sm:$0xff]  ;;  %v483_v19 = vld [vmem:[#allocation6 + $0x28] sm:$0xff]  ;;  %v4529_v27 = vsub.s32 4, %v331_v24  ;;  %v4531_v28 = vsub.s32 0, %v331_v24  ;;  %p4374_p2 = scmp.lt.s32.totalorder %s3453_s12, %s3453_s12 }
  0x31   :  { %3715 = vmatpush3.msra.mxu1 %v166_v5  ;;  %3726 = vmatpush3.msra.mxu0 %v251_v6  ;;  %v717_v20 = vld [vmem:[#allocation6 + $0x48] sm:$0xff]  ;;  %v482_v21 = vld [vmem:[#allocation6 + $0x20] sm:$0xff]  ;;  %v4533_v29 = vsub.s32 6, %v331_v24  ;;  %v4535_v30 = vsub.s32 1, %v331_v24  ;;  %v4537_v33 = vsub.s32 2, %v331_v24  ;;  %v4539_v34 = vsub.s32 3, %v331_v24 }
  0x32   :  { %3716 = vmatprep.subr.mxu1 %v4402_v2  ;;  %3727 = vmatprep.subr.mxu0 %v4402_v2  ;;  %v716_v22 = vld [vmem:[#allocation6 + $0x40] sm:$0xff]  ;;  %v4541_v35 = vsub.s32 5, %v331_v24  ;;  %v4543_v36 = vsub.s32 7, %v331_v24  ;;  %s3528_s5 = sld [smem:[#allocation8 + $0x4]]  ;;  %s4369_s13 = scalar_lea.vmem %s3453_s12, 16 }
  0x33   :  { %3717 = vmatpush3.msra.mxu1 %v165_v7  ;;  %3728 = vmatpush3.msra.mxu0 %v250_v8  ;;  %v3468_v25 = vld [vmem:[%s5520_s6] ss:$0 sm:$0xff]  ;;  %v3479_v52 = vld [vmem:[%s5520_s6 + $0x1] ss:$0 sm:$0xff]  ;;  %v3491_v53 = vld [vmem:[%s5520_s6 + $0x2] ss:$0 sm:$0xff]  ;;  %p4370_p1 = scmp.ne.s32.totalorder %s3453_s12, %s4369_s13 }
  0x34   :  { %3718 = vmatprep.subr.mxu1 %v4402_v2  ;;  %3729 = vmatprep.subr.mxu0 %v4402_v2  ;;  %v3466_v26 = vld [vmem:[%s5518_s4] ss:$0 sm:$0xff]  ;;  %s4993_s30 = sld [smem:[#allocation8 + $0x5]]  ;;  %s4373_s15 = scalar_lea.vmem %s3453_s12, 32 }
  0x35   :  { %3720 = vmatprep.mubr.msk.f32.mxu1 %vm4403_vm1, %v4402_v2  ;;  %3731 = vmatprep.mubr.msk.f32.mxu0 %vm4403_vm1, %v4402_v2  ;;  %s3555_s17 = sld [smem:[#allocation8 + $0x6]]  ;;  %p4375_p3 = scmp.lt.s32.totalorder %s4373_s15, %s4369_s13 }
  0x36   :  { %3719 = vmatpush3.msra.mxu1 %v164_v9  ;;  %3730 = vmatpush3.msra.mxu0 %v249_v10  ;;  %s3567_s18 = sld [smem:[#allocation8 + $0x7]] }
  0x37   :  { %3734 = vmatprep.subr.mxu1 %v4402_v2  ;;  %3745 = vmatprep.subr.mxu0 %v4402_v2  ;;  %s3606_s3 = sld [smem:[#allocation8 + $0xa]]  ;;  %p4376_p4 = por %p4375_p3, %p4374_p2 }
  0x38   :  { %s3618_s9 = sld [smem:[#allocation8 + $0xb]] }
  0x39   :  { %p4377_p5 = pnand %p4376_p4, %p4370_p1 }
  0xee   :  { %v160_v12 = vpop.f32.mrf.mxu0 }
  0xef   :  { %v4497_v13 = vadd.f32 %v3463_v11, %v160_v12 }
  0xf0   :  { %v3711_v16 = vpop.f32.mrf.mxu0 }
  0xf1   :  { %3721 = vmatmul.mubr.msk.f32.vlgmr.msra.gmra.mxu1 %vm175_vm3, %v4497_v13  ;;  %3732 = vmatmul.mubr.msk.f32.vlgmr.msra.gmra.mxu0 %vm175_vm3, %v4497_v13 }
  0xf2   :  { %3735 = vmatpush3.msra.mxu1 %v485_v14  ;;  %3746 = vmatpush3.msra.mxu0 %v719_v15 }
  0xf3   :  { %3736 = vmatprep.subr.mxu1 %v4402_v2  ;;  %3747 = vmatprep.subr.mxu0 %v4402_v2 }
  0xf4   :  { %3737 = vmatpush3.msra.mxu1 %v484_v17  ;;  %3748 = vmatpush3.msra.mxu0 %v718_v18 }
  0xf5   :  { %3738 = vmatprep.subr.mxu1 %v4402_v2  ;;  %3749 = vmatprep.subr.mxu0 %v4402_v2 }
  0xf6   :  { %3739 = vmatpush3.msra.mxu1 %v483_v19  ;;  %3750 = vmatpush3.msra.mxu0 %v717_v20 }
  0xf7   :  { %3740 = vmatprep.subr.mxu1 %v4402_v2  ;;  %3751 = vmatprep.subr.mxu0 %v4402_v2 }
  0xf8   :  { %3741 = vmatpush3.msra.mxu1 %v482_v21  ;;  %3742 = vmatprep.mubr.msk.f32.mxu1 %vm4403_vm1, %v4402_v2 }
  0xf9   :  { %3752 = vmatpush3.msra.mxu0 %v716_v22  ;;  %3753 = vmatprep.mubr.msk.f32.mxu0 %vm4403_vm1, %v4402_v2 }
  0xfa   :  { %3743 = vmatmul.mubr.msk.f32.vlgmr.msra.gmra.mxu1 %vm175_vm3, %v4497_v13  ;;  %3754 = vmatmul.mubr.msk.f32.vlgmr.msra.gmra.mxu0 %vm175_vm3, %v4497_v13 }
  0xfb   :  { %3756 = vmatprep.subr.mxu1 %v4402_v2  ;;  %3767 = vmatprep.subr.mxu0 %v4402_v2 }
  0xfc   :  { %3764 = vmatprep.mubr.msk.f32.mxu1 %vm4403_vm1, %v4402_v2  ;;  %3775 = vmatprep.mubr.msk.f32.mxu0 %vm4403_vm1, %v4402_v2 }
 0x1b1   :  { %v245_v31 = vpop.f32.mrf.mxu1  ;;  %v326_v32 = vpop.f32.mrf.mxu0 }
 0x1b2   :  { %v327_v37 = vadd.f32 %v3468_v25, %v326_v32  ;;  %v4545_v38 = vadd.f32 %v3466_v26, %v245_v31 }
 0x1b3   :  { %v3722_v39 = vpop.f32.mrf.mxu1  ;;  %v3733_v40 = vpop.f32.mrf.mxu0 }
 0x1b4   :  { %v405_v41 = vrot.slane %v327_v37, %v4529_v27  ;;  %v333_v42 = vrot.slane %v327_v37, %v4531_v28  ;;  %v441_v43 = vrot.slane %v327_v37, %v4533_v29  ;;  %v351_v44 = vrot.slane %v327_v37, %v4535_v30 }
 0x1b5   :  { %v369_v45 = vrot.slane %v327_v37, %v4537_v33  ;;  %v387_v46 = vrot.slane %v327_v37, %v4539_v34  ;;  %v4554_v47 = vrot.slane %v327_v37, %v4541_v35  ;;  %v4557_v48 = vrot.slane %v327_v37, %v4543_v36 }
 0x1b6   :  { %414 = vrot.lane.b32.xlu1 %v405_v41, %s4404_s14  ;;  %v406_v49 = vadd.f32 %v405_v41, %v4545_v38  ;;  %342 = vrot.lane.b32.xlu0 %v333_v42, %s4404_s14  ;;  %v334_v50 = vadd.f32 %v333_v42, %v4545_v38  ;;  %v442_v51 = vadd.f32 %v441_v43, %v4545_v38 }
 0x1b7   :  { %v352_v54 = vadd.f32 %v351_v44, %v4545_v38  ;;  %v370_v55 = vadd.f32 %v369_v45, %v4545_v38  ;;  %v388_v56 = vadd.f32 %v387_v46, %v4545_v38  ;;  %v424_v57 = vadd.f32 %v4554_v47, %v4545_v38 }
 0x1b8   :  { %v3474_v58 = vmul.f32 -1.442695, %v406_v49  ;;  %v3470_v59 = vmul.f32 -1.442695, %v334_v50  ;;  %v3476_v60 = vmul.f32 -1.442695, %v442_v51  ;;  %v460_v61 = vadd.f32 %v4557_v48, %v4545_v38 }
 0x1b9   :  { %v3471_v62 = vmul.f32 -1.442695, %v352_v54  ;;  %v3472_v1 = vmul.f32 -1.442695, %v370_v55  ;;  %v3473_v5 = vmul.f32 -1.442695, %v388_v56 }
 0x1ba   :  { %3909 = vpow2.f32 %v3474_v58  ;;  %v560_v63 = vpop.f32.mrf.mxu1  ;;  %v794_v0 = vpop.f32.mrf.mxu0  ;;  %450 = vrot.lane.b32.xlu1 %v441_v43, %s4404_s14  ;;  %360 = vrot.lane.b32.xlu0 %v351_v44, %s4404_s14  ;;  %v3475_v8 = vmul.f32 -1.442695, %v424_v57  ;;  %v3477_v9 = vmul.f32 -1.442695, %v460_v61 }
 0x1bb   :  { %3911 = vpow2.f32 %v3470_v59  ;;  %v4579_v3 = vadd.f32 %v3479_v52, %v560_v63  ;;  %v4581_v4 = vadd.f32 %v3491_v53, %v794_v0 }
 0x1bc   :  { %v3744_v6 = vpop.f32.mrf.mxu1  ;;  %3913 = vpow2.f32 %v3476_v60  ;;  %v3755_v7 = vpop.f32.mrf.mxu0 }
 0x1bd   :  { %3915 = vpow2.f32 %v3471_v62  ;;  %v567_v10 = vrot.slane %v4579_v3, %v4531_v28  ;;  %v585_v11 = vrot.slane %v4579_v3, %v4535_v30  ;;  %v603_v12 = vrot.slane %v4579_v3, %v4537_v33 }
 0x1be   :  { %3917 = vpow2.f32 %v3472_v1  ;;  %378 = vrot.lane.b32.xlu0 %v369_v45, %s4404_s14  ;;  %v819_v14 = vrot.slane %v4581_v4, %v4535_v30  ;;  %v621_v15 = vrot.slane %v4579_v3, %v4539_v34  ;;  %v801_v16 = vrot.slane %v4581_v4, %v4531_v28 }
 0x1bf   :  { %v568_v17 = vadd.f32 %v567_v10, %v4545_v38  ;;  %576 = vrot.lane.b32.xlu1 %v567_v10, %s4404_s14  ;;  %v586_v18 = vadd.f32 %v585_v11, %v4545_v38  ;;  %3919 = vpow2.f32 %v3473_v5  ;;  %v604_v19 = vadd.f32 %v603_v12, %v4545_v38 }
 0x1c0   :  { %3921 = vpow2.f32 %v3475_v8  ;;  %v820_v20 = vadd.f32 %v819_v14, %v4545_v38  ;;  %v622_v21 = vadd.f32 %v621_v15, %v4545_v38  ;;  %v802_v22 = vadd.f32 %v801_v16, %v4545_v38 }
 0x1c1   :  { %v3481_v23 = vmul.f32 -1.442695, %v568_v17  ;;  %v3482_v24 = vmul.f32 -1.442695, %v586_v18  ;;  %v3483_v25 = vmul.f32 -1.442695, %v604_v19  ;;  %3923 = vpow2.f32 %v3477_v9 }
 0x1c2   :  { %396 = vrot.lane.b32.xlu0 %v387_v46, %s4404_s14  ;;  %v3494_v26 = vmul.f32 -1.442695, %v820_v20  ;;  %v855_v31 = vrot.slane %v4581_v4, %v4539_v34  ;;  %v3484_v32 = vmul.f32 -1.442695, %v622_v21  ;;  %v3493_v37 = vmul.f32 -1.442695, %v802_v22 }
 0x1c3   :  { %3925 = vpow2.f32 %v3481_v23  ;;  %594 = vrot.lane.b32.xlu1 %v585_v11, %s4404_s14  ;;  %v837_v41 = vrot.slane %v4581_v4, %v4537_v33  ;;  %v657_v57 = vrot.slane %v4579_v3, %v4541_v35  ;;  %v639_v59 = vrot.slane %v4579_v3, %v4529_v27 }
 0x1c4   :  { %3927 = vpow2.f32 %v3482_v24  ;;  %v856_v39 = vadd.f32 %v855_v31, %v4545_v38  ;;  %v891_v61 = vrot.slane %v4581_v4, %v4541_v35  ;;  %v873_v63 = vrot.slane %v4581_v4, %v4529_v27 }
 0x1c5   :  { %3929 = vpow2.f32 %v3483_v25  ;;  %v658_v5 = vadd.f32 %v657_v57, %v4545_v38  ;;  %v640_v8 = vadd.f32 %v639_v59, %v4545_v38  ;;  %v693_v9 = vrot.slane %v4579_v3, %v4543_v36 }
 0x1c6   :  { %432 = vrot.lane.b32.xlu0 %v4554_v47, %s4404_s14  ;;  %3931 = vpow2.f32 %v3494_v26  ;;  %v3496_v40 = vmul.f32 -1.442695, %v856_v39  ;;  %v838_v47 = vadd.f32 %v837_v41, %v4545_v38  ;;  %v874_v17 = vadd.f32 %v873_v63, %v4545_v38 }
 0x1c7   :  { %v3910_v42 = vpop.eup %3909  ;;  %612 = vrot.lane.b32.xlu1 %v603_v12, %s4404_s14  ;;  %3933 = vpow2.f32 %v3484_v32  ;;  %v892_v12 = vadd.f32 %v891_v61, %v4545_v38  ;;  %v927_v18 = vrot.slane %v4581_v4, %v4543_v36  ;;  %v909_v22 = vrot.slane %v4581_v4, %v4533_v29 }
 0x1c8   :  { %v3912_v43 = vpop.eup %3911  ;;  %v410_v44 = vadd.f32 1.0, %v3910_v42  ;;  %3935 = vpow2.f32 %v3493_v37  ;;  %v3486_v24 = vmul.f32 -1.442695, %v658_v5  ;;  %v3485_v26 = vmul.f32 -1.442695, %v640_v8 }
 0x1c9   :  { %v3914_v45 = vpop.eup %3913  ;;  %v338_v46 = vadd.f32 1.0, %v3912_v43  ;;  %3937 = vpow2.f32 %v3496_v40  ;;  %v3498_v37 = vmul.f32 -1.442695, %v892_v12  ;;  %v928_v4 = vadd.f32 %v927_v18, %v4545_v38 }
 0x1ca   :  { %v3916_v49 = vpop.eup %3915  ;;  %v446_v50 = vadd.f32 1.0, %v3914_v45  ;;  %468 = vrot.lane.b32.xlu0 %v4557_v48, %s4404_s14  ;;  %v3495_v48 = vmul.f32 -1.442695, %v838_v47  ;;  %v3497_v40 = vmul.f32 -1.442695, %v874_v17 }
 0x1cb   :  { %v3918_v51 = vpop.eup %3917  ;;  %3939 = vrcp.f32 %v338_v46  ;;  %v356_v52 = vadd.f32 1.0, %v3916_v49  ;;  %828 = vrot.lane.b32.xlu1 %v819_v14, %s4404_s14  ;;  %v675_v14 = vrot.slane %v4579_v3, %v4533_v29  ;;  %v694_v3 = vadd.f32 %v693_v9, %v4545_v38 }
 0x1cc   :  { %v3920_v53 = vpop.eup %3919  ;;  %3941 = vrcp.f32 %v410_v44  ;;  %v374_v54 = vadd.f32 1.0, %v3918_v51 }
 0x1cd   :  { %v3922_v55 = vpop.eup %3921  ;;  %3943 = vrcp.f32 %v356_v52  ;;  %v392_v56 = vadd.f32 1.0, %v3920_v53  ;;  %v3488_v43 = vmul.f32 -1.442695, %v694_v3 }
 0x1ce   :  { %3945 = vrcp.f32 %v446_v50  ;;  %v428_v58 = vadd.f32 1.0, %v3922_v55  ;;  %810 = vrot.lane.b32.xlu0 %v801_v16, %s4404_s14  ;;  %v3924_v60 = vpop.eup %3923  ;;  %v3500_v50 = vmul.f32 -1.442695, %v928_v4 }
 0x1cf   :  { %3947 = vrcp.f32 %v374_v54  ;;  %630 = vrot.lane.b32.xlu1 %v621_v15, %s4404_s14  ;;  %v464_v20 = vadd.f32 1.0, %v3924_v60 }
 0x1d0   :  { %v3926_v62 = vpop.eup %3925  ;;  %3949 = vrcp.f32 %v392_v56 }
 0x1d1   :  { %v3928_v0 = vpop.eup %3927  ;;  %v572_v1 = vadd.f32 1.0, %v3926_v62  ;;  %3951 = vrcp.f32 %v428_v58 }
 0x1d2   :  { %v3930_v6 = vpop.eup %3929  ;;  %v590_v7 = vadd.f32 1.0, %v3928_v0  ;;  %3953 = vpow2.f32 %v3495_v48  ;;  %846 = vrot.lane.b32.xlu0 %v837_v41, %s4404_s14  ;;  %v910_v41 = vadd.f32 %v909_v22, %v4545_v38 }
 0x1d3   :  { %v3932_v10 = vpop.eup %3931  ;;  %3955 = vrcp.f32 %v572_v1  ;;  %v608_v11 = vadd.f32 1.0, %v3930_v6  ;;  %864 = vrot.lane.b32.xlu1 %v855_v31, %s4404_s14  ;;  %v676_v31 = vadd.f32 %v675_v14, %v4545_v38 }
 0x1d4   :  { %v3934_v15 = vpop.eup %3933  ;;  %3957 = vrcp.f32 %v590_v7  ;;  %v824_v16 = vadd.f32 1.0, %v3932_v10  ;;  %v3499_v52 = vmul.f32 -1.442695, %v910_v41 }
 0x1d5   :  { %v3936_v19 = vpop.eup %3935  ;;  %3959 = vrcp.f32 %v608_v11  ;;  %v626_v21 = vadd.f32 1.0, %v3934_v15  ;;  %v3487_v46 = vmul.f32 -1.442695, %v676_v31 }
 0x1d6   :  { %3961 = vrcp.f32 %v824_v16  ;;  %v806_v23 = vadd.f32 1.0, %v3936_v19  ;;  %648 = vrot.lane.b32.xlu0 %v639_v59, %s4404_s14  ;;  %v3938_v25 = vpop.eup %3937 }
 0x1d7   :  { %3963 = vrcp.f32 %v626_v21  ;;  %666 = vrot.lane.b32.xlu1 %v657_v57, %s4404_s14  ;;  %v860_v57 = vadd.f32 1.0, %v3938_v25 }
 0x1d8   :  { %v4645_v32 = vpop.eup %3939  ;;  %3965 = vrcp.f32 %v806_v23 }
 0x1d9   :  { %v4648_v39 = vpop.eup %3941  ;;  %3967 = vrcp.f32 %v464_v20 }
 0x1da   :  { %v4651_v42 = vpop.eup %3943  ;;  %3969 = vpow2.f32 %v3486_v24  ;;  %882 = vrot.lane.b32.xlu0 %v873_v63, %s4404_s14 }
 0x1db   :  { %v4654_v44 = vpop.eup %3945  ;;  %v365_v45 = vadd.f32 %v4651_v42, %v4645_v32  ;;  %3971 = vpow2.f32 %v3485_v26  ;;  %900 = vrot.lane.b32.xlu1 %v891_v61, %s4404_s14 }
 0x1dc   :  { %v4659_v49 = vpop.eup %3947  ;;  %3973 = vpow2.f32 %v3498_v37 }
 0x1dd   :  { %v4661_v47 = vpop.eup %3949  ;;  %v383_v51 = vadd.f32 %v4659_v49, %v365_v45  ;;  %3975 = vpow2.f32 %v3497_v40 }
 0x1de   :  { %v4664_v53 = vpop.eup %3951  ;;  %3977 = vpow2.f32 %v3488_v43  ;;  %684 = vrot.lane.b32.xlu0 %v675_v14, %s4404_s14 }
 0x1df   :  { %v3954_v54 = vpop.eup %3953  ;;  %v401_v55 = vadd.f32 %v4661_v47, %v383_v51  ;;  %702 = vrot.lane.b32.xlu1 %v693_v9, %s4404_s14  ;;  %3979 = vpow2.f32 %v3487_v46 }
 0x1e0   :  { %v4669_v56 = vpop.eup %3955  ;;  %v842_v58 = vadd.f32 1.0, %v3954_v54  ;;  %3981 = vpow2.f32 %v3500_v50 }
 0x1e1   :  { %v4671_v48 = vpop.eup %3957  ;;  %3983 = vpow2.f32 %v3499_v52  ;;  %v419_v59 = vadd.f32 %v4648_v39, %v401_v55 }
 0x1e2   :  { %v4674_v60 = vpop.eup %3959  ;;  %v599_v61 = vadd.f32 %v4671_v48, %v4669_v56  ;;  %3985 = vrcp.f32 %v842_v58  ;;  %918 = vrot.lane.b32.xlu0 %v909_v22, %s4404_s14 }
 0x1e3   :  { %v4679_v62 = vpop.eup %3961  ;;  %936 = vrot.lane.b32.xlu1 %v927_v18, %s4404_s14  ;;  %v437_v63 = vadd.f32 %v4664_v53, %v419_v59  ;;  %3987 = vrcp.f32 %v860_v57 }
 0x1e4   :  { %v4683_v0 = vpop.eup %3963  ;;  %v617_v1 = vadd.f32 %v4674_v60, %v599_v61 }
 0x1e5   :  { %v4686_v5 = vpop.eup %3965  ;;  %v455_v6 = vadd.f32 %v4654_v44, %v437_v63 }
 0x1e6   :  { %v4689_v7 = vpop.eup %3967  ;;  %v635_v8 = vadd.f32 %v4683_v0, %v617_v1  ;;  %v833_v9 = vadd.f32 %v4686_v5, %v4679_v62 }
 0x1e7   :  { %v3970_v10 = vpop.eup %3969  ;;  %v473_v11 = vadd.f32 %v4689_v7, %v455_v6 }
 0x1e8   :  { %v3972_v12 = vpop.eup %3971  ;;  %v662_v14 = vadd.f32 1.0, %v3970_v10 }
 0x1e9   :  { %v3974_v15 = vpop.eup %3973  ;;  %v644_v16 = vadd.f32 1.0, %v3972_v12 }
 0x1ea   :  { %v3976_v17 = vpop.eup %3975  ;;  %v896_v18 = vadd.f32 1.0, %v3974_v15 }
 0x1eb   :  { %v3978_v19 = vpop.eup %3977  ;;  %3989 = vrcp.f32 %v644_v16  ;;  %v878_v20 = vadd.f32 1.0, %v3976_v17  ;;  %v474_v17 = vadd.f32 1e-06, %v473_v11 }
 0x1ec   :  { %v3980_v21 = vpop.eup %3979  ;;  %3991 = vrcp.f32 %v662_v14  ;;  %v698_v22 = vadd.f32 1.0, %v3978_v19 }
 0x1ed   :  { %v3982_v23 = vpop.eup %3981  ;;  %3993 = vrcp.f32 %v878_v20  ;;  %v680_v24 = vadd.f32 1.0, %v3980_v21 }
 0x1ee   :  { %v3984_v3 = vpop.eup %3983  ;;  %3995 = vrcp.f32 %v896_v18  ;;  %v932_v26 = vadd.f32 1.0, %v3982_v23 }
 0x1ef   :  { %v4695_v25 = vpop.eup %3985  ;;  %3997 = vrcp.f32 %v680_v24  ;;  %v914_v31 = vadd.f32 1.0, %v3984_v3 }
 0x1f0   :  { %v851_v37 = vadd.f32 %v4695_v25, %v833_v9  ;;  %3999 = vrcp.f32 %v698_v22  ;;  %v4698_v4 = vpop.eup %3987 }
 0x1f1   :  { %4001 = vrcp.f32 %v914_v31 }
 0x1f2   :  { %v869_v40 = vadd.f32 %v4698_v4, %v851_v37  ;;  %4003 = vrcp.f32 %v932_v26 }
 0x1f3   :  { %4005 = vrcp.f32 %v474_v17 }
 0x1f8   :  { %v4701_v41 = vpop.eup %3989 }
 0x1f9   :  { %v4703_v43 = vpop.eup %3991  ;;  %v653_v45 = vadd.f32 %v4701_v41, %v635_v8 }
 0x1fa   :  { %v4706_v46 = vpop.eup %3993 }
 0x1fb   :  { %v4708_v50 = vpop.eup %3995  ;;  %v887_v51 = vadd.f32 %v4706_v46, %v869_v40  ;;  %v671_v52 = vadd.f32 %v4703_v43, %v653_v45 }
 0x1fc   :  { %v4712_v54 = vpop.eup %3997 }
 0x1fd   :  { %v4714_v55 = vpop.eup %3999  ;;  %v689_v57 = vadd.f32 %v4712_v54, %v671_v52  ;;  %v905_v58 = vadd.f32 %v4708_v50, %v887_v51 }
 0x1fe   :  { %v4718_v59 = vpop.eup %4001 }
 0x1ff   :  { %v707_v61 = vadd.f32 %v4714_v55, %v689_v57  ;;  %v923_v63 = vadd.f32 %v4718_v59, %v905_v58  ;;  %v4722_v1 = vpop.eup %4003 }
 0x201   :  { %v941_v6 = vadd.f32 %v4722_v1, %v923_v63 }
 0x228   :  { %v415_v8 = vpop.permute.xlu1 %414  ;;  %v343_v9 = vpop.permute.xlu0 %342 }
 0x229   :  { %v345_v14 = vmul.f32 %v4645_v32, %v343_v9  ;;  %v417_v32 = vmul.f32 %v4648_v39, %v415_v8  ;;  %v4006_v39 = vpop.eup %4005 }
 0x22c   :  { %v451_v10 = vpop.permute.xlu1 %450  ;;  %v361_v12 = vpop.permute.xlu0 %360 }
 0x22d   :  { %v363_v15 = vmul.f32 %v4651_v42, %v361_v12  ;;  %v453_v51 = vmul.f32 %v4654_v44, %v451_v10 }
 0x22f   :  { %v364_v16 = vadd.f32 %v363_v15, %v345_v14 }
 0x230   :  { %v379_v18 = vpop.permute.xlu0 %378 }
 0x231   :  { %v577_v19 = vpop.permute.xlu1 %576  ;;  %v381_v20 = vmul.f32 %v4659_v49, %v379_v18  ;;  %v708_v18 = vadd.f32 1e-06, %v707_v61 }
 0x232   :  { %v579_v3 = vmul.f32 %v4669_v56, %v577_v19 }
 0x233   :  { %v382_v21 = vadd.f32 %v381_v20, %v364_v16  ;;  %4007 = vrcp.f32 %v708_v18 }
 0x234   :  { %v397_v22 = vpop.permute.xlu0 %396 }
 0x235   :  { %v595_v23 = vpop.permute.xlu1 %594  ;;  %v399_v24 = vmul.f32 %v4661_v47, %v397_v22 }
 0x236   :  { %v597_v26 = vmul.f32 %v4671_v48, %v595_v23  ;;  %v942_v23 = vadd.f32 1e-06, %v941_v6 }
 0x237   :  { %v400_v31 = vadd.f32 %v399_v24, %v382_v21 }
 0x238   :  { %v598_v42 = vadd.f32 %v597_v26, %v579_v3  ;;  %v433_v37 = vpop.permute.xlu0 %432  ;;  %4009 = vrcp.f32 %v942_v23  ;;  %v1515_v23 = vld [vmem:[#allocation6 + $0xa0] sm:$0xff] }
 0x239   :  { %v613_v11 = vpop.permute.xlu1 %612  ;;  %v418_v40 = vadd.f32 %v417_v32, %v400_v31  ;;  %v435_v45 = vmul.f32 %v4664_v53, %v433_v37 }
 0x23a   :  { %v615_v49 = vmul.f32 %v4674_v60, %v613_v11 }
 0x23b   :  { %v436_v52 = vadd.f32 %v435_v45, %v418_v40 }
 0x23c   :  { %v616_v57 = vadd.f32 %v615_v49, %v598_v42  ;;  %v469_v47 = vpop.permute.xlu0 %468  ;;  %v478_v49 = vstv %s477_s19  ;;  %s5240_s19 = sld [smem:[#allocation8 + $0x8]] }
 0x23d   :  { %v454_v58 = vadd.f32 %v453_v51, %v436_v52  ;;  %v471_v56 = vmul.f32 %v4689_v7, %v469_v47  ;;  %v829_v48 = vpop.permute.xlu1 %828  ;;  %v1050_v47 = vld [vmem:[#allocation6 + $0x78] sm:$0xff] }
 0x23e   :  { %v831_v12 = vmul.f32 %v4679_v62, %v829_v48  ;;  %3768 = vmatpush3.msra.mxu0 %v1050_v47 }
 0x23f   :  { %v472_v63 = vadd.f32 %v471_v56, %v454_v58  ;;  %v963_v58 = vld [vmem:[#allocation2 + $0x30] sm:$0xff]  ;;  %3769 = vmatprep.subr.mxu0 %v4402_v2 }
 0x240   :  { %v811_v8 = vpop.permute.xlu0 %810  ;;  %v4008_v45 = vpop.eup %4007 }
 0x241   :  { %v476_v9 = vmul.f32 %v4006_v39, %v472_v63  ;;  %v631_v14 = vpop.permute.xlu1 %630  ;;  %v813_v53 = vmul.f32 %v4686_v5, %v811_v8  ;;  %v1049_v63 = vld [vmem:[#allocation6 + $0x70] sm:$0xff]  ;;  %v946_v8 = vstv %s4746_s21 }
 0x242   :  { %v633_v60 = vmul.f32 %v4683_v0, %v631_v14  ;;  %3770 = vmatpush3.msra.mxu0 %v1049_v63 }
 0x243   :  { %v832_v15 = vadd.f32 %v831_v12, %v813_v53  ;;  %v479_v56 = vmul.f32 %v478_v49, %v476_v9  ;;  %v1048_v12 = vld [vmem:[#allocation6 + $0x68] sm:$0xff]  ;;  %3771 = vmatprep.subr.mxu0 %v4402_v2  ;;  %v3518_v49 = vld [vmem:[%s5520_s6 + $0x4] ss:$0 sm:$0xff] }
 0x244   :  { %v634_v44 = vadd.f32 %v633_v60, %v616_v57  ;;  %v847_v10 = vpop.permute.xlu0 %846  ;;  %3772 = vmatpush3.msra.mxu0 %v1048_v12  ;;  %v961_v60 = vld [vmem:[#allocation2 + $0x20] sm:$0xff] }
 0x245   :  { %v865_v16 = vpop.permute.xlu1 %864  ;;  %v849_v17 = vmul.f32 %v4695_v25, %v847_v10  ;;  %v4010_v39 = vpop.eup %4009  ;;  %3773 = vmatprep.subr.mxu0 %v4402_v2 }
 0x246   :  { %v867_v7 = vmul.f32 %v4698_v4, %v865_v16 }
 0x247   :  { %v850_v19 = vadd.f32 %v849_v17, %v832_v15  ;;  %v1047_v15 = vld [vmem:[#allocation6 + $0x60] sm:$0xff] }
 0x248   :  { %v649_v20 = vpop.permute.xlu0 %648  ;;  %3774 = vmatpush3.msra.mxu0 %v1047_v15 }
 0x249   :  { %v667_v21 = vpop.permute.xlu1 %666  ;;  %v651_v22 = vmul.f32 %v4701_v41, %v649_v20  ;;  %v868_v62 = vadd.f32 %v867_v7, %v850_v19  ;;  %3789 = vmatprep.subr.mxu0 %v4402_v2  ;;  %v1284_v7 = vld [vmem:[#allocation6 + $0x98] sm:$0xff]  ;;  %v1283_v20 = vld [vmem:[#allocation6 + $0x90] sm:$0xff] }
 0x24a   :  { %v669_v5 = vmul.f32 %v4703_v43, %v667_v21  ;;  %v1518_v19 = vld [vmem:[#allocation6 + $0xb8] sm:$0xff]  ;;  %v1517_v21 = vld [vmem:[#allocation6 + $0xb0] sm:$0xff] }
 0x24b   :  { %v652_v0 = vadd.f32 %v651_v22, %v634_v44  ;;  %v1516_v22 = vld [vmem:[#allocation6 + $0xa8] sm:$0xff] }
 0x24c   :  { %v883_v24 = vpop.permute.xlu0 %882 }
 0x24d   :  { %v901_v3 = vpop.permute.xlu1 %900  ;;  %v885_v26 = vmul.f32 %v4706_v46, %v883_v24  ;;  %v670_v25 = vadd.f32 %v669_v5, %v652_v0  ;;  %v3506_v5 = vld [vmem:[%s5520_s6 + $0x3] ss:$0 sm:$0xff]  ;;  %v3503_v0 = vld [vmem:[%s5518_s4 + $0x1] ss:$0 sm:$0xff] }
 0x24e   :  { %v903_v4 = vmul.f32 %v4708_v50, %v901_v3  ;;  %v712_v50 = vstv %s3489_s20 }
 0x24f   :  { %v886_v61 = vadd.f32 %v885_v26, %v868_v62  ;;  %v1281_v62 = vld [vmem:[#allocation6 + $0x80] sm:$0xff] }
 0x250   :  { %v685_v32 = vpop.permute.xlu0 %684 }
 0x251   :  { %v703_v31 = vpop.permute.xlu1 %702  ;;  %v687_v41 = vmul.f32 %v4712_v54, %v685_v32  ;;  %v904_v42 = vadd.f32 %v903_v4, %v886_v61  ;;  %v964_v54 = vld [vmem:[#allocation2 + $0x38] sm:$0xff] }
 0x252   :  { %v705_v43 = vmul.f32 %v4714_v55, %v703_v31  ;;  %3757 = vmatpush3.msra.mxu1 %v964_v54 }
 0x253   :  { %v688_v6 = vadd.f32 %v687_v41, %v670_v25  ;;  %3758 = vmatprep.subr.mxu1 %v4402_v2 }
 0x254   :  { %v919_v37 = vpop.permute.xlu0 %918  ;;  %3759 = vmatpush3.msra.mxu1 %v963_v58 }
 0x255   :  { %v706_v11 = vadd.f32 %v705_v43, %v688_v6  ;;  %v937_v40 = vpop.permute.xlu1 %936  ;;  %v921_v46 = vmul.f32 %v4718_v59, %v919_v37  ;;  %v962_v59 = vld [vmem:[#allocation2 + $0x28] sm:$0xff]  ;;  %3760 = vmatprep.subr.mxu1 %v4402_v2 }
 0x256   :  { %v939_v52 = vmul.f32 %v4722_v1, %v937_v40  ;;  %3761 = vmatpush3.msra.mxu1 %v962_v59 }
 0x257   :  { %v710_v51 = vmul.f32 %v4008_v45, %v706_v11  ;;  %v922_v57 = vadd.f32 %v921_v46, %v904_v42  ;;  %3762 = vmatprep.subr.mxu1 %v4402_v2 }
 0x258   :  { %3763 = vmatpush3.msra.mxu1 %v961_v60 }
 0x259   :  { %v940_v48 = vadd.f32 %v939_v52, %v922_v57  ;;  %v713_v55 = vmul.f32 %v712_v50, %v710_v51  ;;  %3778 = vmatprep.subr.mxu1 %v4402_v2  ;;  %v3530_v50 = vld [vmem:[%s5520_s6 + $0x5] ss:$0 sm:$0xff] }
 0x25b   :  { %v944_v14 = vmul.f32 %v4010_v39, %v940_v48  ;;  %v714_v1 = vadd.f32 %v713_v55, %v479_v56 }
 0x25d   :  { %v947_v9 = vmul.f32 %v946_v8, %v944_v14 }
 0x25f   :  { %v948_v53 = vadd.f32 %v947_v9, %v714_v1 }
 0x261   :  { %950 = vrot.lane.b32.xlu0 %v948_v53, %s4405_s22 }
 0x2d3   :  { %v951_v44 = vpop.permute.xlu0 %950 }
 0x2d4   :  { %v953_v10 = vadd.f32 %v951_v44, %v4545_v38  ;;  %v1282_v38 = vld [vmem:[#allocation6 + $0x88] sm:$0xff] }
 0x2d6   :  { %v954_v16 = vmax.f32 %v953_v10, 0.0 }
 0x2d8   :  { %956 = vrot.lane.b32.xlu1 %v954_v16, %s4404_s14 }
 0x34a   :  { %v957_v17 = vpop.permute.xlu1 %956 }
 0x34b   :  { %v4764_v18 = vadd.f32 %v957_v17, %v4497_v13 }
 0x34d   :  { %3765 = vmatmul.mubr.msk.f32.vlgmr.msra.gmra.mxu1 %vm175_vm3, %v4764_v18  ;;  %3776 = vmatmul.mubr.msk.f32.vlgmr.msra.gmra.mxu0 %vm175_vm3, %v4764_v18 }
 0x34e   :  { %3779 = vmatpush3.msra.mxu1 %v1284_v7  ;;  %3790 = vmatpush3.msra.mxu0 %v1518_v19 }
 0x34f   :  { %3780 = vmatprep.subr.mxu1 %v4402_v2  ;;  %3791 = vmatprep.subr.mxu0 %v4402_v2 }
 0x350   :  { %3781 = vmatpush3.msra.mxu1 %v1283_v20  ;;  %3792 = vmatpush3.msra.mxu0 %v1517_v21 }
 0x351   :  { %3782 = vmatprep.subr.mxu1 %v4402_v2  ;;  %3793 = vmatprep.subr.mxu0 %v4402_v2 }
 0x352   :  { %3783 = vmatpush3.msra.mxu1 %v1282_v38  ;;  %3794 = vmatpush3.msra.mxu0 %v1516_v22 }
 0x353   :  { %3784 = vmatprep.subr.mxu1 %v4402_v2  ;;  %3795 = vmatprep.subr.mxu0 %v4402_v2 }
 0x354   :  { %3785 = vmatpush3.msra.mxu1 %v1281_v62  ;;  %3786 = vmatprep.mubr.msk.f32.mxu1 %vm4403_vm1, %v4402_v2 }
 0x355   :  { %3796 = vmatpush3.msra.mxu0 %v1515_v23  ;;  %3797 = vmatprep.mubr.msk.f32.mxu0 %vm4403_vm1, %v4402_v2 }
 0x356   :  { %3787 = vmatmul.mubr.msk.f32.vlgmr.msra.gmra.mxu1 %vm175_vm3, %v4497_v13  ;;  %3798 = vmatmul.mubr.msk.f32.vlgmr.msra.gmra.mxu0 %vm175_vm3, %v4497_v13 }
 0x357   :  { %3800 = vmatprep.subr.mxu1 %v4402_v2  ;;  %3811 = vmatprep.subr.mxu0 %v4402_v2 }
 0x358   :  { %3808 = vmatprep.mubr.msk.f32.mxu1 %vm4403_vm1, %v4402_v2  ;;  %3819 = vmatprep.mubr.msk.f32.mxu0 %vm4403_vm1, %v4402_v2 }
 0x40d   :  { %v1042_v24 = vpop.f32.mrf.mxu1  ;;  %v1125_v3 = vpop.f32.mrf.mxu0 }
 0x40e   :  { %v1126_v26 = vadd.f32 %v3506_v5, %v1125_v3  ;;  %v4796_v25 = vadd.f32 %v3503_v0, %v1042_v24 }
 0x40f   :  { %v3766_v4 = vpop.f32.mrf.mxu1  ;;  %v3777_v61 = vpop.f32.mrf.mxu0 }
 0x410   :  { %v1150_v32 = vrot.slane %v1126_v26, %v4535_v30  ;;  %v1132_v31 = vrot.slane %v1126_v26, %v4531_v28  ;;  %v1204_v41 = vrot.slane %v1126_v26, %v4529_v27  ;;  %v1168_v42 = vrot.slane %v1126_v26, %v4537_v33 }
 0x411   :  { %v1240_v43 = vrot.slane %v1126_v26, %v4533_v29  ;;  %v1186_v6 = vrot.slane %v1126_v26, %v4539_v34  ;;  %v1222_v37 = vrot.slane %v1126_v26, %v4541_v35  ;;  %v4806_v11 = vrot.slane %v1126_v26, %v4543_v36 }
 0x412   :  { %1159 = vrot.lane.b32.xlu1 %v1150_v32, %s4404_s14  ;;  %v1151_v40 = vadd.f32 %v1150_v32, %v4796_v25  ;;  %1141 = vrot.lane.b32.xlu0 %v1132_v31, %s4404_s14  ;;  %v1133_v46 = vadd.f32 %v1132_v31, %v4796_v25  ;;  %v1205_v45 = vadd.f32 %v1204_v41, %v4796_v25 }
 0x413   :  { %v1169_v51 = vadd.f32 %v1168_v42, %v4796_v25  ;;  %v1241_v52 = vadd.f32 %v1240_v43, %v4796_v25  ;;  %v1187_v57 = vadd.f32 %v1186_v6, %v4796_v25  ;;  %v1223_v54 = vadd.f32 %v1222_v37, %v4796_v25 }
 0x414   :  { %v3509_v47 = vmul.f32 -1.442695, %v1151_v40  ;;  %v3508_v58 = vmul.f32 -1.442695, %v1133_v46  ;;  %v3512_v56 = vmul.f32 -1.442695, %v1205_v45  ;;  %v1259_v48 = vadd.f32 %v4806_v11, %v4796_v25 }
 0x415   :  { %v3510_v55 = vmul.f32 -1.442695, %v1169_v51  ;;  %v3514_v8 = vmul.f32 -1.442695, %v1241_v52  ;;  %v3511_v14 = vmul.f32 -1.442695, %v1187_v57 }
 0x416   :  { %4011 = vpow2.f32 %v3509_v47  ;;  %v1359_v63 = vpop.f32.mrf.mxu1  ;;  %v1593_v39 = vpop.f32.mrf.mxu0  ;;  %1213 = vrot.lane.b32.xlu1 %v1204_v41, %s4404_s14  ;;  %1177 = vrot.lane.b32.xlu0 %v1168_v42, %s4404_s14  ;;  %v3513_v53 = vmul.f32 -1.442695, %v1223_v54  ;;  %v3515_v60 = vmul.f32 -1.442695, %v1259_v48 }
 0x417   :  { %4013 = vpow2.f32 %v3508_v58  ;;  %v4827_v59 = vadd.f32 %v3518_v49, %v1359_v63  ;;  %v4829_v12 = vadd.f32 %v3530_v50, %v1593_v39 }
 0x418   :  { %v3788_v1 = vpop.f32.mrf.mxu1  ;;  %4015 = vpow2.f32 %v3512_v56  ;;  %v3799_v9 = vpop.f32.mrf.mxu0 }
 0x419   :  { %4017 = vpow2.f32 %v3510_v55  ;;  %v1384_v15 = vrot.slane %v4827_v59, %v4535_v30  ;;  %v1402_v44 = vrot.slane %v4827_v59, %v4537_v33  ;;  %v1366_v10 = vrot.slane %v4827_v59, %v4531_v28 }
 0x41a   :  { %4019 = vpow2.f32 %v3514_v8  ;;  %1249 = vrot.lane.b32.xlu1 %v1240_v43, %s4404_s14  ;;  %1195 = vrot.lane.b32.xlu0 %v1186_v6, %s4404_s14  ;;  %v1618_v16 = vrot.slane %v4829_v12, %v4535_v30  ;;  %v1420_v17 = vrot.slane %v4827_v59, %v4539_v34  ;;  %v1600_v7 = vrot.slane %v4829_v12, %v4531_v28 }
 0x41b   :  { %4021 = vpow2.f32 %v3511_v14  ;;  %v1385_v19 = vadd.f32 %v1384_v15, %v4796_v25  ;;  %v1403_v20 = vadd.f32 %v1402_v44, %v4796_v25  ;;  %v1367_v21 = vadd.f32 %v1366_v10, %v4796_v25 }
 0x41c   :  { %4023 = vpow2.f32 %v3513_v53  ;;  %v1619_v38 = vadd.f32 %v1618_v16, %v4796_v25  ;;  %v1421_v22 = vadd.f32 %v1420_v17, %v4796_v25  ;;  %v1601_v62 = vadd.f32 %v1600_v7, %v4796_v25 }
 0x41d   :  { %v3521_v23 = vmul.f32 -1.442695, %v1385_v19  ;;  %v3522_v5 = vmul.f32 -1.442695, %v1403_v20  ;;  %4025 = vpow2.f32 %v3515_v60  ;;  %v3520_v0 = vmul.f32 -1.442695, %v1367_v21 }
 0x41e   :  { %1393 = vrot.lane.b32.xlu1 %v1384_v15, %s4404_s14  ;;  %1231 = vrot.lane.b32.xlu0 %v1222_v37, %s4404_s14  ;;  %v3533_v24 = vmul.f32 -1.442695, %v1619_v38  ;;  %v1654_v3 = vrot.slane %v4829_v12, %v4539_v34  ;;  %v3523_v26 = vmul.f32 -1.442695, %v1421_v22  ;;  %v3532_v4 = vmul.f32 -1.442695, %v1601_v62 }
 0x41f   :  { %4027 = vpow2.f32 %v3521_v23  ;;  %v1636_v32 = vrot.slane %v4829_v12, %v4537_v33  ;;  %v1456_v54 = vrot.slane %v4827_v59, %v4541_v35  ;;  %v1438_v48 = vrot.slane %v4827_v59, %v4529_v27 }
 0x420   :  { %4029 = vpow2.f32 %v3522_v5  ;;  %v1655_v61 = vadd.f32 %v1654_v3, %v4796_v25  ;;  %v1690_v39 = vrot.slane %v4829_v12, %v4541_v35  ;;  %v1672_v1 = vrot.slane %v4829_v12, %v4529_v27 }
 0x421   :  { %4031 = vpow2.f32 %v3520_v0  ;;  %v1457_v53 = vadd.f32 %v1456_v54, %v4796_v25  ;;  %v1439_v60 = vadd.f32 %v1438_v48, %v4796_v25  ;;  %v1492_v15 = vrot.slane %v4827_v59, %v4543_v36 }
 0x422   :  { %1411 = vrot.lane.b32.xlu1 %v1402_v44, %s4404_s14  ;;  %1267 = vrot.lane.b32.xlu0 %v4806_v11, %s4404_s14  ;;  %4033 = vpow2.f32 %v3533_v24  ;;  %v3535_v43 = vmul.f32 -1.442695, %v1655_v61  ;;  %v1637_v11 = vadd.f32 %v1636_v32, %v4796_v25  ;;  %v1691_v20 = vadd.f32 %v1690_v39, %v4796_v25 }
 0x423   :  { %v4012_v31 = vpop.eup %4011  ;;  %4035 = vpow2.f32 %v3523_v26  ;;  %v1726_v21 = vrot.slane %v4829_v12, %v4543_v36  ;;  %v1673_v62 = vadd.f32 %v1672_v1, %v4796_v25  ;;  %v1708_v23 = vrot.slane %v4829_v12, %v4533_v29 }
 0x424   :  { %v4014_v41 = vpop.eup %4013  ;;  %v1155_v42 = vadd.f32 1.0, %v4012_v31  ;;  %4037 = vpow2.f32 %v3532_v4  ;;  %v3534_v56 = vmul.f32 -1.442695, %v1637_v11  ;;  %v3525_v0 = vmul.f32 -1.442695, %v1457_v53 }
 0x425   :  { %v4016_v6 = vpop.eup %4015  ;;  %v1137_v37 = vadd.f32 1.0, %v4014_v41  ;;  %v3537_v61 = vmul.f32 -1.442695, %v1691_v20  ;;  %v1727_v12 = vadd.f32 %v1726_v21, %v4796_v25  ;;  %v3536_v41 = vmul.f32 -1.442695, %v1673_v62 }
 0x426   :  { %v4018_v40 = vpop.eup %4017  ;;  %4039 = vrcp.f32 %v1155_v42  ;;  %v1209_v46 = vadd.f32 1.0, %v4016_v6  ;;  %1375 = vrot.lane.b32.xlu0 %v1366_v10, %s4404_s14  ;;  %1627 = vrot.lane.b32.xlu1 %v1618_v16, %s4404_s14  ;;  %v1709_v42 = vadd.f32 %v1708_v23, %v4796_v25 }
 0x427   :  { %v4020_v45 = vpop.eup %4019  ;;  %4041 = vrcp.f32 %v1137_v37  ;;  %v1173_v49 = vadd.f32 1.0, %v4018_v40 }
 0x428   :  { %v4022_v50 = vpop.eup %4021  ;;  %v1245_v51 = vadd.f32 1.0, %v4020_v45  ;;  %4043 = vpow2.f32 %v3535_v43  ;;  %v3539_v45 = vmul.f32 -1.442695, %v1727_v12 }
 0x429   :  { %v4024_v52 = vpop.eup %4023  ;;  %4045 = vrcp.f32 %v1173_v49  ;;  %v1191_v57 = vadd.f32 1.0, %v4022_v50 }
 0x42a   :  { %v4026_v47 = vpop.eup %4025  ;;  %4047 = vrcp.f32 %v1209_v46  ;;  %v1227_v58 = vadd.f32 1.0, %v4024_v52  ;;  %1429 = vrot.lane.b32.xlu1 %v1420_v17, %s4404_s14  ;;  %1609 = vrot.lane.b32.xlu0 %v1600_v7, %s4404_s14  ;;  %v1474_v17 = vrot.slane %v4827_v59, %v4533_v29  ;;  %v1493_v59 = vadd.f32 %v1492_v15, %v4796_v25 }
 0x42b   :  { %4049 = vrcp.f32 %v1191_v57  ;;  %v1263_v63 = vadd.f32 1.0, %v4026_v47 }
 0x42c   :  { %v4028_v55 = vpop.eup %4027  ;;  %4051 = vrcp.f32 %v1245_v51  ;;  %v1475_v26 = vadd.f32 %v1474_v17, %v4796_v25  ;;  %v3527_v6 = vmul.f32 -1.442695, %v1493_v59  ;;  %v3538_v51 = vmul.f32 -1.442695, %v1709_v42 }
 0x42d   :  { %v4030_v8 = vpop.eup %4029  ;;  %v1389_v14 = vadd.f32 1.0, %v4028_v55  ;;  %4053 = vrcp.f32 %v1227_v58 }
 0x42e   :  { %v4032_v9 = vpop.eup %4031  ;;  %1663 = vrot.lane.b32.xlu1 %v1654_v3, %s4404_s14  ;;  %4055 = vpow2.f32 %v3534_v56  ;;  %1645 = vrot.lane.b32.xlu0 %v1636_v32, %s4404_s14  ;;  %v1407_v10 = vadd.f32 1.0, %v4030_v8  ;;  %v3524_v3 = vmul.f32 -1.442695, %v1439_v60  ;;  %v3526_v46 = vmul.f32 -1.442695, %v1475_v26 }
 0x42f   :  { %v4034_v44 = vpop.eup %4033  ;;  %4057 = vrcp.f32 %v1389_v14  ;;  %v1371_v16 = vadd.f32 1.0, %v4032_v9 }
 0x430   :  { %v4036_v7 = vpop.eup %4035  ;;  %4059 = vrcp.f32 %v1263_v63  ;;  %v1623_v19 = vadd.f32 1.0, %v4034_v44 }
 0x431   :  { %v4038_v38 = vpop.eup %4037  ;;  %4061 = vrcp.f32 %v1371_v16  ;;  %v1425_v22 = vadd.f32 1.0, %v4036_v7 }
 0x432   :  { %4063 = vrcp.f32 %v1623_v19  ;;  %v1605_v5 = vadd.f32 1.0, %v4038_v38  ;;  %1465 = vrot.lane.b32.xlu1 %v1456_v54, %s4404_s14  ;;  %1447 = vrot.lane.b32.xlu0 %v1438_v48, %s4404_s14 }
 0x433   :  { %v4891_v24 = vpop.eup %4039  ;;  %4065 = vrcp.f32 %v1407_v10 }
 0x434   :  { %v4894_v4 = vpop.eup %4041  ;;  %4067 = vrcp.f32 %v1605_v5 }
 0x435   :  { %v4044_v32 = vpop.eup %4043  ;;  %v1164_v31 = vadd.f32 %v4894_v4, %v4891_v24  ;;  %4069 = vrcp.f32 %v1425_v22 }
 0x436   :  { %v4900_v43 = vpop.eup %4045  ;;  %4071 = vpow2.f32 %v3525_v0  ;;  %1699 = vrot.lane.b32.xlu1 %v1690_v39, %s4404_s14  ;;  %1681 = vrot.lane.b32.xlu0 %v1672_v1, %s4404_s14  ;;  %v1659_v58 = vadd.f32 1.0, %v4044_v32 }
 0x437   :  { %v4904_v37 = vpop.eup %4047  ;;  %v1182_v40 = vadd.f32 %v4900_v43, %v1164_v31  ;;  %4073 = vpow2.f32 %v3524_v3 }
 0x438   :  { %v4907_v11 = vpop.eup %4049  ;;  %4075 = vpow2.f32 %v3537_v61 }
 0x439   :  { %v4909_v49 = vpop.eup %4051  ;;  %v1200_v50 = vadd.f32 %v4907_v11, %v1182_v40  ;;  %4077 = vpow2.f32 %v3536_v41 }
 0x43a   :  { %v4912_v52 = vpop.eup %4053  ;;  %4079 = vpow2.f32 %v3527_v6  ;;  %1501 = vrot.lane.b32.xlu1 %v1492_v15, %s4404_s14  ;;  %1483 = vrot.lane.b32.xlu0 %v1474_v17, %s4404_s14 }
 0x43b   :  { %v4056_v57 = vpop.eup %4055  ;;  %4081 = vpow2.f32 %v3526_v46  ;;  %v1218_v54 = vadd.f32 %v4904_v37, %v1200_v50 }
 0x43c   :  { %v4917_v47 = vpop.eup %4057  ;;  %v1641_v56 = vadd.f32 1.0, %v4056_v57  ;;  %4083 = vpow2.f32 %v3539_v45 }
 0x43d   :  { %v4919_v48 = vpop.eup %4059  ;;  %4085 = vpow2.f32 %v3538_v51  ;;  %v1236_v55 = vadd.f32 %v4912_v52, %v1218_v54 }
 0x43e   :  { %v4922_v63 = vpop.eup %4061  ;;  %4087 = vrcp.f32 %v1641_v56  ;;  %1735 = vrot.lane.b32.xlu1 %v1726_v21, %s4404_s14  ;;  %1717 = vrot.lane.b32.xlu0 %v1708_v23, %s4404_s14 }
 0x43f   :  { %v4926_v39 = vpop.eup %4063  ;;  %v1398_v8 = vadd.f32 %v4922_v63, %v4917_v47  ;;  %v1254_v14 = vadd.f32 %v4909_v49, %v1236_v55  ;;  %4089 = vrcp.f32 %v1659_v58 }
 0x440   :  { %v4931_v1 = vpop.eup %4065 }
 0x441   :  { %v4933_v9 = vpop.eup %4067  ;;  %v1416_v53 = vadd.f32 %v4931_v1, %v1398_v8  ;;  %v1272_v60 = vadd.f32 %v4919_v48, %v1254_v14 }
 0x442   :  { %v4937_v15 = vpop.eup %4069  ;;  %v1632_v44 = vadd.f32 %v4933_v9, %v4926_v39 }
 0x443   :  { %v4072_v10 = vpop.eup %4071  ;;  %v1434_v16 = vadd.f32 %v4937_v15, %v1416_v53 }
 0x444   :  { %v4074_v17 = vpop.eup %4073  ;;  %v1461_v7 = vadd.f32 1.0, %v4072_v10 }
 0x445   :  { %v4076_v19 = vpop.eup %4075  ;;  %v1443_v20 = vadd.f32 1.0, %v4074_v17 }
 0x446   :  { %v4078_v21 = vpop.eup %4077  ;;  %v1695_v38 = vadd.f32 1.0, %v4076_v19 }
 0x447   :  { %v4080_v22 = vpop.eup %4079  ;;  %4091 = vrcp.f32 %v1443_v20  ;;  %v1677_v62 = vadd.f32 1.0, %v4078_v21  ;;  %v1273_v20 = vadd.f32 1e-06, %v1272_v60 }
 0x448   :  { %v4082_v23 = vpop.eup %4081  ;;  %4093 = vrcp.f32 %v1461_v7  ;;  %v1497_v5 = vadd.f32 1.0, %v4080_v22 }
 0x449   :  { %v4084_v0 = vpop.eup %4083  ;;  %4095 = vrcp.f32 %v1677_v62  ;;  %v1479_v59 = vadd.f32 1.0, %v4082_v23 }
 0x44a   :  { %v4086_v3 = vpop.eup %4085  ;;  %4097 = vrcp.f32 %v1695_v38  ;;  %v1731_v61 = vadd.f32 1.0, %v4084_v0 }
 0x44b   :  { %v4942_v26 = vpop.eup %4087  ;;  %4099 = vrcp.f32 %v1479_v59  ;;  %v1713_v12 = vadd.f32 1.0, %v4086_v3 }
 0x44c   :  { %v1650_v32 = vadd.f32 %v4942_v26, %v1632_v44  ;;  %4101 = vrcp.f32 %v1497_v5  ;;  %v4945_v31 = vpop.eup %4089 }
 0x44d   :  { %4103 = vrcp.f32 %v1713_v12 }
 0x44e   :  { %v1668_v41 = vadd.f32 %v4945_v31, %v1650_v32  ;;  %4105 = vrcp.f32 %v1731_v61 }
 0x44f   :  { %4107 = vrcp.f32 %v1273_v20 }
 0x454   :  { %v4948_v42 = vpop.eup %4091 }
 0x455   :  { %v4950_v6 = vpop.eup %4093  ;;  %v1452_v40 = vadd.f32 %v4948_v42, %v1434_v16 }
 0x456   :  { %v4953_v46 = vpop.eup %4095 }
 0x457   :  { %v4955_v45 = vpop.eup %4097  ;;  %v1686_v50 = vadd.f32 %v4953_v46, %v1668_v41  ;;  %v1470_v51 = vadd.f32 %v4950_v6, %v1452_v40 }
 0x458   :  { %v4959_v57 = vpop.eup %4099 }
 0x459   :  { %v4961_v54 = vpop.eup %4101  ;;  %v1488_v58 = vadd.f32 %v4959_v57, %v1470_v51  ;;  %v1704_v56 = vadd.f32 %v4955_v45, %v1686_v50 }
 0x45a   :  { %v4965_v55 = vpop.eup %4103 }
 0x45b   :  { %v1506_v8 = vadd.f32 %v4961_v54, %v1488_v58  ;;  %v1722_v14 = vadd.f32 %v4965_v55, %v1704_v56  ;;  %v4969_v53 = vpop.eup %4105 }
 0x45c   :  { %v4108_v58 = vpop.eup %4107 }
 0x45d   :  { %v1740_v44 = vadd.f32 %v4969_v53, %v1722_v14 }
 0x484   :  { %v1160_v10 = vpop.permute.xlu1 %1159  ;;  %v1142_v16 = vpop.permute.xlu0 %1141 }
 0x485   :  { %v1162_v17 = vmul.f32 %v4891_v24, %v1160_v10  ;;  %v1144_v7 = vmul.f32 %v4894_v4, %v1142_v16 }
 0x487   :  { %v1163_v19 = vadd.f32 %v1162_v17, %v1144_v7 }
 0x488   :  { %v1214_v21 = vpop.permute.xlu1 %1213  ;;  %v1178_v38 = vpop.permute.xlu0 %1177 }
 0x489   :  { %v1180_v22 = vmul.f32 %v4900_v43, %v1178_v38  ;;  %v1216_v59 = vmul.f32 %v4904_v37, %v1214_v21 }
 0x48b   :  { %v1181_v62 = vadd.f32 %v1180_v22, %v1163_v19 }
 0x48c   :  { %v1250_v23 = vpop.permute.xlu1 %1249  ;;  %v1196_v5 = vpop.permute.xlu0 %1195 }
 0x48d   :  { %v1198_v0 = vmul.f32 %v4907_v11, %v1196_v5  ;;  %v1252_v60 = vmul.f32 %v4909_v49, %v1250_v23  ;;  %v1507_v23 = vadd.f32 1e-06, %v1506_v8 }
 0x48f   :  { %v1199_v3 = vadd.f32 %v1198_v0, %v1181_v62  ;;  %4109 = vrcp.f32 %v1507_v23 }
 0x490   :  { %v1394_v61 = vpop.permute.xlu1 %1393  ;;  %v1232_v12 = vpop.permute.xlu0 %1231 }
 0x491   :  { %v1217_v24 = vadd.f32 %v1216_v59, %v1199_v3  ;;  %v1234_v4 = vmul.f32 %v4912_v52, %v1232_v12  ;;  %v1396_v37 = vmul.f32 %v4917_v47, %v1394_v61  ;;  %v1741_v3 = vadd.f32 1e-06, %v1740_v44 }
 0x493   :  { %v1235_v32 = vadd.f32 %v1234_v4, %v1217_v24  ;;  %4111 = vrcp.f32 %v1741_v3  ;;  %v2080_v3 = vld [vmem:[#allocation6 + $0xe0] sm:$0xff] }
 0x494   :  { %v1412_v41 = vpop.permute.xlu1 %1411  ;;  %v1268_v40 = vpop.permute.xlu0 %1267 }
 0x495   :  { %v1253_v43 = vadd.f32 %v1252_v60, %v1235_v32  ;;  %v1270_v50 = vmul.f32 %v4919_v48, %v1268_v40  ;;  %v1414_v16 = vmul.f32 %v4931_v1, %v1412_v41 }
 0x497   :  { %v1271_v51 = vadd.f32 %v1270_v50, %v1253_v43 }
 0x498   :  { %v1376_v56 = vpop.permute.xlu0 %1375  ;;  %v1628_v11 = vpop.permute.xlu1 %1627 }
 0x499   :  { %v1275_v14 = vmul.f32 %v4108_v58, %v1271_v51  ;;  %v1378_v10 = vmul.f32 %v4922_v63, %v1376_v56  ;;  %v1630_v7 = vmul.f32 %v4926_v39, %v1628_v11  ;;  %v1277_v51 = vstv %s3516_s29 }
 0x49b   :  { %v1397_v52 = vadd.f32 %v1396_v37, %v1378_v10  ;;  %v1849_v37 = vld [vmem:[#allocation6 + $0xd8] sm:$0xff]  ;;  %v1762_v10 = vld [vmem:[#allocation2 + $0x50] sm:$0xff] }
 0x49c   :  { %v1430_v17 = vpop.permute.xlu1 %1429  ;;  %v1610_v49 = vpop.permute.xlu0 %1609  ;;  %3812 = vmatpush3.msra.mxu0 %v1849_v37 }
 0x49d   :  { %v1415_v19 = vadd.f32 %v1414_v16, %v1397_v52  ;;  %v1432_v20 = vmul.f32 %v4937_v15, %v1430_v17  ;;  %v1612_v48 = vmul.f32 %v4933_v9, %v1610_v49  ;;  %v4110_v50 = vpop.eup %4109  ;;  %v1278_v16 = vmul.f32 %v1277_v51, %v1275_v14  ;;  %v1848_v17 = vld [vmem:[#allocation6 + $0xd0] sm:$0xff]  ;;  %3813 = vmatprep.subr.mxu0 %v4402_v2  ;;  %v3557_v51 = vld [vmem:[%s5520_s6 + $0x7] ss:$0 sm:$0xff] }
 0x49e   :  { %3814 = vmatpush3.msra.mxu0 %v1848_v17 }
 0x49f   :  { %v1433_v21 = vadd.f32 %v1432_v20, %v1415_v19  ;;  %v1631_v38 = vadd.f32 %v1630_v7, %v1612_v48  ;;  %v1745_v7 = vstv %s4993_s30  ;;  %v1847_v19 = vld [vmem:[#allocation6 + $0xc8] sm:$0xff]  ;;  %3815 = vmatprep.subr.mxu0 %v4402_v2 }
 0x4a0   :  { %v1664_v22 = vpop.permute.xlu1 %1663  ;;  %v1646_v62 = vpop.permute.xlu0 %1645  ;;  %3816 = vmatpush3.msra.mxu0 %v1847_v19 }
 0x4a1   :  { %v1648_v47 = vmul.f32 %v4942_v26, %v1646_v62  ;;  %v1666_v63 = vmul.f32 %v4945_v31, %v1664_v22  ;;  %v4112_v49 = vpop.eup %4111  ;;  %3817 = vmatprep.subr.mxu0 %v4402_v2 }
 0x4a3   :  { %v1649_v1 = vadd.f32 %v1648_v47, %v1631_v38  ;;  %v1846_v38 = vld [vmem:[#allocation6 + $0xc0] sm:$0xff] }
 0x4a4   :  { %v1466_v5 = vpop.permute.xlu1 %1465  ;;  %v1448_v0 = vpop.permute.xlu0 %1447  ;;  %3818 = vmatpush3.msra.mxu0 %v1846_v38 }
 0x4a5   :  { %v1450_v59 = vmul.f32 %v4948_v42, %v1448_v0  ;;  %v1667_v39 = vadd.f32 %v1666_v63, %v1649_v1  ;;  %v1468_v15 = vmul.f32 %v4950_v6, %v1466_v5  ;;  %3833 = vmatprep.subr.mxu0 %v4402_v2  ;;  %v2083_v1 = vld [vmem:[#allocation6 + $0xf8] sm:$0xff]  ;;  %v2082_v0 = vld [vmem:[#allocation6 + $0xf0] sm:$0xff] }
 0x4a6   :  { %v2317_v5 = vld [vmem:[#allocation6 + $0x118] sm:$0xff] }
 0x4a7   :  { %v1451_v9 = vadd.f32 %v1450_v59, %v1433_v21  ;;  %v1760_v21 = vld [vmem:[#allocation2 + $0x40] sm:$0xff]  ;;  %v2316_v59 = vld [vmem:[#allocation6 + $0x110] sm:$0xff] }
 0x4a8   :  { %v1700_v61 = vpop.permute.xlu1 %1699  ;;  %v1682_v12 = vpop.permute.xlu0 %1681 }
 0x4a9   :  { %v1684_v24 = vmul.f32 %v4953_v46, %v1682_v12  ;;  %v1469_v26 = vadd.f32 %v1468_v15, %v1451_v9  ;;  %v1702_v31 = vmul.f32 %v4955_v45, %v1700_v61  ;;  %v1511_v45 = vstv %s3528_s5  ;;  %v2314_v15 = vld [vmem:[#allocation6 + $0x100] sm:$0xff] }
 0x4aa   :  { %v3545_v9 = vld [vmem:[%s5520_s6 + $0x6] ss:$0 sm:$0xff]  ;;  %v3542_v61 = vld [vmem:[%s5518_s4 + $0x2] ss:$0 sm:$0xff] }
 0x4ab   :  { %v1685_v8 = vadd.f32 %v1684_v24, %v1667_v39  ;;  %v2315_v39 = vld [vmem:[#allocation6 + $0x108] sm:$0xff] }
 0x4ac   :  { %v1502_v4 = vpop.permute.xlu1 %1501  ;;  %v1484_v60 = vpop.permute.xlu0 %1483 }
 0x4ad   :  { %v1486_v42 = vmul.f32 %v4959_v57, %v1484_v60  ;;  %v1703_v32 = vadd.f32 %v1702_v31, %v1685_v8  ;;  %v1504_v6 = vmul.f32 %v4961_v54, %v1502_v4  ;;  %v1763_v57 = vld [vmem:[#allocation2 + $0x58] sm:$0xff] }
 0x4ae   :  { %3801 = vmatpush3.msra.mxu1 %v1763_v57 }
 0x4af   :  { %v1487_v44 = vadd.f32 %v1486_v42, %v1469_v26  ;;  %3802 = vmatprep.subr.mxu1 %v4402_v2 }
 0x4b0   :  { %v1736_v41 = vpop.permute.xlu1 %1735  ;;  %v1718_v40 = vpop.permute.xlu0 %1717  ;;  %3803 = vmatpush3.msra.mxu1 %v1762_v10 }
 0x4b1   :  { %v1505_v43 = vadd.f32 %v1504_v6, %v1487_v44  ;;  %v1720_v46 = vmul.f32 %v4965_v55, %v1718_v40  ;;  %v1738_v56 = vmul.f32 %v4969_v53, %v1736_v41  ;;  %v1761_v55 = vld [vmem:[#allocation2 + $0x48] sm:$0xff]  ;;  %3804 = vmatprep.subr.mxu1 %v4402_v2 }
 0x4b2   :  { %3805 = vmatpush3.msra.mxu1 %v1761_v55 }
 0x4b3   :  { %v1509_v58 = vmul.f32 %v4110_v50, %v1505_v43  ;;  %v1721_v11 = vadd.f32 %v1720_v46, %v1703_v32  ;;  %3806 = vmatprep.subr.mxu1 %v4402_v2 }
 0x4b4   :  { %3807 = vmatpush3.msra.mxu1 %v1760_v21 }
 0x4b5   :  { %v1739_v52 = vadd.f32 %v1738_v56, %v1721_v11  ;;  %v1512_v54 = vmul.f32 %v1511_v45, %v1509_v58  ;;  %3822 = vmatprep.subr.mxu1 %v4402_v2  ;;  %v3569_v45 = vld [vmem:[%s5520_s6 + $0x8] ss:$0 sm:$0xff] }
 0x4b7   :  { %v1743_v20 = vmul.f32 %v4112_v49, %v1739_v52  ;;  %v1513_v53 = vadd.f32 %v1512_v54, %v1278_v16 }
 0x4b9   :  { %v1746_v14 = vmul.f32 %v1745_v7, %v1743_v20 }
 0x4bb   :  { %v1747_v48 = vadd.f32 %v1746_v14, %v1513_v53 }
 0x4bd   :  { %1749 = vrot.lane.b32.xlu0 %v1747_v48, %s4405_s22 }
 0x52f   :  { %v1750_v22 = vpop.permute.xlu0 %1749 }
 0x530   :  { %v1752_v62 = vadd.f32 %v1750_v22, %v4796_v25  ;;  %v2081_v25 = vld [vmem:[#allocation6 + $0xe8] sm:$0xff] }
 0x532   :  { %v1753_v47 = vmax.f32 %v1752_v62, 0.0 }
 0x534   :  { %1755 = vrot.lane.b32.xlu1 %v1753_v47, %s4404_s14 }
 0x5a6   :  { %v1756_v23 = vpop.permute.xlu1 %1755 }
 0x5a7   :  { %v5011_v63 = vadd.f32 %v1756_v23, %v4764_v18 }
 0x5a9   :  { %3809 = vmatmul.mubr.msk.f32.vlgmr.msra.gmra.mxu1 %vm175_vm3, %v5011_v63  ;;  %3820 = vmatmul.mubr.msk.f32.vlgmr.msra.gmra.mxu0 %vm175_vm3, %v5011_v63 }
 0x5aa   :  { %3823 = vmatpush3.msra.mxu1 %v2083_v1  ;;  %3834 = vmatpush3.msra.mxu0 %v2317_v5 }
 0x5ab   :  { %3824 = vmatprep.subr.mxu1 %v4402_v2  ;;  %3835 = vmatprep.subr.mxu0 %v4402_v2 }
 0x5ac   :  { %3825 = vmatpush3.msra.mxu1 %v2082_v0  ;;  %3836 = vmatpush3.msra.mxu0 %v2316_v59 }
 0x5ad   :  { %3826 = vmatprep.subr.mxu1 %v4402_v2  ;;  %3837 = vmatprep.subr.mxu0 %v4402_v2 }
 0x5ae   :  { %3827 = vmatpush3.msra.mxu1 %v2081_v25  ;;  %3838 = vmatpush3.msra.mxu0 %v2315_v39 }
 0x5af   :  { %3828 = vmatprep.subr.mxu1 %v4402_v2  ;;  %3839 = vmatprep.subr.mxu0 %v4402_v2 }
 0x5b0   :  { %3829 = vmatpush3.msra.mxu1 %v2080_v3  ;;  %3830 = vmatprep.mubr.msk.f32.mxu1 %vm4403_vm1, %v4402_v2 }
 0x5b1   :  { %3840 = vmatpush3.msra.mxu0 %v2314_v15  ;;  %3841 = vmatprep.mubr.msk.f32.mxu0 %vm4403_vm1, %v4402_v2 }
 0x5b2   :  { %3831 = vmatmul.mubr.msk.f32.vlgmr.msra.gmra.mxu1 %vm175_vm3, %v4764_v18  ;;  %3842 = vmatmul.mubr.msk.f32.vlgmr.msra.gmra.mxu0 %vm175_vm3, %v4497_v13 }
 0x5b3   :  { %3844 = vmatprep.subr.mxu1 %v4402_v2  ;;  %3855 = vmatprep.subr.mxu0 %v4402_v2 }
 0x5b4   :  { %3852 = vmatprep.mubr.msk.f32.mxu1 %vm4403_vm1, %v4402_v2  ;;  %3863 = vmatprep.mubr.msk.f32.mxu0 %vm4403_vm1, %v4402_v2 }
 0x669   :  { %v1841_v12 = vpop.f32.mrf.mxu1  ;;  %v1924_v13 = vpop.f32.mrf.mxu0 }
 0x66a   :  { %v1925_v24 = vadd.f32 %v3545_v9, %v1924_v13  ;;  %v5043_v26 = vadd.f32 %v3542_v61, %v1841_v12 }
 0x66b   :  { %v3810_v31 = vpop.f32.mrf.mxu1  ;;  %v3821_v8 = vpop.f32.mrf.mxu0 }
 0x66c   :  { %v1949_v4 = vrot.slane %v1925_v24, %v4535_v30  ;;  %v1931_v60 = vrot.slane %v1925_v24, %v4531_v28  ;;  %v2003_v42 = vrot.slane %v1925_v24, %v4529_v27  ;;  %v1967_v32 = vrot.slane %v1925_v24, %v4537_v33 }
 0x66d   :  { %v2039_v6 = vrot.slane %v1925_v24, %v4533_v29  ;;  %v1985_v44 = vrot.slane %v1925_v24, %v4539_v34  ;;  %v2021_v41 = vrot.slane %v1925_v24, %v4541_v35  ;;  %v5053_v40 = vrot.slane %v1925_v24, %v4543_v36 }
 0x66e   :  { %1958 = vrot.lane.b32.xlu1 %v1949_v4, %s4404_s14  ;;  %v1950_v43 = vadd.f32 %v1949_v4, %v5043_v26  ;;  %1940 = vrot.lane.b32.xlu0 %v1931_v60, %s4404_s14  ;;  %v1932_v46 = vadd.f32 %v1931_v60, %v5043_v26  ;;  %v2004_v50 = vadd.f32 %v2003_v42, %v5043_v26 }
 0x66f   :  { %v1968_v58 = vadd.f32 %v1967_v32, %v5043_v26  ;;  %v2040_v56 = vadd.f32 %v2039_v6, %v5043_v26  ;;  %v1986_v11 = vadd.f32 %v1985_v44, %v5043_v26  ;;  %v2022_v57 = vadd.f32 %v2021_v41, %v5043_v26 }
 0x670   :  { %v3548_v37 = vmul.f32 -1.442695, %v1950_v43  ;;  %v3547_v10 = vmul.f32 -1.442695, %v1932_v46  ;;  %v3551_v16 = vmul.f32 -1.442695, %v2004_v50  ;;  %v2058_v52 = vadd.f32 %v5053_v40, %v5043_v26 }
 0x671   :  { %v3549_v54 = vmul.f32 -1.442695, %v1968_v58  ;;  %v3553_v7 = vmul.f32 -1.442695, %v2040_v56  ;;  %v3550_v20 = vmul.f32 -1.442695, %v1986_v11 }
 0x672   :  { %4113 = vpow2.f32 %v3548_v37  ;;  %v2158_v17 = vpop.f32.mrf.mxu1  ;;  %v2392_v49 = vpop.f32.mrf.mxu0  ;;  %2012 = vrot.lane.b32.xlu1 %v2003_v42, %s4404_s14  ;;  %1976 = vrot.lane.b32.xlu0 %v1967_v32, %s4404_s14  ;;  %v3552_v48 = vmul.f32 -1.442695, %v2022_v57  ;;  %v3554_v21 = vmul.f32 -1.442695, %v2058_v52 }
 0x673   :  { %4115 = vpow2.f32 %v3547_v10  ;;  %v5074_v55 = vadd.f32 %v3557_v51, %v2158_v17  ;;  %v5076_v19 = vadd.f32 %v3569_v45, %v2392_v49 }
 0x674   :  { %v3832_v53 = vpop.f32.mrf.mxu1  ;;  %4117 = vpow2.f32 %v3551_v16  ;;  %v3843_v14 = vpop.f32.mrf.mxu0 }
 0x675   :  { %4119 = vpow2.f32 %v3549_v54  ;;  %v2183_v38 = vrot.slane %v5074_v55, %v4535_v30  ;;  %v2201_v22 = vrot.slane %v5074_v55, %v4537_v33  ;;  %v2165_v62 = vrot.slane %v5074_v55, %v4531_v28 }
 0x676   :  { %4121 = vpow2.f32 %v3553_v7  ;;  %2048 = vrot.lane.b32.xlu1 %v2039_v6, %s4404_s14  ;;  %1994 = vrot.lane.b32.xlu0 %v1985_v44, %s4404_s14  ;;  %v2417_v47 = vrot.slane %v5076_v19, %v4535_v30  ;;  %v2219_v23 = vrot.slane %v5074_v55, %v4539_v34  ;;  %v2399_v1 = vrot.slane %v5076_v19, %v4531_v28 }
 0x677   :  { %4123 = vpow2.f32 %v3550_v20  ;;  %v2184_v5 = vadd.f32 %v2183_v38, %v5043_v26  ;;  %v2202_v0 = vadd.f32 %v2201_v22, %v5043_v26  ;;  %v2166_v59 = vadd.f32 %v2165_v62, %v5043_v26 }
 0x678   :  { %4125 = vpow2.f32 %v3552_v48  ;;  %v2418_v25 = vadd.f32 %v2417_v47, %v5043_v26  ;;  %v2220_v39 = vadd.f32 %v2219_v23, %v5043_v26  ;;  %v2400_v3 = vadd.f32 %v2399_v1, %v5043_v26 }
 0x679   :  { %v3560_v15 = vmul.f32 -1.442695, %v2184_v5  ;;  %v3561_v9 = vmul.f32 -1.442695, %v2202_v0  ;;  %4127 = vpow2.f32 %v3554_v21  ;;  %v3559_v61 = vmul.f32 -1.442695, %v2166_v59 }
 0x67a   :  { %2192 = vrot.lane.b32.xlu1 %v2183_v38, %s4404_s14  ;;  %2030 = vrot.lane.b32.xlu0 %v2021_v41, %s4404_s14  ;;  %v3572_v12 = vmul.f32 -1.442695, %v2418_v25  ;;  %v2453_v13 = vrot.slane %v5076_v19, %v4539_v34  ;;  %v3562_v24 = vmul.f32 -1.442695, %v2220_v39  ;;  %v3571_v31 = vmul.f32 -1.442695, %v2400_v3 }
 0x67b   :  { %4129 = vpow2.f32 %v3560_v15  ;;  %v2435_v4 = vrot.slane %v5076_v19, %v4537_v33  ;;  %v2255_v57 = vrot.slane %v5074_v55, %v4541_v35  ;;  %v2237_v52 = vrot.slane %v5074_v55, %v4529_v27 }
 0x67c   :  { %4131 = vpow2.f32 %v3561_v9  ;;  %v2454_v8 = vadd.f32 %v2453_v13, %v5043_v26  ;;  %v2489_v49 = vrot.slane %v5076_v19, %v4541_v35  ;;  %v2471_v53 = vrot.slane %v5076_v19, %v4529_v27 }
 0x67d   :  { %4133 = vpow2.f32 %v3559_v61  ;;  %v2256_v48 = vadd.f32 %v2255_v57, %v5043_v26  ;;  %v2238_v21 = vadd.f32 %v2237_v52, %v5043_v26  ;;  %v2291_v38 = vrot.slane %v5074_v55, %v4543_v36 }
 0x67e   :  { %2210 = vrot.lane.b32.xlu1 %v2201_v22, %s4404_s14  ;;  %2066 = vrot.lane.b32.xlu0 %v5053_v40, %s4404_s14  ;;  %4135 = vpow2.f32 %v3572_v12  ;;  %v3574_v6 = vmul.f32 -1.442695, %v2454_v8  ;;  %v2436_v40 = vadd.f32 %v2435_v4, %v5043_v26  ;;  %v2490_v0 = vadd.f32 %v2489_v49, %v5043_v26 }
 0x67f   :  { %v4114_v60 = vpop.eup %4113  ;;  %4137 = vpow2.f32 %v3562_v24  ;;  %v2525_v59 = vrot.slane %v5076_v19, %v4543_v36  ;;  %v2472_v3 = vadd.f32 %v2471_v53, %v5043_v26  ;;  %v2507_v15 = vrot.slane %v5076_v19, %v4533_v29 }
 0x680   :  { %v4116_v42 = vpop.eup %4115  ;;  %v1954_v32 = vadd.f32 1.0, %v4114_v60  ;;  %4139 = vpow2.f32 %v3571_v31  ;;  %v3573_v16 = vmul.f32 -1.442695, %v2436_v40  ;;  %v3564_v61 = vmul.f32 -1.442695, %v2256_v48 }
 0x681   :  { %v4118_v44 = vpop.eup %4117  ;;  %v1936_v41 = vadd.f32 1.0, %v4116_v42  ;;  %v3576_v8 = vmul.f32 -1.442695, %v2490_v0  ;;  %v2526_v19 = vadd.f32 %v2525_v59, %v5043_v26  ;;  %v3575_v42 = vmul.f32 -1.442695, %v2472_v3 }
 0x682   :  { %v4120_v43 = vpop.eup %4119  ;;  %4141 = vrcp.f32 %v1954_v32  ;;  %v2008_v46 = vadd.f32 1.0, %v4118_v44  ;;  %2174 = vrot.lane.b32.xlu0 %v2165_v62, %s4404_s14  ;;  %2426 = vrot.lane.b32.xlu1 %v2417_v47, %s4404_s14  ;;  %v2508_v32 = vadd.f32 %v2507_v15, %v5043_v26 }
 0x683   :  { %v4122_v50 = vpop.eup %4121  ;;  %4143 = vrcp.f32 %v1936_v41  ;;  %v1972_v51 = vadd.f32 1.0, %v4120_v43 }
 0x684   :  { %v4124_v45 = vpop.eup %4123  ;;  %v2044_v58 = vadd.f32 1.0, %v4122_v50  ;;  %4145 = vpow2.f32 %v3574_v6  ;;  %v3578_v50 = vmul.f32 -1.442695, %v2526_v19 }
 0x685   :  { %v4126_v56 = vpop.eup %4125  ;;  %4147 = vrcp.f32 %v1972_v51  ;;  %v1990_v11 = vadd.f32 1.0, %v4124_v45 }
 0x686   :  { %v4128_v37 = vpop.eup %4127  ;;  %4149 = vrcp.f32 %v2008_v46  ;;  %v2026_v10 = vadd.f32 1.0, %v4126_v56  ;;  %2228 = vrot.lane.b32.xlu1 %v2219_v23, %s4404_s14  ;;  %2408 = vrot.lane.b32.xlu0 %v2399_v1, %s4404_s14  ;;  %v2273_v23 = vrot.slane %v5074_v55, %v4533_v29  ;;  %v2292_v55 = vadd.f32 %v2291_v38, %v5043_v26 }
 0x687   :  { %4151 = vrcp.f32 %v1990_v11  ;;  %v2062_v17 = vadd.f32 1.0, %v4128_v37 }
 0x688   :  { %v4130_v54 = vpop.eup %4129  ;;  %4153 = vrcp.f32 %v2044_v58  ;;  %v2274_v24 = vadd.f32 %v2273_v23, %v5043_v26  ;;  %v3566_v44 = vmul.f32 -1.442695, %v2292_v55  ;;  %v3577_v58 = vmul.f32 -1.442695, %v2508_v32 }
 0x689   :  { %v4132_v7 = vpop.eup %4131  ;;  %v2188_v20 = vadd.f32 1.0, %v4130_v54  ;;  %4155 = vrcp.f32 %v2026_v10 }
 0x68a   :  { %v4134_v14 = vpop.eup %4133  ;;  %2462 = vrot.lane.b32.xlu1 %v2453_v13, %s4404_s14  ;;  %4157 = vpow2.f32 %v3573_v16  ;;  %2444 = vrot.lane.b32.xlu0 %v2435_v4, %s4404_s14  ;;  %v2206_v62 = vadd.f32 1.0, %v4132_v7  ;;  %v3563_v13 = vmul.f32 -1.442695, %v2238_v21  ;;  %v3565_v46 = vmul.f32 -1.442695, %v2274_v24 }
 0x68b   :  { %v4136_v22 = vpop.eup %4135  ;;  %4159 = vrcp.f32 %v2188_v20  ;;  %v2170_v47 = vadd.f32 1.0, %v4134_v14 }
 0x68c   :  { %v4138_v1 = vpop.eup %4137  ;;  %4161 = vrcp.f32 %v2062_v17  ;;  %v2422_v5 = vadd.f32 1.0, %v4136_v22 }
 0x68d   :  { %v4140_v25 = vpop.eup %4139  ;;  %4163 = vrcp.f32 %v2170_v47  ;;  %v2224_v39 = vadd.f32 1.0, %v4138_v1 }
 0x68e   :  { %4165 = vrcp.f32 %v2422_v5  ;;  %v2404_v9 = vadd.f32 1.0, %v4140_v25  ;;  %2264 = vrot.lane.b32.xlu1 %v2255_v57, %s4404_s14  ;;  %2246 = vrot.lane.b32.xlu0 %v2237_v52, %s4404_s14 }
 0x68f   :  { %v5138_v12 = vpop.eup %4141  ;;  %4167 = vrcp.f32 %v2206_v62 }
 0x690   :  { %v5141_v31 = vpop.eup %4143  ;;  %4169 = vrcp.f32 %v2404_v9 }
 0x691   :  { %v4146_v4 = vpop.eup %4145  ;;  %v1963_v60 = vadd.f32 %v5141_v31, %v5138_v12  ;;  %4171 = vrcp.f32 %v2224_v39 }
 0x692   :  { %v5147_v6 = vpop.eup %4147  ;;  %4173 = vpow2.f32 %v3564_v61  ;;  %2498 = vrot.lane.b32.xlu1 %v2489_v49, %s4404_s14  ;;  %2480 = vrot.lane.b32.xlu0 %v2471_v53, %s4404_s14  ;;  %v2458_v10 = vadd.f32 1.0, %v4146_v4 }
 0x693   :  { %v5151_v41 = vpop.eup %4149  ;;  %v1981_v43 = vadd.f32 %v5147_v6, %v1963_v60  ;;  %4175 = vpow2.f32 %v3563_v13 }
 0x694   :  { %v5154_v40 = vpop.eup %4151  ;;  %4177 = vpow2.f32 %v3576_v8 }
 0x695   :  { %v5156_v51 = vpop.eup %4153  ;;  %v1999_v45 = vadd.f32 %v5154_v40, %v1981_v43  ;;  %4179 = vpow2.f32 %v3575_v42 }
 0x696   :  { %v5159_v56 = vpop.eup %4155  ;;  %4181 = vpow2.f32 %v3566_v44  ;;  %2300 = vrot.lane.b32.xlu1 %v2291_v38, %s4404_s14  ;;  %2282 = vrot.lane.b32.xlu0 %v2273_v23, %s4404_s14 }
 0x697   :  { %v4158_v11 = vpop.eup %4157  ;;  %4183 = vpow2.f32 %v3565_v46  ;;  %v2017_v57 = vadd.f32 %v5151_v41, %v1999_v45 }
 0x698   :  { %v5164_v37 = vpop.eup %4159  ;;  %v2440_v16 = vadd.f32 1.0, %v4158_v11  ;;  %4185 = vpow2.f32 %v3578_v50 }
 0x699   :  { %v5166_v52 = vpop.eup %4161  ;;  %4187 = vpow2.f32 %v3577_v58  ;;  %v2035_v54 = vadd.f32 %v5159_v56, %v2017_v57 }
 0x69a   :  { %v5169_v17 = vpop.eup %4163  ;;  %4189 = vrcp.f32 %v2440_v16  ;;  %2534 = vrot.lane.b32.xlu1 %v2525_v59, %s4404_s14  ;;  %2516 = vrot.lane.b32.xlu0 %v2507_v15, %s4404_s14 }
 0x69b   :  { %v5173_v49 = vpop.eup %4165  ;;  %v2197_v7 = vadd.f32 %v5169_v17, %v5164_v37  ;;  %v2053_v20 = vadd.f32 %v5156_v51, %v2035_v54  ;;  %4191 = vrcp.f32 %v2458_v10 }
 0x69c   :  { %v5178_v53 = vpop.eup %4167 }
 0x69d   :  { %v5180_v14 = vpop.eup %4169  ;;  %v2215_v48 = vadd.f32 %v5178_v53, %v2197_v7  ;;  %v2071_v21 = vadd.f32 %v5166_v52, %v2053_v20 }
 0x69e   :  { %v5184_v38 = vpop.eup %4171  ;;  %v2431_v22 = vadd.f32 %v5180_v14, %v5173_v49 }
 0x69f   :  { %v4174_v62 = vpop.eup %4173  ;;  %v2233_v47 = vadd.f32 %v5184_v38, %v2215_v48 }
 0x6a0   :  { %v4176_v23 = vpop.eup %4175  ;;  %v2260_v1 = vadd.f32 1.0, %v4174_v62 }
 0x6a1   :  { %v4178_v5 = vpop.eup %4177  ;;  %v2242_v0 = vadd.f32 1.0, %v4176_v23 }
 0x6a2   :  { %v4180_v59 = vpop.eup %4179  ;;  %v2494_v25 = vadd.f32 1.0, %v4178_v5 }
 0x6a3   :  { %v4182_v39 = vpop.eup %4181  ;;  %4193 = vrcp.f32 %v2242_v0  ;;  %v2476_v3 = vadd.f32 1.0, %v4180_v59  ;;  %v2072_v0 = vadd.f32 1e-06, %v2071_v21 }
 0x6a4   :  { %v4184_v15 = vpop.eup %4183  ;;  %4195 = vrcp.f32 %v2260_v1  ;;  %v2296_v9 = vadd.f32 1.0, %v4182_v39 }
 0x6a5   :  { %v4186_v61 = vpop.eup %4185  ;;  %4197 = vrcp.f32 %v2476_v3  ;;  %v2278_v55 = vadd.f32 1.0, %v4184_v15 }
 0x6a6   :  { %v4188_v13 = vpop.eup %4187  ;;  %4199 = vrcp.f32 %v2494_v25  ;;  %v2530_v8 = vadd.f32 1.0, %v4186_v61 }
 0x6a7   :  { %v5189_v24 = vpop.eup %4189  ;;  %4201 = vrcp.f32 %v2278_v55  ;;  %v2512_v19 = vadd.f32 1.0, %v4188_v13 }
 0x6a8   :  { %v2449_v4 = vadd.f32 %v5189_v24, %v2431_v22  ;;  %4203 = vrcp.f32 %v2296_v9  ;;  %v5192_v60 = vpop.eup %4191 }
 0x6a9   :  { %4205 = vrcp.f32 %v2512_v19 }
 0x6aa   :  { %v2467_v42 = vadd.f32 %v5192_v60, %v2449_v4  ;;  %4207 = vrcp.f32 %v2530_v8 }
 0x6ab   :  { %4209 = vrcp.f32 %v2072_v0 }
 0x6b0   :  { %v5195_v32 = vpop.eup %4193 }
 0x6b1   :  { %v5197_v44 = vpop.eup %4195  ;;  %v2251_v43 = vadd.f32 %v5195_v32, %v2233_v47 }
 0x6b2   :  { %v5200_v46 = vpop.eup %4197 }
 0x6b3   :  { %v5202_v50 = vpop.eup %4199  ;;  %v2485_v45 = vadd.f32 %v5200_v46, %v2467_v42  ;;  %v2269_v58 = vadd.f32 %v5197_v44, %v2251_v43 }
 0x6b4   :  { %v5206_v11 = vpop.eup %4201 }
 0x6b5   :  { %v5208_v57 = vpop.eup %4203  ;;  %v2287_v10 = vadd.f32 %v5206_v11, %v2269_v58  ;;  %v2503_v16 = vadd.f32 %v5202_v50, %v2485_v45 }
 0x6b6   :  { %v5212_v54 = vpop.eup %4205 }
 0x6b7   :  { %v2305_v7 = vadd.f32 %v5208_v57, %v2287_v10  ;;  %v2521_v20 = vadd.f32 %v5212_v54, %v2503_v16  ;;  %v5216_v48 = vpop.eup %4207 }
 0x6b8   :  { %v4210_v10 = vpop.eup %4209 }
 0x6b9   :  { %v2539_v22 = vadd.f32 %v5216_v48, %v2521_v20 }
 0x6e0   :  { %v1959_v62 = vpop.permute.xlu1 %1958  ;;  %v1941_v47 = vpop.permute.xlu0 %1940 }
 0x6e1   :  { %v1961_v23 = vmul.f32 %v5138_v12, %v1959_v62  ;;  %v1943_v1 = vmul.f32 %v5141_v31, %v1941_v47 }
 0x6e3   :  { %v1962_v5 = vadd.f32 %v1961_v23, %v1943_v1 }
 0x6e4   :  { %v2013_v59 = vpop.permute.xlu1 %2012  ;;  %v1977_v25 = vpop.permute.xlu0 %1976 }
 0x6e5   :  { %v1979_v39 = vmul.f32 %v5147_v6, %v1977_v25  ;;  %v2015_v55 = vmul.f32 %v5151_v41, %v2013_v59 }
 0x6e7   :  { %v1980_v3 = vadd.f32 %v1979_v39, %v1962_v5 }
 0x6e8   :  { %v2049_v15 = vpop.permute.xlu1 %2048  ;;  %v1995_v9 = vpop.permute.xlu0 %1994 }
 0x6e9   :  { %v1997_v61 = vmul.f32 %v5154_v40, %v1995_v9  ;;  %v2051_v21 = vmul.f32 %v5156_v51, %v2049_v15  ;;  %v2306_v15 = vadd.f32 1e-06, %v2305_v7 }
 0x6eb   :  { %v1998_v13 = vadd.f32 %v1997_v61, %v1980_v3  ;;  %4211 = vrcp.f32 %v2306_v15 }
 0x6ec   :  { %v2193_v8 = vpop.permute.xlu1 %2192  ;;  %v2031_v19 = vpop.permute.xlu0 %2030 }
 0x6ed   :  { %v2016_v12 = vadd.f32 %v2015_v55, %v1998_v13  ;;  %v2033_v31 = vmul.f32 %v5159_v56, %v2031_v19  ;;  %v2195_v41 = vmul.f32 %v5164_v37, %v2193_v8  ;;  %v2540_v13 = vadd.f32 1e-06, %v2539_v22 }
 0x6ef   :  { %v2034_v4 = vadd.f32 %v2033_v31, %v2016_v12  ;;  %4213 = vrcp.f32 %v2540_v13  ;;  %v2879_v13 = vld [vmem:[#allocation6 + $0x140] sm:$0xff] }
 0x6f0   :  { %v2211_v42 = vpop.permute.xlu1 %2210  ;;  %v2067_v43 = vpop.permute.xlu0 %2066 }
 0x6f1   :  { %v2052_v6 = vadd.f32 %v2051_v21, %v2034_v4  ;;  %v2069_v45 = vmul.f32 %v5166_v52, %v2067_v43  ;;  %v2213_v47 = vmul.f32 %v5178_v53, %v2211_v42 }
 0x6f3   :  { %v2070_v58 = vadd.f32 %v2069_v45, %v2052_v6 }
 0x6f4   :  { %v2175_v16 = vpop.permute.xlu0 %2174  ;;  %v2427_v40 = vpop.permute.xlu1 %2426 }
 0x6f5   :  { %v2074_v20 = vmul.f32 %v4210_v10, %v2070_v58  ;;  %v2177_v62 = vmul.f32 %v5169_v17, %v2175_v16  ;;  %v2429_v1 = vmul.f32 %v5173_v49, %v2427_v40  ;;  %v2076_v58 = vstv %s3555_s17 }
 0x6f7   :  { %v2196_v56 = vadd.f32 %v2195_v41, %v2177_v62  ;;  %v2648_v41 = vld [vmem:[#allocation6 + $0x138] sm:$0xff]  ;;  %v2561_v62 = vld [vmem:[#allocation2 + $0x70] sm:$0xff] }
 0x6f8   :  { %v2229_v23 = vpop.permute.xlu1 %2228  ;;  %v2409_v51 = vpop.permute.xlu0 %2408  ;;  %3856 = vmatpush3.msra.mxu0 %v2648_v41 }
 0x6f9   :  { %v2214_v5 = vadd.f32 %v2213_v47, %v2196_v56  ;;  %v2231_v0 = vmul.f32 %v5184_v38, %v2229_v23  ;;  %v2411_v52 = vmul.f32 %v5180_v14, %v2409_v51  ;;  %v4212_v45 = vpop.eup %4211  ;;  %v2077_v47 = vmul.f32 %v2076_v58, %v2074_v20  ;;  %v2647_v23 = vld [vmem:[#allocation6 + $0x130] sm:$0xff]  ;;  %3857 = vmatprep.subr.mxu0 %v4402_v2  ;;  %v3608_v58 = vld [vmem:[%s5520_s6 + $0xb] ss:$0 sm:$0xff] }
 0x6fa   :  { %3858 = vmatpush3.msra.mxu0 %v2647_v23 }
 0x6fb   :  { %v2232_v59 = vadd.f32 %v2231_v0, %v2214_v5  ;;  %v2430_v25 = vadd.f32 %v2429_v1, %v2411_v52  ;;  %v2544_v1 = vstv %s5240_s19  ;;  %v2646_v5 = vld [vmem:[#allocation6 + $0x128] sm:$0xff]  ;;  %3859 = vmatprep.subr.mxu0 %v4402_v2 }
 0x6fc   :  { %v2463_v39 = vpop.permute.xlu1 %2462  ;;  %v2445_v3 = vpop.permute.xlu0 %2444  ;;  %3860 = vmatpush3.msra.mxu0 %v2646_v5 }
 0x6fd   :  { %v2447_v37 = vmul.f32 %v5189_v24, %v2445_v3  ;;  %v2465_v17 = vmul.f32 %v5192_v60, %v2463_v39  ;;  %v4214_v51 = vpop.eup %4213  ;;  %3861 = vmatprep.subr.mxu0 %v4402_v2 }
 0x6ff   :  { %v2448_v53 = vadd.f32 %v2447_v37, %v2430_v25  ;;  %v2645_v25 = vld [vmem:[#allocation6 + $0x120] sm:$0xff] }
 0x700   :  { %v2265_v9 = vpop.permute.xlu1 %2264  ;;  %v2247_v61 = vpop.permute.xlu0 %2246  ;;  %3862 = vmatpush3.msra.mxu0 %v2645_v25 }
 0x701   :  { %v2249_v55 = vmul.f32 %v5195_v32, %v2247_v61  ;;  %v2466_v49 = vadd.f32 %v2465_v17, %v2448_v53  ;;  %v2267_v38 = vmul.f32 %v5197_v44, %v2265_v9  ;;  %3877 = vmatprep.subr.mxu0 %v4402_v2  ;;  %v2882_v53 = vld [vmem:[#allocation6 + $0x158] sm:$0xff]  ;;  %v2881_v61 = vld [vmem:[#allocation6 + $0x150] sm:$0xff] }
 0x702   :  { %v3116_v9 = vld [vmem:[#allocation6 + $0x178] sm:$0xff] }
 0x703   :  { %v2250_v14 = vadd.f32 %v2249_v55, %v2232_v59  ;;  %v2559_v59 = vld [vmem:[#allocation2 + $0x60] sm:$0xff]  ;;  %v3115_v55 = vld [vmem:[#allocation6 + $0x170] sm:$0xff] }
 0x704   :  { %v2499_v8 = vpop.permute.xlu1 %2498  ;;  %v2481_v19 = vpop.permute.xlu0 %2480 }
 0x705   :  { %v2483_v12 = vmul.f32 %v5200_v46, %v2481_v19  ;;  %v2268_v24 = vadd.f32 %v2267_v38, %v2250_v14  ;;  %v2501_v60 = vmul.f32 %v5202_v50, %v2499_v8  ;;  %v2310_v50 = vstv %s3567_s18  ;;  %v3113_v38 = vld [vmem:[#allocation6 + $0x160] sm:$0xff]  ;;  %v3584_v14 = vld [vmem:[%s5520_s6 + $0x9] ss:$0 sm:$0xff] }
 0x706   :  { %v3581_v8 = vld [vmem:[%s5518_s4 + $0x3] ss:$0 sm:$0xff] }
 0x707   :  { %v2484_v7 = vadd.f32 %v2483_v12, %v2466_v49  ;;  %v3114_v49 = vld [vmem:[#allocation6 + $0x168] sm:$0xff] }
 0x708   :  { %v2301_v31 = vpop.permute.xlu1 %2300  ;;  %v2283_v21 = vpop.permute.xlu0 %2282 }
 0x709   :  { %v2285_v32 = vmul.f32 %v5206_v11, %v2283_v21  ;;  %v2502_v4 = vadd.f32 %v2501_v60, %v2484_v7  ;;  %v2303_v44 = vmul.f32 %v5208_v57, %v2301_v31  ;;  %v2562_v11 = vld [vmem:[#allocation2 + $0x78] sm:$0xff] }
 0x70a   :  { %3845 = vmatpush3.msra.mxu1 %v2562_v11 }
 0x70b   :  { %v2286_v22 = vadd.f32 %v2285_v32, %v2268_v24  ;;  %3846 = vmatprep.subr.mxu1 %v4402_v2 }
 0x70c   :  { %v2535_v42 = vpop.permute.xlu1 %2534  ;;  %v2517_v43 = vpop.permute.xlu0 %2516  ;;  %3847 = vmatpush3.msra.mxu1 %v2561_v62 }
 0x70d   :  { %v2304_v6 = vadd.f32 %v2303_v44, %v2286_v22  ;;  %v2519_v46 = vmul.f32 %v5212_v54, %v2517_v43  ;;  %v2537_v16 = vmul.f32 %v5216_v48, %v2535_v42  ;;  %v2560_v54 = vld [vmem:[#allocation2 + $0x68] sm:$0xff]  ;;  %3848 = vmatprep.subr.mxu1 %v4402_v2 }
 0x70e   :  { %3849 = vmatpush3.msra.mxu1 %v2560_v54 }
 0x70f   :  { %v2308_v10 = vmul.f32 %v4212_v45, %v2304_v6  ;;  %v2520_v40 = vadd.f32 %v2519_v46, %v2502_v4  ;;  %3850 = vmatprep.subr.mxu1 %v4402_v2  ;;  %v3596_v45 = vld [vmem:[%s5520_s6 + $0xa] ss:$0 sm:$0xff]  ;;  %s3594_s6 = sld [smem:[#allocation8 + $0x9]] }
 0x710   :  { %3851 = vmatpush3.msra.mxu1 %v2559_v59 }
 0x711   :  { %v2538_v56 = vadd.f32 %v2537_v16, %v2520_v40  ;;  %v2311_v57 = vmul.f32 %v2310_v50, %v2308_v10  ;;  %3866 = vmatprep.subr.mxu1 %v4402_v2 }
 0x713   :  { %v2542_v0 = vmul.f32 %v4214_v51, %v2538_v56  ;;  %v2312_v48 = vadd.f32 %v2311_v57, %v2077_v47 }
 0x715   :  { %v2545_v20 = vmul.f32 %v2544_v1, %v2542_v0 }
 0x717   :  { %v2546_v52 = vadd.f32 %v2545_v20, %v2312_v48 }
 0x719   :  { %2548 = vrot.lane.b32.xlu0 %v2546_v52, %s4405_s22 }
 0x78b   :  { %v2549_v39 = vpop.permute.xlu0 %2548 }
 0x78c   :  { %v2551_v3 = vadd.f32 %v2549_v39, %v5043_v26  ;;  %v2880_v26 = vld [vmem:[#allocation6 + $0x148] sm:$0xff] }
 0x78e   :  { %v2552_v37 = vmax.f32 %v2551_v3, 0.0 }
 0x790   :  { %2554 = vrot.lane.b32.xlu1 %v2552_v37, %s4404_s14 }
 0x802   :  { %v2555_v15 = vpop.permute.xlu1 %2554 }
 0x803   :  { %v5258_v17 = vadd.f32 %v2555_v15, %v5011_v63 }
 0x805   :  { %3853 = vmatmul.mubr.msk.f32.vlgmr.msra.gmra.mxu1 %vm175_vm3, %v5258_v17  ;;  %3864 = vmatmul.mubr.msk.f32.vlgmr.msra.gmra.mxu0 %vm175_vm3, %v5258_v17 }
 0x806   :  { %3867 = vmatpush3.msra.mxu1 %v2882_v53  ;;  %3878 = vmatpush3.msra.mxu0 %v3116_v9 }
 0x807   :  { %3868 = vmatprep.subr.mxu1 %v4402_v2  ;;  %3879 = vmatprep.subr.mxu0 %v4402_v2 }
 0x808   :  { %3869 = vmatpush3.msra.mxu1 %v2881_v61  ;;  %3880 = vmatpush3.msra.mxu0 %v3115_v55 }
 0x809   :  { %3870 = vmatprep.subr.mxu1 %v4402_v2  ;;  %3881 = vmatprep.subr.mxu0 %v4402_v2 }
 0x80a   :  { %3871 = vmatpush3.msra.mxu1 %v2880_v26  ;;  %3882 = vmatpush3.msra.mxu0 %v3114_v49 }
 0x80b   :  { %3872 = vmatprep.subr.mxu1 %v4402_v2  ;;  %3883 = vmatprep.subr.mxu0 %v4402_v2 }
 0x80c   :  { %3873 = vmatpush3.msra.mxu1 %v2879_v13  ;;  %3874 = vmatprep.mubr.msk.f32.mxu1 %vm4403_vm1, %v4402_v2 }
 0x80d   :  { %3884 = vmatpush3.msra.mxu0 %v3113_v38  ;;  %3885 = vmatprep.mubr.msk.f32.mxu0 %vm4403_vm1, %v4402_v2 }
 0x80e   :  { %3875 = vmatmul.mubr.msk.f32.vlgmr.msra.gmra.mxu1 %vm175_vm3, %v5011_v63  ;;  %3886 = vmatmul.mubr.msk.f32.vlgmr.msra.gmra.mxu0 %vm175_vm3, %v4764_v18 }
 0x80f   :  { %3888 = vmatprep.subr.mxu1 %v4402_v2  ;;  %3896 = vmatprep.mubr.msk.f32.mxu1 %vm4403_vm1, %v4402_v2 }
 0x8c5   :  { %v2640_v19 = vpop.f32.mrf.mxu1  ;;  %v2723_v12 = vpop.f32.mrf.mxu0 }
 0x8c6   :  { %v2724_v24 = vadd.f32 %v3584_v14, %v2723_v12  ;;  %v5287_v63 = vadd.f32 %v3581_v8, %v2640_v19 }
 0x8c7   :  { %v3854_v60 = vpop.f32.mrf.mxu1  ;;  %v3865_v18 = vpop.f32.mrf.mxu0 }
 0x8c8   :  { %v2748_v7 = vrot.slane %v2724_v24, %v4535_v30  ;;  %v2730_v31 = vrot.slane %v2724_v24, %v4531_v28  ;;  %v2802_v21 = vrot.slane %v2724_v24, %v4529_v27  ;;  %v2766_v32 = vrot.slane %v2724_v24, %v4537_v33 }
 0x8c9   :  { %v2838_v4 = vrot.slane %v2724_v24, %v4533_v29  ;;  %v2784_v44 = vrot.slane %v2724_v24, %v4539_v34  ;;  %v2820_v22 = vrot.slane %v2724_v24, %v4541_v35  ;;  %v5297_v42 = vrot.slane %v2724_v24, %v4543_v36 }
 0x8ca   :  { %2757 = vrot.lane.b32.xlu1 %v2748_v7, %s4404_s14  ;;  %v2749_v43 = vadd.f32 %v2748_v7, %v5287_v63  ;;  %2739 = vrot.lane.b32.xlu0 %v2730_v31, %s4404_s14  ;;  %v2731_v6 = vadd.f32 %v2730_v31, %v5287_v63  ;;  %v2803_v46 = vadd.f32 %v2802_v21, %v5287_v63 }
 0x8cb   :  { %v2767_v50 = vadd.f32 %v2766_v32, %v5287_v63  ;;  %v2839_v10 = vadd.f32 %v2838_v4, %v5287_v63  ;;  %v2785_v16 = vadd.f32 %v2784_v44, %v5287_v63  ;;  %v2821_v40 = vadd.f32 %v2820_v22, %v5287_v63 }
 0x8cc   :  { %v3587_v11 = vmul.f32 -1.442695, %v2749_v43  ;;  %v3586_v41 = vmul.f32 -1.442695, %v2731_v6  ;;  %v3590_v62 = vmul.f32 -1.442695, %v2803_v46  ;;  %v2857_v47 = vadd.f32 %v5297_v42, %v5287_v63 }
 0x8cd   :  { %v3588_v56 = vmul.f32 -1.442695, %v2767_v50  ;;  %v3592_v51 = vmul.f32 -1.442695, %v2839_v10  ;;  %v3589_v5 = vmul.f32 -1.442695, %v2785_v16 }
 0x8ce   :  { %4215 = vpow2.f32 %v3587_v11  ;;  %v2957_v57 = vpop.f32.mrf.mxu1  ;;  %v3191_v23 = vpop.f32.mrf.mxu0  ;;  %2811 = vrot.lane.b32.xlu1 %v2802_v21, %s4404_s14  ;;  %2775 = vrot.lane.b32.xlu0 %v2766_v32, %s4404_s14  ;;  %v3591_v20 = vmul.f32 -1.442695, %v2821_v40  ;;  %v3593_v52 = vmul.f32 -1.442695, %v2857_v47 }
 0x8cf   :  { %4217 = vpow2.f32 %v3586_v41  ;;  %v5318_v1 = vadd.f32 %v3596_v45, %v2957_v57  ;;  %v5320_v54 = vadd.f32 %v3608_v58, %v3191_v23 }
 0x8d0   :  { %v3876_v0 = vpop.f32.mrf.mxu1  ;;  %4219 = vpow2.f32 %v3590_v62  ;;  %v3887_v48 = vpop.f32.mrf.mxu0 }
 0x8d1   :  { %4221 = vpow2.f32 %v3588_v56  ;;  %v2982_v59 = vrot.slane %v5318_v1, %v4535_v30  ;;  %v3000_v25 = vrot.slane %v5318_v1, %v4537_v33  ;;  %v2964_v39 = vrot.slane %v5318_v1, %v4531_v28 }
 0x8d2   :  { %4223 = vpow2.f32 %v3592_v51  ;;  %2847 = vrot.lane.b32.xlu1 %v2838_v4, %s4404_s14  ;;  %2793 = vrot.lane.b32.xlu0 %v2784_v44, %s4404_s14  ;;  %v3216_v3 = vrot.slane %v5320_v54, %v4535_v30  ;;  %v3018_v37 = vrot.slane %v5318_v1, %v4539_v34  ;;  %v3198_v15 = vrot.slane %v5320_v54, %v4531_v28 }
 0x8d3   :  { %4225 = vpow2.f32 %v3589_v5  ;;  %v2983_v53 = vadd.f32 %v2982_v59, %v5287_v63  ;;  %v3001_v9 = vadd.f32 %v3000_v25, %v5287_v63  ;;  %v2965_v61 = vadd.f32 %v2964_v39, %v5287_v63 }
 0x8d4   :  { %4227 = vpow2.f32 %v3591_v20  ;;  %v3217_v55 = vadd.f32 %v3216_v3, %v5287_v63  ;;  %v3019_v26 = vadd.f32 %v3018_v37, %v5287_v63  ;;  %v3199_v30 = vadd.f32 %v3198_v15, %v5287_v63 }
 0x8d5   :  { %v3599_v49 = vmul.f32 -1.442695, %v2983_v53  ;;  %v3600_v13 = vmul.f32 -1.442695, %v3001_v9  ;;  %4229 = vpow2.f32 %v3593_v52  ;;  %v3598_v38 = vmul.f32 -1.442695, %v2965_v61 }
 0x8d6   :  { %2991 = vrot.lane.b32.xlu1 %v2982_v59, %s4404_s14  ;;  %2829 = vrot.lane.b32.xlu0 %v2820_v22, %s4404_s14  ;;  %v3611_v28 = vmul.f32 -1.442695, %v3217_v55  ;;  %v3252_v14 = vrot.slane %v5320_v54, %v4539_v34  ;;  %v3601_v8 = vmul.f32 -1.442695, %v3019_v26  ;;  %v3610_v19 = vmul.f32 -1.442695, %v3199_v30 }
 0x8d7   :  { %4231 = vpow2.f32 %v3599_v49  ;;  %v3234_v24 = vrot.slane %v5320_v54, %v4537_v33  ;;  %v3054_v45 = vrot.slane %v5318_v1, %v4541_v35  ;;  %v3036_v16 = vrot.slane %v5318_v1, %v4529_v27 }
 0x8d8   :  { %4233 = vpow2.f32 %v3600_v13  ;;  %v3253_v12 = vadd.f32 %v3252_v14, %v5287_v63  ;;  %v3288_v41 = vrot.slane %v5320_v54, %v4541_v35  ;;  %v3270_v56 = vrot.slane %v5320_v54, %v4529_v27 }
 0x8d9   :  { %4235 = vpow2.f32 %v3598_v38  ;;  %v3235_v44 = vadd.f32 %v3234_v24, %v5287_v63  ;;  %v3055_v23 = vadd.f32 %v3054_v45, %v5287_v63  ;;  %v3037_v51 = vadd.f32 %v3036_v16, %v5287_v63 }
 0x8da   :  { %3009 = vrot.lane.b32.xlu1 %v3000_v25, %s4404_s14  ;;  %2865 = vrot.lane.b32.xlu0 %v5297_v42, %s4404_s14  ;;  %4237 = vpow2.f32 %v3611_v28  ;;  %v3613_v7 = vmul.f32 -1.442695, %v3253_v12  ;;  %v3090_v5 = vrot.slane %v5318_v1, %v4543_v36  ;;  %v3072_v27 = vrot.slane %v5318_v1, %v4533_v29 }
 0x8db   :  { %v4216_v60 = vpop.eup %4215  ;;  %4239 = vpow2.f32 %v3601_v8  ;;  %v3612_v10 = vmul.f32 -1.442695, %v3235_v44  ;;  %v3289_v59 = vadd.f32 %v3288_v41, %v5287_v63  ;;  %v3324_v25 = vrot.slane %v5320_v54, %v4543_v36 }
 0x8dc   :  { %v4218_v18 = vpop.eup %4217  ;;  %v2753_v34 = vadd.f32 1.0, %v4216_v60  ;;  %4241 = vpow2.f32 %v3610_v19  ;;  %v3603_v9 = vmul.f32 -1.442695, %v3055_v23  ;;  %v3091_v1 = vadd.f32 %v3090_v5, %v5287_v63 }
 0x8dd   :  { %v4220_v31 = vpop.eup %4219  ;;  %v2735_v21 = vadd.f32 1.0, %v4218_v18  ;;  %v3602_v36 = vmul.f32 -1.442695, %v3037_v51  ;;  %v3073_v55 = vadd.f32 %v3072_v27, %v5287_v63  ;;  %v3615_v30 = vmul.f32 -1.442695, %v3289_v59 }
 0x8de   :  { %v4222_v32 = vpop.eup %4221  ;;  %4243 = vrcp.f32 %v2753_v34  ;;  %v2807_v4 = vadd.f32 1.0, %v4220_v31  ;;  %2973 = vrot.lane.b32.xlu0 %v2964_v39, %s4404_s14  ;;  %3225 = vrot.lane.b32.xlu1 %v3216_v3, %s4404_s14 }
 0x8df   :  { %v4224_v22 = vpop.eup %4223  ;;  %4245 = vrcp.f32 %v2735_v21  ;;  %v2771_v33 = vadd.f32 1.0, %v4222_v32  ;;  %v3604_v12 = vmul.f32 -1.442695, %v3073_v55 }
 0x8e0   :  { %v4226_v42 = vpop.eup %4225  ;;  %v2843_v43 = vadd.f32 1.0, %v4224_v22  ;;  %4247 = vpow2.f32 %v3613_v7 }
 0x8e1   :  { %v4228_v6 = vpop.eup %4227  ;;  %4249 = vrcp.f32 %v2771_v33  ;;  %v2789_v46 = vadd.f32 1.0, %v4226_v42 }
 0x8e2   :  { %v4230_v58 = vpop.eup %4229  ;;  %4251 = vrcp.f32 %v2807_v4  ;;  %v2825_v50 = vadd.f32 1.0, %v4228_v6  ;;  %3027 = vrot.lane.b32.xlu1 %v3018_v37, %s4404_s14  ;;  %3207 = vrot.lane.b32.xlu0 %v3198_v15, %s4404_s14  ;;  %v3271_v37 = vadd.f32 %v3270_v56, %v5287_v63  ;;  %v3306_v15 = vrot.slane %v5320_v54, %v4533_v29 }
 0x8e3   :  { %4253 = vrcp.f32 %v2789_v46  ;;  %v2861_v11 = vadd.f32 1.0, %v4230_v58  ;;  %v3325_v29 = vadd.f32 %v3324_v25, %v5287_v63 }
 0x8e4   :  { %v4232_v40 = vpop.eup %4231  ;;  %4255 = vrcp.f32 %v2843_v43  ;;  %v3614_v13 = vmul.f32 -1.442695, %v3271_v37  ;;  %v3307_v38 = vadd.f32 %v3306_v15, %v5287_v63 }
 0x8e5   :  { %v4234_v62 = vpop.eup %4233  ;;  %v2987_v47 = vadd.f32 1.0, %v4232_v40  ;;  %4257 = vrcp.f32 %v2825_v50  ;;  %v3617_v60 = vmul.f32 -1.442695, %v3325_v29 }
 0x8e6   :  { %v4236_v57 = vpop.eup %4235  ;;  %3261 = vrot.lane.b32.xlu1 %v3252_v14, %s4404_s14  ;;  %4259 = vpow2.f32 %v3612_v10  ;;  %3243 = vrot.lane.b32.xlu0 %v3234_v24, %s4404_s14  ;;  %v3005_v0 = vadd.f32 1.0, %v4234_v62  ;;  %v3605_v14 = vmul.f32 -1.442695, %v3091_v1  ;;  %v3616_v7 = vmul.f32 -1.442695, %v3307_v38 }
 0x8e7   :  { %v4238_v35 = vpop.eup %4237  ;;  %4261 = vrcp.f32 %v2987_v47  ;;  %v2969_v48 = vadd.f32 1.0, %v4236_v57 }
 0x8e8   :  { %v4240_v20 = vpop.eup %4239  ;;  %4263 = vrcp.f32 %v2861_v11  ;;  %v3221_v52 = vadd.f32 1.0, %v4238_v35 }
 0x8e9   :  { %v4242_v39 = vpop.eup %4241  ;;  %4265 = vrcp.f32 %v2969_v48  ;;  %v3023_v3 = vadd.f32 1.0, %v4240_v20 }
 0x8ea   :  { %4267 = vrcp.f32 %v3221_v52  ;;  %v3203_v53 = vadd.f32 1.0, %v4242_v39  ;;  %3063 = vrot.lane.b32.xlu1 %v3054_v45, %s4404_s14  ;;  %3045 = vrot.lane.b32.xlu0 %v3036_v16, %s4404_s14 }
 0x8eb   :  { %v5382_v61 = vpop.eup %4243  ;;  %4269 = vrcp.f32 %v3005_v0 }
 0x8ec   :  { %v5385_v26 = vpop.eup %4245  ;;  %4271 = vrcp.f32 %v3203_v53 }
 0x8ed   :  { %v4248_v54 = vpop.eup %4247  ;;  %v2762_v49 = vadd.f32 %v5385_v26, %v5382_v61  ;;  %4273 = vrcp.f32 %v3023_v3 }
 0x8ee   :  { %v5391_v28 = vpop.eup %4249  ;;  %4275 = vpow2.f32 %v3603_v9  ;;  %3297 = vrot.lane.b32.xlu1 %v3288_v41, %s4404_s14  ;;  %3279 = vrot.lane.b32.xlu0 %v3270_v56, %s4404_s14  ;;  %v3257_v44 = vadd.f32 1.0, %v4248_v54 }
 0x8ef   :  { %v5395_v8 = vpop.eup %4251  ;;  %v2780_v19 = vadd.f32 %v5391_v28, %v2762_v49  ;;  %4277 = vpow2.f32 %v3602_v36 }
 0x8f0   :  { %v5398_v24 = vpop.eup %4253  ;;  %4279 = vpow2.f32 %v3615_v30 }
 0x8f1   :  { %v5400_v18 = vpop.eup %4255  ;;  %v2798_v34 = vadd.f32 %v5398_v24, %v2780_v19  ;;  %4281 = vpow2.f32 %v3614_v13 }
 0x8f2   :  { %v5403_v31 = vpop.eup %4257  ;;  %4283 = vpow2.f32 %v3605_v14  ;;  %3099 = vrot.lane.b32.xlu1 %v3090_v5, %s4404_s14  ;;  %3081 = vrot.lane.b32.xlu0 %v3072_v27, %s4404_s14 }
 0x8f3   :  { %v4260_v21 = vpop.eup %4259  ;;  %4285 = vpow2.f32 %v3604_v12  ;;  %v2816_v32 = vadd.f32 %v5395_v8, %v2798_v34 }
 0x8f4   :  { %v5408_v4 = vpop.eup %4261  ;;  %v3239_v22 = vadd.f32 1.0, %v4260_v21  ;;  %4287 = vpow2.f32 %v3617_v60 }
 0x8f5   :  { %v5410_v33 = vpop.eup %4263  ;;  %4289 = vpow2.f32 %v3616_v7  ;;  %v2834_v42 = vadd.f32 %v5403_v31, %v2816_v32 }
 0x8f6   :  { %v5413_v43 = vpop.eup %4265  ;;  %4291 = vrcp.f32 %v3239_v22  ;;  %3333 = vrot.lane.b32.xlu1 %v3324_v25, %s4404_s14  ;;  %3315 = vrot.lane.b32.xlu0 %v3306_v15, %s4404_s14 }
 0x8f7   :  { %v5417_v6 = vpop.eup %4267  ;;  %v2996_v46 = vadd.f32 %v5413_v43, %v5408_v4  ;;  %v2852_v45 = vadd.f32 %v5400_v18, %v2834_v42  ;;  %4293 = vrcp.f32 %v3257_v44 }
 0x8f8   :  { %v5422_v58 = vpop.eup %4269 }
 0x8f9   :  { %v5424_v50 = vpop.eup %4271  ;;  %v3014_v10 = vadd.f32 %v5422_v58, %v2996_v46  ;;  %v2870_v16 = vadd.f32 %v5410_v33, %v2852_v45 }
 0x8fa   :  { %v5428_v40 = vpop.eup %4273  ;;  %v3230_v11 = vadd.f32 %v5424_v50, %v5417_v6 }
 0x8fb   :  { %v4276_v41 = vpop.eup %4275  ;;  %v3032_v62 = vadd.f32 %v5428_v40, %v3014_v10  ;;  %v2871_v46 = vadd.f32 1e-06, %v2870_v16 }
 0x8fc   :  { %v4278_v47 = vpop.eup %4277  ;;  %v3059_v56 = vadd.f32 1.0, %v4276_v41 }
 0x8fd   :  { %v4280_v57 = vpop.eup %4279  ;;  %v3041_v23 = vadd.f32 1.0, %v4278_v47 }
 0x8fe   :  { %v4282_v51 = vpop.eup %4281  ;;  %v3293_v5 = vadd.f32 1.0, %v4280_v57 }
 0x8ff   :  { %v4284_v35 = vpop.eup %4283  ;;  %4295 = vrcp.f32 %v3041_v23  ;;  %v3275_v0 = vadd.f32 1.0, %v4282_v51 }
 0x900   :  { %v4286_v48 = vpop.eup %4285  ;;  %4297 = vrcp.f32 %v3059_v56  ;;  %v3095_v27 = vadd.f32 1.0, %v4284_v35 }
 0x901   :  { %v4288_v20 = vpop.eup %4287  ;;  %4299 = vrcp.f32 %v3275_v0  ;;  %v3077_v52 = vadd.f32 1.0, %v4286_v48 }
 0x902   :  { %v4290_v59 = vpop.eup %4289  ;;  %4301 = vrcp.f32 %v3293_v5  ;;  %v3329_v39 = vadd.f32 1.0, %v4288_v20 }
 0x903   :  { %v5433_v25 = vpop.eup %4291  ;;  %v3311_v3 = vadd.f32 1.0, %v4290_v59  ;;  %4303 = vrcp.f32 %v3077_v52 }
 0x904   :  { %v3248_v37 = vadd.f32 %v5433_v25, %v3230_v11  ;;  %4305 = vrcp.f32 %v3095_v27  ;;  %v5436_v15 = vpop.eup %4293 }
 0x905   :  { %4307 = vrcp.f32 %v3311_v3 }
 0x906   :  { %v3266_v53 = vadd.f32 %v5436_v15, %v3248_v37  ;;  %4309 = vrcp.f32 %v3329_v39 }
 0x907   :  { %4311 = vrcp.f32 %v2871_v46 }
 0x90c   :  { %v5439_v9 = vpop.eup %4295 }
 0x90d   :  { %v5441_v1 = vpop.eup %4297  ;;  %v3050_v36 = vadd.f32 %v5439_v9, %v3032_v62 }
 0x90e   :  { %v5444_v55 = vpop.eup %4299 }
 0x90f   :  { %v5446_v30 = vpop.eup %4301  ;;  %v3284_v29 = vadd.f32 %v5444_v55, %v3266_v53  ;;  %v3068_v54 = vadd.f32 %v5441_v1, %v3050_v36 }
 0x910   :  { %v5450_v49 = vpop.eup %4303 }
 0x911   :  { %v5452_v13 = vpop.eup %4305  ;;  %v3086_v38 = vadd.f32 %v5450_v49, %v3068_v54  ;;  %v3302_v14 = vadd.f32 %v5446_v30, %v3284_v29 }
 0x912   :  { %v5456_v19 = vpop.eup %4307 }
 0x913   :  { %v3104_v12 = vadd.f32 %v5452_v13, %v3086_v38  ;;  %v3320_v60 = vadd.f32 %v5456_v19, %v3302_v14  ;;  %v5460_v34 = vpop.eup %4309 }
 0x914   :  { %v4312_v52 = vpop.eup %4311 }
 0x915   :  { %v3338_v7 = vadd.f32 %v5460_v34, %v3320_v60 }
 0x917   :  { %v3339_v46 = vadd.f32 1e-06, %v3338_v7 }
 0x93c   :  { %v2758_v21 = vpop.permute.xlu1 %2757  ;;  %v2740_v32 = vpop.permute.xlu0 %2739 }
 0x93d   :  { %v2760_v44 = vmul.f32 %v5382_v61, %v2758_v21  ;;  %v2742_v22 = vmul.f32 %v5385_v26, %v2740_v32  ;;  %v3105_v32 = vadd.f32 1e-06, %v3104_v12 }
 0x93f   :  { %v2761_v42 = vadd.f32 %v2760_v44, %v2742_v22  ;;  %4313 = vrcp.f32 %v3105_v32 }
 0x940   :  { %v2812_v45 = vpop.permute.xlu1 %2811  ;;  %v2776_v10 = vpop.permute.xlu0 %2775  ;;  %4315 = vrcp.f32 %v3339_v46 }
 0x941   :  { %v2778_v11 = vmul.f32 %v5391_v28, %v2776_v10  ;;  %v2814_v57 = vmul.f32 %v5395_v8, %v2812_v45 }
 0x943   :  { %v2779_v41 = vadd.f32 %v2778_v11, %v2761_v42 }
 0x944   :  { %v2848_v62 = vpop.permute.xlu1 %2847  ;;  %v2794_v47 = vpop.permute.xlu0 %2793 }
 0x945   :  { %v2796_v56 = vmul.f32 %v5398_v24, %v2794_v47  ;;  %v2850_v16 = vmul.f32 %v5400_v18, %v2848_v62 }
 0x947   :  { %v2797_v23 = vadd.f32 %v2796_v56, %v2779_v41 }
 0x948   :  { %v2992_v51 = vpop.permute.xlu1 %2991  ;;  %v2830_v5 = vpop.permute.xlu0 %2829 }
 0x949   :  { %v2815_v61 = vadd.f32 %v2814_v57, %v2797_v23  ;;  %v2832_v26 = vmul.f32 %v5403_v31, %v2830_v5  ;;  %v2994_v8 = vmul.f32 %v5408_v4, %v2992_v51  ;;  %v2875_v5 = vstv %s3594_s6 }
 0x94b   :  { %v2833_v35 = vadd.f32 %v2832_v26, %v2815_v61  ;;  %v3109_v61 = vstv %s3606_s3 }
 0x94c   :  { %v3010_v0 = vpop.permute.xlu1 %3009  ;;  %v2866_v48 = vpop.permute.xlu0 %2865 }
 0x94d   :  { %v2851_v28 = vadd.f32 %v2850_v16, %v2833_v35  ;;  %v2868_v27 = vmul.f32 %v5410_v33, %v2866_v48  ;;  %v3012_v37 = vmul.f32 %v5422_v58, %v3010_v0  ;;  %v4314_v51 = vpop.eup %4313 }
 0x94e   :  { %v4316_v48 = vpop.eup %4315 }
 0x94f   :  { %v2869_v20 = vadd.f32 %v2868_v27, %v2851_v28  ;;  %v3343_v28 = vstv %s3618_s9 }
 0x950   :  { %v2974_v59 = vpop.permute.xlu0 %2973  ;;  %v3226_v24 = vpop.permute.xlu1 %3225 }
 0x951   :  { %v2873_v39 = vmul.f32 %v4312_v52, %v2869_v20  ;;  %v2976_v3 = vmul.f32 %v5413_v43, %v2974_v59  ;;  %v3228_v36 = vmul.f32 %v5417_v6, %v3226_v24 }
 0x953   :  { %v2995_v31 = vadd.f32 %v2994_v8, %v2976_v3  ;;  %v2876_v35 = vmul.f32 %v2875_v5, %v2873_v39  ;;  %v3368_v8 = vld [vmem:[%s5521_s7 + $0x10] sm:$0xff]  ;;  %v3367_v39 = vld [vmem:[%s5521_s7 + $0x8] sm:$0xff] }
 0x954   :  { %v3028_v53 = vpop.permute.xlu1 %3027  ;;  %v3208_v18 = vpop.permute.xlu0 %3207 }
 0x955   :  { %v3013_v29 = vadd.f32 %v3012_v37, %v2995_v31  ;;  %v3030_v54 = vmul.f32 %v5428_v40, %v3028_v53  ;;  %v3210_v33 = vmul.f32 %v5424_v50, %v3208_v18 }
 0x957   :  { %v3031_v38 = vadd.f32 %v3030_v54, %v3013_v29  ;;  %v3229_v14 = vadd.f32 %v3228_v36, %v3210_v33 }
 0x958   :  { %v3262_v60 = vpop.permute.xlu1 %3261  ;;  %v3244_v21 = vpop.permute.xlu0 %3243 }
 0x959   :  { %v3246_v4 = vmul.f32 %v5433_v25, %v3244_v21  ;;  %v3264_v43 = vmul.f32 %v5436_v15, %v3262_v60 }
 0x95b   :  { %v3247_v58 = vadd.f32 %v3246_v4, %v3229_v14  ;;  %v3370_v14 = vld [vmem:[%s5522_s8] sm:$0x1] }
 0x95c   :  { %v3064_v44 = vpop.permute.xlu1 %3063  ;;  %v3046_v22 = vpop.permute.xlu0 %3045 }
 0x95d   :  { %v3048_v42 = vmul.f32 %v5439_v9, %v3046_v22  ;;  %v3265_v6 = vadd.f32 %v3264_v43, %v3247_v58  ;;  %v3066_v40 = vmul.f32 %v5441_v1, %v3064_v44 }
 0x95f   :  { %v3049_v50 = vadd.f32 %v3048_v42, %v3031_v38 }
 0x960   :  { %v3298_v45 = vpop.permute.xlu1 %3297  ;;  %v3280_v10 = vpop.permute.xlu0 %3279 }
 0x961   :  { %v3282_v11 = vmul.f32 %v5444_v55, %v3280_v10  ;;  %v3067_v25 = vadd.f32 %v3066_v40, %v3049_v50  ;;  %v3300_v15 = vmul.f32 %v5446_v30, %v3298_v45 }
 0x963   :  { %v3283_v12 = vadd.f32 %v3282_v11, %v3265_v6 }
 0x964   :  { %v3100_v41 = vpop.permute.xlu1 %3099  ;;  %v3082_v62 = vpop.permute.xlu0 %3081 }
 0x965   :  { %v3084_v9 = vmul.f32 %v5450_v49, %v3082_v62  ;;  %v3301_v47 = vadd.f32 %v3300_v15, %v3283_v12  ;;  %v3102_v1 = vmul.f32 %v5452_v13, %v3100_v41 }
 0x967   :  { %v3085_v7 = vadd.f32 %v3084_v9, %v3067_v25 }
 0x968   :  { %v3334_v56 = vpop.permute.xlu1 %3333  ;;  %v3316_v57 = vpop.permute.xlu0 %3315 }
 0x969   :  { %v3103_v23 = vadd.f32 %v3102_v1, %v3085_v7  ;;  %v3318_v55 = vmul.f32 %v5456_v19, %v3316_v57  ;;  %v3336_v30 = vmul.f32 %v5460_v34, %v3334_v56  ;;  %v3369_v34 = vld [vmem:[%s5521_s7 + $0x18] sm:$0xff] }
 0x96a   :  { %3889 = vmatpush3.msra.mxu1 %v3369_v34 }
 0x96b   :  { %v3107_v26 = vmul.f32 %v4314_v51, %v3103_v23  ;;  %v3319_v16 = vadd.f32 %v3318_v55, %v3301_v47  ;;  %3890 = vmatprep.subr.mxu1 %v4402_v2 }
 0x96c   :  { %3891 = vmatpush3.msra.mxu1 %v3368_v8 }
 0x96d   :  { %v3110_v0 = vmul.f32 %v3109_v61, %v3107_v26  ;;  %v3337_v49 = vadd.f32 %v3336_v30, %v3319_v16  ;;  %3892 = vmatprep.subr.mxu1 %v4402_v2 }
 0x96e   :  { %3893 = vmatpush3.msra.mxu1 %v3367_v39 }
 0x96f   :  { %v3341_v27 = vmul.f32 %v4316_v48, %v3337_v49  ;;  %v3111_v13 = vadd.f32 %v3110_v0, %v2876_v35  ;;  %3894 = vmatprep.subr.mxu1 %v4402_v2 }
 0x971   :  { %v3344_v20 = vmul.f32 %v3343_v28, %v3341_v27 }
 0x973   :  { %v3345_v52 = vadd.f32 %v3344_v20, %v3111_v13 }
 0x975   :  { %3347 = vrot.lane.b32.xlu0 %v3345_v52, %s4405_s22 }
 0x9e7   :  { %v3348_v59 = vpop.permute.xlu0 %3347 }
 0x9e8   :  { %v3350_v19 = vadd.f32 %v3348_v59, %v5287_v63  ;;  %v3366_v63 = vld [vmem:[%s5521_s7] sm:$0xff] }
 0x9e9   :  { %3895 = vmatpush3.msra.mxu1 %v3366_v63 }
 0x9ea   :  { %v3351_v24 = vmax.f32 %v3350_v19, 0.0 }
 0x9ec   :  { %3353 = vrot.lane.b32.xlu1 %v3351_v24, %s4404_s14 }
 0xa5e   :  { %v3354_v3 = vpop.permute.xlu1 %3353 }
 0xa5f   :  { %v3356_v37 = vadd.f32 %v3354_v3, %v5258_v17 }
 0xa61   :  { %v3357_v31 = vsel %vm175_vm3, %v3356_v37, 0.0 }
 0xa62   :  { %v3358_v53 = vrot.slane %v3357_v31, 4 }
 0xa64   :  { %v3359_v18 = vadd.f32 %v3358_v53, %v3357_v31 }
 0xa66   :  { %v3360_v36 = vrot.slane %v3359_v18, 2 }
 0xa68   :  { %v3361_v29 = vadd.f32 %v3360_v36, %v3359_v18 }
 0xa6a   :  { %v3362_v54 = vrot.slane %v3361_v29, 1 }
 0xa6c   :  { %v3363_v33 = vadd.f32 %v3362_v54, %v3361_v29 }
 0xa6e   :  { %v3365_v38 = vmul.f32 0.125, %v3363_v33 }
 0xa70   :  { %3897 = vmatmul.mubr.msk.f32.vlgmr.msra.gmra.mxu1 %vm175_vm3, %v3365_v38 }
 0xb30   :  { %v3440_v2 = vpop.f32.mrf.mxu1 }
 0xb31   :  { %v3441_v17 = vadd.f32 %v3440_v2, %v3370_v14 }
 0xb32   :  { %v3898_v60 = vpop.f32.mrf.mxu1 }
 0xb33   :  { %3445 = vst.msk [vmem:[#allocation9] sm:$0x1] %vm3444_vm4, %v3441_v17 }
 0xb34   :  { %4380 = shalt.err (!%p4377_p5)
}
 0xb35   :  { %3455 = dma.vmem_to_hbm [thread:$0]  %s3453_s12, 16, %s5524_s10, [#allocation4]  }
 0xb36   :  { %4395 = dma.done.wait [#allocation4], 16  }
 0xb37   :  { %4396 = vsyncadd [#allocation4], 4294967280 }
 0xb38   :  { %3459 = vsyncpa [#allocation3], 1 }
 0xb39   :  { %3460 = vsyncpa [#allocation7], 1 }
 0xb3a   :  { %3461 = vsyncpa [#allocation4], 1 }
 0xb3b   :  { %3462 = vsyncpa [#allocation5], 1 }

</bundles_post_ra>
